<compile_context>
chip_gen: v6e
topology: v6e:2x2x1
jax: 0.10.0
libtpu: 0.0.40
codegen_flags: <defaults>
</compile_context>

<pallas_src>
import functools

import jax
import jax.numpy as jnp
from jax import lax
from jax.experimental import pallas as pl
from jax.experimental.pallas import tpu as pltpu


# ---------------------------------------------------------------------------
# small helpers
# ---------------------------------------------------------------------------
def _round_up(x, m):
    return (x + m - 1) // m * m


def _c_tile(c):
    # channel (reduction) tile: 256 where possible (v6e/v7x MXU), else 128.
    # With the kw-fold the matmul K is 3*tile >= 384 either way.
    return 256 if c % 256 == 0 else 128


def _pad_last(a, target):
    pad = target - a.shape[-1]
    if pad == 0:
        return a
    cfg = [(0, 0)] * (a.ndim - 1) + [(0, pad)]
    return jnp.pad(a, cfg)


def _fold_kw(w, nk, tc):
    """(3,3,Cpad,Coutp) HWIO -> (nk*3, 3*tc, Coutp): kw folded into K."""
    co = w.shape[-1]
    w = w.reshape(3, 3, nk, tc, co)
    w = jnp.transpose(w, (2, 0, 1, 3, 4))            # (nk, kh, kw, tc, co)
    return w.reshape(nk * 3, 3 * tc, co)


def _pick_bt(n, per_image_bytes, budget=40 * 1024 * 1024):
    """Batch tile: amortize weight streaming, keep >=2 parallel grid steps
    (megacore / v7x 2xTC), stay inside a conservative VMEM budget."""
    bt = 1
    for cand in range(2, n + 1):
        if n % cand:
            continue
        if n // cand < 2:                 # keep >=2 parallel iterations
            continue
        if cand * per_image_bytes > budget:
            continue
        bt = cand
    return bt


def _vmem_limit(bytes_needed):
    # explicit limit: above the scoped defaults, below v7x's 64 MiB physical.
    return int(min(max(bytes_needed + (8 << 20), 32 << 20), 60 << 20))


# ---------------------------------------------------------------------------
# Kernel A: bn1+relu -> conv1(3x3, stride) -> bn2+relu   (dropout = identity)
# grid = (batch_tiles, cin_tiles); cin tile is the reduction axis (last).
# ---------------------------------------------------------------------------
def _conv1_bn_kernel(x_ref, s1_ref, b1_ref, w1_ref, s2_ref, b2_ref,
                     o_ref, acc_ref, pad_ref, *, stride, bt):
    k = pl.program_id(1)
    h, w = x_ref.shape[1], x_ref.shape[2]
    ho = (h - 1) // stride + 1
    wo = (w - 1) // stride + 1
    tcin = pad_ref.shape[-1]

    # Zero the accumulator and only the halo border of the padded scratch
    # (the interior is fully overwritten each step).  Doing this at k==0 of
    # every batch tile keeps it correct when the parallel axis is split
    # across TensorCores (each core has its own scratch).
    @pl.when(k == 0)
    def _():
        acc_ref[...] = jnp.zeros_like(acc_ref)
        zr = jnp.zeros((bt, 1, w + 2, tcin), pad_ref.dtype)
        zc = jnp.zeros((bt, h, 1, tcin), pad_ref.dtype)
        pad_ref[:, 0:1, :, :] = zr
        pad_ref[:, h + 1:h + 2, :, :] = zr
        pad_ref[:, 1:h + 1, 0:1, :] = zc
        pad_ref[:, 1:h + 1, w + 1:w + 2, :] = zc

    # bn1 + relu prologue (f32 VPU math) -> interior of the padded bf16 tile.
    xv = x_ref[...].astype(jnp.float32)                      # (bt, H, W, tcin)
    act = jnp.maximum(xv * s1_ref[...] + b1_ref[...], 0.0)
    pad_ref[:, 1:h + 1, 1:w + 1, :] = act.astype(pad_ref.dtype)

    # 3x3 conv: the 3 kw taps are folded into the contraction dim ->
    # 3 MXU matmuls with K = 3*tcin, f32 accumulation.
    acc = None
    for kh in range(3):
        if stride == 1:
            parts = [pad_ref[:, kh:kh + ho, kw:kw + wo, :] for kw in range(3)]
        else:
            parts = [pad_ref[:, pl.ds(kh, ho, stride), pl.ds(kw, wo, stride), :]
                     for kw in range(3)]
        patch = jnp.concatenate(parts, axis=-1).reshape(bt * ho * wo, 3 * tcin)
        d = jnp.dot(patch, w1_ref[kh], preferred_element_type=jnp.float32)
        acc = d if acc is None else acc + d
    acc_ref[...] += acc

    @pl.when(k == pl.num_programs(1) - 1)
    def _():
        # bn2 + relu epilogue (eval-mode dropout is identity).
        y = jnp.maximum(acc_ref[...] * s2_ref[...] + b2_ref[...], 0.0)
        o_ref[...] = y.astype(o_ref.dtype)


def _conv1_call(xp, s1, b1, w1f, s2, b2, *, stride, bt):
    n, h, w, cinp = xp.shape
    coutp = w1f.shape[-1]
    ho = (h - 1) // stride + 1
    wo = (w - 1) // stride + 1
    tcin = w1f.shape[1] // 3
    nk = cinp // tcin
    nbt = n // bt

    vmem_need = (2 * (bt * h * w * tcin * 2 + 3 * 3 * tcin * coutp * 2
                      + bt * ho * wo * coutp * 2)
                 + bt * ho * wo * coutp * 4
                 + bt * (h + 2) * (w + 2) * tcin * 2)

    flops = 2 * n * ho * wo * 9 * cinp * coutp
    weight_reads = nbt if nk > 1 else 1
    bytes_accessed = int(xp.size * 2 + w1f.size * 2 * weight_reads
                         + n * ho * wo * coutp * 2
                         + (s1.size + b1.size + s2.size + b2.size) * 4)

    return pl.pallas_call(
        functools.partial(_conv1_bn_kernel, stride=stride, bt=bt),
        out_shape=jax.ShapeDtypeStruct((n * ho * wo, coutp), jnp.bfloat16),
        grid=(nbt, nk),
        in_specs=[
            pl.BlockSpec((bt, h, w, tcin), lambda i, k: (i, 0, 0, k)),
            pl.BlockSpec((1, tcin), lambda i, k: (0, k)),
            pl.BlockSpec((1, tcin), lambda i, k: (0, k)),
            pl.BlockSpec((3, 3 * tcin, coutp), lambda i, k: (k, 0, 0)),
            pl.BlockSpec((1, coutp), lambda i, k: (0, 0)),
            pl.BlockSpec((1, coutp), lambda i, k: (0, 0)),
        ],
        out_specs=pl.BlockSpec((bt * ho * wo, coutp), lambda i, k: (i, 0)),
        scratch_shapes=[
            pltpu.VMEM((bt * ho * wo, coutp), jnp.float32),       # f32 acc
            pltpu.VMEM((bt, h + 2, w + 2, tcin), jnp.bfloat16),   # padded act
        ],
        compiler_params=pltpu.CompilerParams(
            dimension_semantics=("parallel", "arbitrary"),
            vmem_limit_bytes=_vmem_limit(vmem_need)),
        cost_estimate=pl.CostEstimate(flops=flops, transcendentals=0,
                                      bytes_accessed=bytes_accessed),
    )(xp, s1, b1, w1f, s2, b2)


# ---------------------------------------------------------------------------
# Kernel B: conv2(3x3, stride 1) + residual
#   - shortcut variant : residual = 1x1 convShortcut(relu(bn1(x)))  (fused,
#     stride sampling of x done in-kernel)
#   - identity variant : residual = x
# grid = (batch_tiles, cin_tiles of conv2); residual added at last k.
# ---------------------------------------------------------------------------
def _conv2_taps(a_ref, w2_ref, pad_ref, acc_ref, *, bt):
    k = pl.program_id(1)
    ho, wo = a_ref.shape[1], a_ref.shape[2]
    tck = pad_ref.shape[-1]

    @pl.when(k == 0)
    def _():
        acc_ref[...] = jnp.zeros_like(acc_ref)
        zr = jnp.zeros((bt, 1, wo + 2, tck), pad_ref.dtype)
        zc = jnp.zeros((bt, ho, 1, tck), pad_ref.dtype)
        pad_ref[:, 0:1, :, :] = zr
        pad_ref[:, ho + 1:ho + 2, :, :] = zr
        pad_ref[:, 1:ho + 1, 0:1, :] = zc
        pad_ref[:, 1:ho + 1, wo + 1:wo + 2, :] = zc

    pad_ref[:, 1:ho + 1, 1:wo + 1, :] = a_ref[...]

    acc = None
    for kh in range(3):
        parts = [pad_ref[:, kh:kh + ho, kw:kw + wo, :] for kw in range(3)]
        patch = jnp.concatenate(parts, axis=-1).reshape(bt * ho * wo, 3 * tck)
        d = jnp.dot(patch, w2_ref[kh], preferred_element_type=jnp.float32)
        acc = d if acc is None else acc + d
    acc_ref[...] += acc
    return ho, wo


def _conv2_shortcut_kernel(a_ref, w2_ref, x_ref, s1_ref, b1_ref, ws_ref,
                           o_ref, acc_ref, pad_ref, *, stride, bt):
    ho, wo = _conv2_taps(a_ref, w2_ref, pad_ref, acc_ref, bt=bt)

    @pl.when(pl.program_id(1) == pl.num_programs(1) - 1)
    def _():
        # convShortcut: residual = (1x1 conv, stride)(relu(bn1(x)))
        cinp = x_ref.shape[-1]
        if stride == 1:
            xs = x_ref[...]
        else:
            xs = x_ref[:, pl.ds(0, ho, stride), pl.ds(0, wo, stride), :]
        r = jnp.maximum(xs.astype(jnp.float32) * s1_ref[...] + b1_ref[...], 0.0)
        r2 = jnp.dot(r.reshape(bt * ho * wo, cinp).astype(ws_ref.dtype),
                     ws_ref[...], preferred_element_type=jnp.float32)
        o_ref[...] = (acc_ref[...] + r2).astype(o_ref.dtype)


def _conv2_identity_kernel(a_ref, w2_ref, r_ref, o_ref, acc_ref, pad_ref, *, bt):
    ho, wo = _conv2_taps(a_ref, w2_ref, pad_ref, acc_ref, bt=bt)

    @pl.when(pl.program_id(1) == pl.num_programs(1) - 1)
    def _():
        res = r_ref[...].reshape(bt * ho * wo, r_ref.shape[-1])
        o_ref[...] = (acc_ref[...] + res.astype(jnp.float32)).astype(o_ref.dtype)


def _conv2_shortcut_call(a, w2f, xp, s1, b1, ws, *, stride, bt):
    n, ho, wo, coutp = a.shape
    _, h, w, cinp = xp.shape
    tck = w2f.shape[1] // 3
    nk = coutp // tck
    nbt = n // bt

    vmem_need = (2 * (bt * ho * wo * tck * 2 + 3 * 3 * tck * coutp * 2
                      + bt * h * w * cinp * 2 + cinp * coutp * 2
                      + bt * ho * wo * coutp * 2)
                 + bt * ho * wo * coutp * 4
                 + bt * (ho + 2) * (wo + 2) * tck * 2)

    flops = 2 * n * ho * wo * (9 * coutp + cinp) * coutp
    weight_reads = nbt if nk > 1 else 1
    bytes_accessed = int(a.size * 2 + w2f.size * 2 * weight_reads
                         + xp.size * 2 + ws.size * 2
                         + n * ho * wo * coutp * 2
                         + (s1.size + b1.size) * 4)

    return pl.pallas_call(
        functools.partial(_conv2_shortcut_kernel, stride=stride, bt=bt),
        out_shape=jax.ShapeDtypeStruct((n * ho * wo, coutp), jnp.bfloat16),
        grid=(nbt, nk),
        in_specs=[
            pl.BlockSpec((bt, ho, wo, tck), lambda i, k: (i, 0, 0, k)),
            pl.BlockSpec((3, 3 * tck, coutp), lambda i, k: (k, 0, 0)),
            pl.BlockSpec((bt, h, w, cinp), lambda i, k: (i, 0, 0, 0)),
            pl.BlockSpec((1, cinp), lambda i, k: (0, 0)),
            pl.BlockSpec((1, cinp), lambda i, k: (0, 0)),
            pl.BlockSpec((cinp, coutp), lambda i, k: (0, 0)),
        ],
        out_specs=pl.BlockSpec((bt * ho * wo, coutp), lambda i, k: (i, 0)),
        scratch_shapes=[
            pltpu.VMEM((bt * ho * wo, coutp), jnp.float32),
            pltpu.VMEM((bt, ho + 2, wo + 2, tck), jnp.bfloat16),
        ],
        compiler_params=pltpu.CompilerParams(
            dimension_semantics=("parallel", "arbitrary"),
            vmem_limit_bytes=_vmem_limit(vmem_need)),
        cost_estimate=pl.CostEstimate(flops=flops, transcendentals=0,
                                      bytes_accessed=bytes_accessed),
    )(a, w2f, xp, s1, b1, ws)


def _conv2_identity_call(a, w2f, res, *, bt):
    n, ho, wo, coutp = a.shape
    tck = w2f.shape[1] // 3
    nk = coutp // tck
    nbt = n // bt

    vmem_need = (2 * (bt * ho * wo * tck * 2 + 3 * 3 * tck * coutp * 2
                      + 2 * bt * ho * wo * coutp * 2)
                 + bt * ho * wo * coutp * 4
                 + bt * (ho + 2) * (wo + 2) * tck * 2)

    flops = 2 * n * ho * wo * 9 * coutp * coutp
    weight_reads = nbt if nk > 1 else 1
    bytes_accessed = int(a.size * 2 + w2f.size * 2 * weight_reads
                         + res.size * 2 + n * ho * wo * coutp * 2)

    return pl.pallas_call(
        functools.partial(_conv2_identity_kernel, bt=bt),
        out_shape=jax.ShapeDtypeStruct((n * ho * wo, coutp), jnp.bfloat16),
        grid=(nbt, nk),
        in_specs=[
            pl.BlockSpec((bt, ho, wo, tck), lambda i, k: (i, 0, 0, k)),
            pl.BlockSpec((3, 3 * tck, coutp), lambda i, k: (k, 0, 0)),
            pl.BlockSpec((bt, ho, wo, coutp), lambda i, k: (i, 0, 0, 0)),
        ],
        out_specs=pl.BlockSpec((bt * ho * wo, coutp), lambda i, k: (i, 0)),
        scratch_shapes=[
            pltpu.VMEM((bt * ho * wo, coutp), jnp.float32),
            pltpu.VMEM((bt, ho + 2, wo + 2, tck), jnp.bfloat16),
        ],
        compiler_params=pltpu.CompilerParams(
            dimension_semantics=("parallel", "arbitrary"),
            vmem_limit_bytes=_vmem_limit(vmem_need)),
        cost_estimate=pl.CostEstimate(flops=flops, transcendentals=0,
                                      bytes_accessed=bytes_accessed),
    )(a, w2f, res)


# ---------------------------------------------------------------------------
# Block forward (matches torch Block.forward, eval mode)
# ---------------------------------------------------------------------------
def block_forward(x_nchw, params, stride, equal_in_out):
    x = jnp.transpose(x_nchw, (0, 2, 3, 1))                      # NHWC
    n, h, w, cin = x.shape
    cout = params["w1"].shape[-1]
    cinp, coutp = _round_up(cin, 128), _round_up(cout, 128)
    tcin, tck2 = _c_tile(cinp), _c_tile(coutp)
    nk1, nk2 = cinp // tcin, coutp // tck2

    ho = (h - 1) // stride + 1
    wo = (w - 1) // stride + 1

    # batch tile from a rough per-image VMEM footprint (kernel A dominates)
    per_image = (2 * h * w * tcin * 2 + (h + 2) * (w + 2) * tcin * 2
                 + ho * wo * coutp * (4 + 4) + 2 * h * w * cinp * 2)
    bt = _pick_bt(n, per_image)

    # pad channels to lane width; cast matmul operands to bf16
    xp = _pad_last(x, cinp).astype(jnp.bfloat16)
    s1 = _pad_last(params["s1"].astype(jnp.float32), cinp)
    b1 = _pad_last(params["b1"].astype(jnp.float32), cinp)
    s2 = _pad_last(params["s2"].astype(jnp.float32), coutp)
    b2 = _pad_last(params["b2"].astype(jnp.float32), coutp)

    w1 = jnp.pad(params["w1"],
                 ((0, 0), (0, 0), (0, cinp - cin), (0, coutp - cout)))
    w1f = _fold_kw(w1.astype(jnp.bfloat16), nk1, tcin)
    w2 = jnp.pad(params["w2"],
                 ((0, 0), (0, 0), (0, coutp - cout), (0, coutp - cout)))
    w2f = _fold_kw(w2.astype(jnp.bfloat16), nk2, tck2)

    # kernel A: bn1+relu -> conv1(3x3, stride) -> bn2+relu
    a = _conv1_call(xp, s1, b1, w1f, s2, b2, stride=stride, bt=bt)
    a = a.reshape(n, ho, wo, coutp)

    # kernel B: conv2(3x3, 1) + residual
    if equal_in_out:
        assert cinp == coutp and stride == 1
        out2d = _conv2_identity_call(a, w2f, xp, bt=bt)
    else:
        ws = jnp.pad(params["ws"], ((0, cinp - cin), (0, coutp - cout)))
        out2d = _conv2_shortcut_call(a, w2f, xp, s1, b1,
                                     ws.astype(jnp.bfloat16),
                                     stride=stride, bt=bt)

    # TODO(synk): when chaining blocks keep NHWC/bf16/padded channels and drop
    #             this per-block slice + transpose (network-boundary only).
    out = out2d.reshape(n, ho, wo, coutp)[..., :cout].astype(jnp.float32)
    return jnp.transpose(out, (0, 3, 1, 2))                      # back to NCHW


# ---------------------------------------------------------------------------
# Pure-JAX reference (same bf16-input / f32-accumulation numerics)
# ---------------------------------------------------------------------------
def reference_forward(x_nchw, params, stride, equal_in_out):
    bf16, f32 = jnp.bfloat16, jnp.float32
    x = jnp.transpose(x_nchw, (0, 2, 3, 1)).astype(bf16).astype(f32)
    cin = x.shape[-1]
    cout = params["w1"].shape[-1]

    conv = functools.partial(lax.conv_general_dilated,
                             dimension_numbers=("NHWC", "HWIO", "NHWC"),
                             preferred_element_type=f32)

    def bnr(v, s, b):
        return jnp.maximum(v * s.reshape(1, 1, 1, -1) + b.reshape(1, 1, 1, -1), 0.0)

    o1 = bnr(x, params["s1"], params["b1"])
    residual = x if equal_in_out else o1
    a = bnr(conv(o1.astype(bf16), params["w1"].astype(bf16),
                 (stride, stride), [(1, 1), (1, 1)]),
            params["s2"], params["b2"])
    out = conv(a.astype(bf16), params["w2"].astype(bf16), (1, 1), [(1, 1), (1, 1)])
    if not equal_in_out:
        residual = conv(residual.astype(bf16),
                        params["ws"].reshape(1, 1, cin, cout).astype(bf16),
                        (stride, stride), [(0, 0), (0, 0)])
    return jnp.transpose(out + residual, (0, 3, 1, 2))


# ---------------------------------------------------------------------------
def make_params(key, in_planes, out_planes, eps=1e-5):
    ks = jax.random.split(key, 11)

    def bn_fold(kg, kb, km, kv, c):
        gamma = jax.random.uniform(kg, (c,), jnp.float32, 0.5, 1.5)
        beta = 0.1 * jax.random.normal(kb, (c,), jnp.float32)
        mean = 0.1 * jax.random.normal(km, (c,), jnp.float32)
        var = jax.random.uniform(kv, (c,), jnp.float32, 0.5, 1.5)
        scale = gamma / jnp.sqrt(var + eps)
        bias = beta - mean * scale
        return scale.reshape(1, c), bias.reshape(1, c)

    s1, b1 = bn_fold(ks[0], ks[1], ks[2], ks[3], in_planes)
    s2, b2 = bn_fold(ks[4], ks[5], ks[6], ks[7], out_planes)
    w1 = jax.random.normal(ks[8], (3, 3, in_planes, out_planes), jnp.float32) \
        * jnp.sqrt(2.0 / (9 * in_planes))
    w2 = jax.random.normal(ks[9], (3, 3, out_planes, out_planes), jnp.float32) \
        * jnp.sqrt(2.0 / (9 * out_planes))
    ws = jax.random.normal(ks[10], (in_planes, out_planes), jnp.float32) \
        * jnp.sqrt(2.0 / in_planes)
    return dict(s1=s1, b1=b1, s2=s2, b2=b2, w1=w1, w2=w2, ws=ws)


if __name__ == "__main__":
    key = jax.random.PRNGKey(0)
    kx1, kx2, kx3, kp1, kp2, kp3, kp4 = jax.random.split(key, 7)

    def check(x, params, stride, equal_in_out, name):
        out = jax.block_until_ready(
            block_forward(x, params, stride, equal_in_out))
        ref = reference_forward(x, params, stride, equal_in_out)
        assert out.shape == ref.shape, (name, out.shape, ref.shape)
        ok = bool(jnp.allclose(out, ref, atol=1e-2, rtol=1e-2))
        assert ok, (name, float(jnp.max(jnp.abs(out - ref))))

    # 1) convShortcut path (in != out), stride 1, padded channels.
    x1 = jax.random.normal(kx1, (2, 4, 16, 16), jnp.float32)
    p1 = make_params(kp1, 4, 8)
    check(x1, p1, 1, False, "shortcut_s1")

    # 2) identity-residual path (in == out), stride 1.
    x2 = jax.random.normal(kx2, (2, 8, 16, 16), jnp.float32)
    p2 = make_params(kp2, 8, 8)
    check(x2, p2, 1, True, "identity_s1")

    # 3) identity path at a full 256-wide tile, batch blocking (bt=2).
    x3 = jax.random.normal(kx3, (4, 256, 8, 8), jnp.float32)
    p3 = make_params(kp3, 256, 256)
    check(x3, p3, 1, True, "identity_256_bt2")

    # 4) downsampling block: stride 2 + fused convShortcut + multi-tile
    #    reduction (nk2 = 2) in kernel B.
    x4 = jax.random.normal(kx1, (2, 256, 8, 8), jnp.float32)
    p4 = make_params(kp4, 256, 512)
    check(x4, p4, 2, False, "shortcut_s2_256_512")

    print("KERNEL_OK")
</pallas_src>

<mosaic_0001>
module attributes {stable_mosaic.version = 11 : i64} {
  func.func @_conv1_bn_kernel(%arg0: i32, %arg1: i32, %arg2: memref<1x16x16x128xbf16, #tpu.memory_space<vmem>>, %arg3: memref<1x128xf32, #tpu.memory_space<vmem>>, %arg4: memref<1x128xf32, #tpu.memory_space<vmem>>, %arg5: memref<3x384x128xbf16, #tpu.memory_space<vmem>>, %arg6: memref<1x128xf32, #tpu.memory_space<vmem>>, %arg7: memref<1x128xf32, #tpu.memory_space<vmem>>, %arg8: memref<256x128xbf16, #tpu.memory_space<vmem>>, %arg9: memref<256x128xf32, #tpu.memory_space<vmem>>, %arg10: memref<1x18x18x128xbf16, #tpu.memory_space<vmem>>) attributes {dimension_semantics = [#tpu.dimension_semantics<parallel>, #tpu.dimension_semantics<arbitrary>], iteration_bounds = array<i64: 2, 1>, scalar_prefetch = 0 : i64, scratch_operands = 2 : i64, tpu.core_type = #tpu.core_type<tc>, window_params = [{transform_indices = @transform_0, window_bounds = array<i64: 1, 16, 16, 128>}, {transform_indices = @transform_1, window_bounds = array<i64: 1, 128>}, {transform_indices = @transform_2, window_bounds = array<i64: 1, 128>}, {transform_indices = @transform_3, window_bounds = array<i64: 3, 384, 128>}, {pipeline_mode = #tpu.pipeline_mode<synchronous>, transform_indices = @transform_4, window_bounds = array<i64: 1, 128>}, {pipeline_mode = #tpu.pipeline_mode<synchronous>, transform_indices = @transform_5, window_bounds = array<i64: 1, 128>}, {transform_indices = @transform_6, window_bounds = array<i64: 256, 128>}]} {
    %c0_i32 = arith.constant 0 : i32
    %0 = arith.cmpi eq, %arg1, %c0_i32 : i32
    %1 = arith.extui %0 : i1 to i32
    %c0_i32_0 = arith.constant 0 : i32
    %2 = arith.cmpi ne, %1, %c0_i32_0 : i32
    scf.if %2 {
      %cst_64 = arith.constant 0.000000e+00 : f32
      %49 = vector.broadcast %cst_64 : f32 to vector<256x128xf32>
      %c0_65 = arith.constant 0 : index
      %c0_66 = arith.constant 0 : index
      %50 = vector.load %arg9[%c0_65, %c0_66] : memref<256x128xf32, #tpu.memory_space<vmem>>, vector<256x128xf32>
      tpu.vector_store %arg9[%c0_65, %c0_66], %49 {strides = array<i32>} : memref<256x128xf32, #tpu.memory_space<vmem>>, vector<256x128xf32>,
      %cst_67 = arith.constant 0.000000e+00 : bf16
      %51 = vector.broadcast %cst_67 : bf16 to vector<1x1x18x128xbf16>
      %cst_68 = arith.constant 0.000000e+00 : bf16
      %52 = vector.broadcast %cst_68 : bf16 to vector<1x16x1x128xbf16>
      %c0_69 = arith.constant 0 : index
      %c0_70 = arith.constant 0 : index
      %c0_71 = arith.constant 0 : index
      %c0_72 = arith.constant 0 : index
      %53 = vector.load %arg10[%c0_69, %c0_70, %c0_71, %c0_72] : memref<1x18x18x128xbf16, #tpu.memory_space<vmem>>, vector<1x1x18x128xbf16>
      tpu.vector_store %arg10[%c0_69, %c0_70, %c0_71, %c0_72], %51 {strides = array<i32>} : memref<1x18x18x128xbf16, #tpu.memory_space<vmem>>, vector<1x1x18x128xbf16>,
      %c0_73 = arith.constant 0 : index
      %c17 = arith.constant 17 : index
      %c0_74 = arith.constant 0 : index
      %c0_75 = arith.constant 0 : index
      %54 = vector.load %arg10[%c0_73, %c17, %c0_74, %c0_75] : memref<1x18x18x128xbf16, #tpu.memory_space<vmem>>, vector<1x1x18x128xbf16>
      tpu.vector_store %arg10[%c0_73, %c17, %c0_74, %c0_75], %51 {strides = array<i32>} : memref<1x18x18x128xbf16, #tpu.memory_space<vmem>>, vector<1x1x18x128xbf16>,
      %c0_76 = arith.constant 0 : index
      %c1_77 = arith.constant 1 : index
      %c0_78 = arith.constant 0 : index
      %c0_79 = arith.constant 0 : index
      %55 = vector.load %arg10[%c0_76, %c1_77, %c0_78, %c0_79] : memref<1x18x18x128xbf16, #tpu.memory_space<vmem>>, vector<1x16x1x128xbf16>
      tpu.vector_store %arg10[%c0_76, %c1_77, %c0_78, %c0_79], %52 {strides = array<i32>} : memref<1x18x18x128xbf16, #tpu.memory_space<vmem>>, vector<1x16x1x128xbf16>,
      %c0_80 = arith.constant 0 : index
      %c1_81 = arith.constant 1 : index
      %c17_82 = arith.constant 17 : index
      %c0_83 = arith.constant 0 : index
      %56 = vector.load %arg10[%c0_80, %c1_81, %c17_82, %c0_83] : memref<1x18x18x128xbf16, #tpu.memory_space<vmem>>, vector<1x16x1x128xbf16>
      tpu.vector_store %arg10[%c0_80, %c1_81, %c17_82, %c0_83], %52 {strides = array<i32>} : memref<1x18x18x128xbf16, #tpu.memory_space<vmem>>, vector<1x16x1x128xbf16>,
    } else {
    }
    %c0 = arith.constant 0 : index
    %c0_1 = arith.constant 0 : index
    %c0_2 = arith.constant 0 : index
    %c0_3 = arith.constant 0 : index
    %3 = vector.load %arg2[%c0, %c0_1, %c0_2, %c0_3] : memref<1x16x16x128xbf16, #tpu.memory_space<vmem>>, vector<1x16x16x128xbf16>
    %4 = arith.extf %3 : vector<1x16x16x128xbf16> to vector<1x16x16x128xf32>
    %c0_4 = arith.constant 0 : index
    %c0_5 = arith.constant 0 : index
    %5 = vector.load %arg3[%c0_4, %c0_5] : memref<1x128xf32, #tpu.memory_space<vmem>>, vector<1x128xf32>
    %6 = vector.shape_cast %5 : vector<1x128xf32> to vector<1x1x1x128xf32>
    %7 = vector.broadcast %6 : vector<1x1x1x128xf32> to vector<1x16x16x128xf32>
    %8 = arith.mulf %4, %7 : vector<1x16x16x128xf32>
    %c0_6 = arith.constant 0 : index
    %c0_7 = arith.constant 0 : index
    %9 = vector.load %arg4[%c0_6, %c0_7] : memref<1x128xf32, #tpu.memory_space<vmem>>, vector<1x128xf32>
    %10 = vector.shape_cast %9 : vector<1x128xf32> to vector<1x1x1x128xf32>
    %11 = vector.broadcast %10 : vector<1x1x1x128xf32> to vector<1x16x16x128xf32>
    %12 = arith.addf %8, %11 : vector<1x16x16x128xf32>
    %cst = arith.constant 0.000000e+00 : f32
    %13 = vector.broadcast %cst : f32 to vector<1x16x16x128xf32>
    %14 = arith.maximumf %12, %13 : vector<1x16x16x128xf32>
    %15 = arith.truncf %14 : vector<1x16x16x128xf32> to vector<1x16x16x128xbf16>
    %c0_8 = arith.constant 0 : index
    %c1 = arith.constant 1 : index
    %c1_9 = arith.constant 1 : index
    %c0_10 = arith.constant 0 : index
    %16 = vector.load %arg10[%c0_8, %c1, %c1_9, %c0_10] : memref<1x18x18x128xbf16, #tpu.memory_space<vmem>>, vector<1x16x16x128xbf16>
    tpu.vector_store %arg10[%c0_8, %c1, %c1_9, %c0_10], %15 {strides = array<i32>} : memref<1x18x18x128xbf16, #tpu.memory_space<vmem>>, vector<1x16x16x128xbf16>,
    %c0_11 = arith.constant 0 : index
    %c0_12 = arith.constant 0 : index
    %c0_13 = arith.constant 0 : index
    %c0_14 = arith.constant 0 : index
    %17 = vector.load %arg10[%c0_11, %c0_12, %c0_13, %c0_14] : memref<1x18x18x128xbf16, #tpu.memory_space<vmem>>, vector<1x16x16x128xbf16>
    %c0_15 = arith.constant 0 : index
    %c0_16 = arith.constant 0 : index
    %c1_17 = arith.constant 1 : index
    %c0_18 = arith.constant 0 : index
    %18 = vector.load %arg10[%c0_15, %c0_16, %c1_17, %c0_18] : memref<1x18x18x128xbf16, #tpu.memory_space<vmem>>, vector<1x16x16x128xbf16>
    %c0_19 = arith.constant 0 : index
    %c0_20 = arith.constant 0 : index
    %c2 = arith.constant 2 : index
    %c0_21 = arith.constant 0 : index
    %19 = vector.load %arg10[%c0_19, %c0_20, %c2, %c0_21] : memref<1x18x18x128xbf16, #tpu.memory_space<vmem>>, vector<1x16x16x128xbf16>
    %20 = tpu.concatenate %17, %18, %19 in 3 : vector<1x16x16x128xbf16>, vector<1x16x16x128xbf16>, vector<1x16x16x128xbf16> -> vector<1x16x16x384xbf16>
    %21 = vector.shape_cast %20 : vector<1x16x16x384xbf16> to vector<256x384xbf16>
    %c0_22 = arith.constant 0 : index
    %c0_23 = arith.constant 0 : index
    %c0_24 = arith.constant 0 : index
    %22 = vector.load %arg5[%c0_22, %c0_23, %c0_24] : memref<3x384x128xbf16, #tpu.memory_space<vmem>>, vector<1x384x128xbf16>
    %23 = vector.shape_cast %22 : vector<1x384x128xbf16> to vector<384x128xbf16>
    %cst_25 = arith.constant dense<0.000000e+00> : vector<256x128xf32>
    %24 = tpu.matmul %21, %23, %cst_25 {dimension_numbers = #tpu.dot_dimension_numbers<[1], [0], [0], [1], [0, 0, 1, 1], [], []>} : vector<256x384xbf16>, vector<384x128xbf16>, vector<256x128xf32> -> vector<256x128xf32>
    %c0_26 = arith.constant 0 : index
    %c1_27 = arith.constant 1 : index
    %c0_28 = arith.constant 0 : index
    %c0_29 = arith.constant 0 : index
    %25 = vector.load %arg10[%c0_26, %c1_27, %c0_28, %c0_29] : memref<1x18x18x128xbf16, #tpu.memory_space<vmem>>, vector<1x16x16x128xbf16>
    %c0_30 = arith.constant 0 : index
    %c1_31 = arith.constant 1 : index
    %c1_32 = arith.constant 1 : index
    %c0_33 = arith.constant 0 : index
    %26 = vector.load %arg10[%c0_30, %c1_31, %c1_32, %c0_33] : memref<1x18x18x128xbf16, #tpu.memory_space<vmem>>, vector<1x16x16x128xbf16>
    %c0_34 = arith.constant 0 : index
    %c1_35 = arith.constant 1 : index
    %c2_36 = arith.constant 2 : index
    %c0_37 = arith.constant 0 : index
    %27 = vector.load %arg10[%c0_34, %c1_35, %c2_36, %c0_37] : memref<1x18x18x128xbf16, #tpu.memory_space<vmem>>, vector<1x16x16x128xbf16>
    %28 = tpu.concatenate %25, %26, %27 in 3 : vector<1x16x16x128xbf16>, vector<1x16x16x128xbf16>, vector<1x16x16x128xbf16> -> vector<1x16x16x384xbf16>
    %29 = vector.shape_cast %28 : vector<1x16x16x384xbf16> to vector<256x384xbf16>
    %c1_38 = arith.constant 1 : index
    %c0_39 = arith.constant 0 : index
    %c0_40 = arith.constant 0 : index
    %30 = vector.load %arg5[%c1_38, %c0_39, %c0_40] : memref<3x384x128xbf16, #tpu.memory_space<vmem>>, vector<1x384x128xbf16>
    %31 = vector.shape_cast %30 : vector<1x384x128xbf16> to vector<384x128xbf16>
    %cst_41 = arith.constant dense<0.000000e+00> : vector<256x128xf32>
    %32 = tpu.matmul %29, %31, %cst_41 {dimension_numbers = #tpu.dot_dimension_numbers<[1], [0], [0], [1], [0, 0, 1, 1], [], []>} : vector<256x384xbf16>, vector<384x128xbf16>, vector<256x128xf32> -> vector<256x128xf32>
    %33 = arith.addf %24, %32 : vector<256x128xf32>
    %c0_42 = arith.constant 0 : index
    %c2_43 = arith.constant 2 : index
    %c0_44 = arith.constant 0 : index
    %c0_45 = arith.constant 0 : index
    %34 = vector.load %arg10[%c0_42, %c2_43, %c0_44, %c0_45] : memref<1x18x18x128xbf16, #tpu.memory_space<vmem>>, vector<1x16x16x128xbf16>
    %c0_46 = arith.constant 0 : index
    %c2_47 = arith.constant 2 : index
    %c1_48 = arith.constant 1 : index
    %c0_49 = arith.constant 0 : index
    %35 = vector.load %arg10[%c0_46, %c2_47, %c1_48, %c0_49] : memref<1x18x18x128xbf16, #tpu.memory_space<vmem>>, vector<1x16x16x128xbf16>
    %c0_50 = arith.constant 0 : index
    %c2_51 = arith.constant 2 : index
    %c2_52 = arith.constant 2 : index
    %c0_53 = arith.constant 0 : index
    %36 = vector.load %arg10[%c0_50, %c2_51, %c2_52, %c0_53] : memref<1x18x18x128xbf16, #tpu.memory_space<vmem>>, vector<1x16x16x128xbf16>
    %37 = tpu.concatenate %34, %35, %36 in 3 : vector<1x16x16x128xbf16>, vector<1x16x16x128xbf16>, vector<1x16x16x128xbf16> -> vector<1x16x16x384xbf16>
    %38 = vector.shape_cast %37 : vector<1x16x16x384xbf16> to vector<256x384xbf16>
    %c2_54 = arith.constant 2 : index
    %c0_55 = arith.constant 0 : index
    %c0_56 = arith.constant 0 : index
    %39 = vector.load %arg5[%c2_54, %c0_55, %c0_56] : memref<3x384x128xbf16, #tpu.memory_space<vmem>>, vector<1x384x128xbf16>
    %40 = vector.shape_cast %39 : vector<1x384x128xbf16> to vector<384x128xbf16>
    %cst_57 = arith.constant dense<0.000000e+00> : vector<256x128xf32>
    %41 = tpu.matmul %38, %40, %cst_57 {dimension_numbers = #tpu.dot_dimension_numbers<[1], [0], [0], [1], [0, 0, 1, 1], [], []>} : vector<256x384xbf16>, vector<384x128xbf16>, vector<256x128xf32> -> vector<256x128xf32>
    %42 = arith.addf %33, %41 : vector<256x128xf32>
    %c0_58 = arith.constant 0 : index
    %c0_59 = arith.constant 0 : index
    %43 = vector.load %arg9[%c0_58, %c0_59] : memref<256x128xf32, #tpu.memory_space<vmem>>, vector<256x128xf32>
    %44 = arith.addf %43, %42 : vector<256x128xf32>
    %c0_60 = arith.constant 0 : index
    %c0_61 = arith.constant 0 : index
    %45 = vector.load %arg9[%c0_60, %c0_61] : memref<256x128xf32, #tpu.memory_space<vmem>>, vector<256x128xf32>
    tpu.vector_store %arg9[%c0_60, %c0_61], %44 {strides = array<i32>} : memref<256x128xf32, #tpu.memory_space<vmem>>, vector<256x128xf32>,
    %c0_i32_62 = arith.constant 0 : i32
    %46 = arith.cmpi eq, %arg1, %c0_i32_62 : i32
    %47 = arith.extui %46 : i1 to i32
    %c0_i32_63 = arith.constant 0 : i32
    %48 = arith.cmpi ne, %47, %c0_i32_63 : i32
    scf.if %48 {
      %c0_64 = arith.constant 0 : index
      %c0_65 = arith.constant 0 : index
      %49 = vector.load %arg9[%c0_64, %c0_65] : memref<256x128xf32, #tpu.memory_space<vmem>>, vector<256x128xf32>
      %c0_66 = arith.constant 0 : index
      %c0_67 = arith.constant 0 : index
      %50 = vector.load %arg6[%c0_66, %c0_67] : memref<1x128xf32, #tpu.memory_space<vmem>>, vector<1x128xf32>
      %51 = vector.broadcast %50 : vector<1x128xf32> to vector<256x128xf32>
      %52 = arith.mulf %49, %51 : vector<256x128xf32>
      %c0_68 = arith.constant 0 : index
      %c0_69 = arith.constant 0 : index
      %53 = vector.load %arg7[%c0_68, %c0_69] : memref<1x128xf32, #tpu.memory_space<vmem>>, vector<1x128xf32>
      %54 = vector.broadcast %53 : vector<1x128xf32> to vector<256x128xf32>
      %55 = arith.addf %52, %54 : vector<256x128xf32>
      %cst_70 = arith.constant 0.000000e+00 : f32
      %56 = vector.broadcast %cst_70 : f32 to vector<256x128xf32>
      %57 = arith.maximumf %55, %56 : vector<256x128xf32>
      %58 = arith.truncf %57 : vector<256x128xf32> to vector<256x128xbf16>
      %c0_71 = arith.constant 0 : index
      %c0_72 = arith.constant 0 : index
      %59 = vector.load %arg8[%c0_71, %c0_72] : memref<256x128xbf16, #tpu.memory_space<vmem>>, vector<256x128xbf16>
      tpu.vector_store %arg8[%c0_71, %c0_72], %58 {strides = array<i32>} : memref<256x128xbf16, #tpu.memory_space<vmem>>, vector<256x128xbf16>,
    } else {
    }
    return
  }
  func.func @transform_0(%arg0: i32, %arg1: i32) -> (i32, i32, i32, i32) {
    %c0_i32 = arith.constant 0 : i32
    %c0_i32_0 = arith.constant 0 : i32
    %c0_i32_1 = arith.constant 0 : i32
    return %arg0, %c0_i32, %c0_i32_0, %arg1 : i32, i32, i32, i32
  }
  func.func @transform_1(%arg0: i32, %arg1: i32) -> (i32, i32) {
    %c0_i32 = arith.constant 0 : i32
    %c0_i32_0 = arith.constant 0 : i32
    return %c0_i32, %arg1 : i32, i32
  }
  func.func @transform_2(%arg0: i32, %arg1: i32) -> (i32, i32) {
    %c0_i32 = arith.constant 0 : i32
    %c0_i32_0 = arith.constant 0 : i32
    return %c0_i32, %arg1 : i32, i32
  }
  func.func @transform_3(%arg0: i32, %arg1: i32) -> (i32, i32, i32) {
    %c0_i32 = arith.constant 0 : i32
    %c0_i32_0 = arith.constant 0 : i32
    %c0_i32_1 = arith.constant 0 : i32
    return %arg1, %c0_i32, %c0_i32_0 : i32, i32, i32
  }
  func.func @transform_4(%arg0: i32, %arg1: i32) -> (i32, i32) {
    %c0_i32 = arith.constant 0 : i32
    %c0_i32_0 = arith.constant 0 : i32
    %c0_i32_1 = arith.constant 0 : i32
    return %c0_i32, %c0_i32_0 : i32, i32
  }
  func.func @transform_5(%arg0: i32, %arg1: i32) -> (i32, i32) {
    %c0_i32 = arith.constant 0 : i32
    %c0_i32_0 = arith.constant 0 : i32
    %c0_i32_1 = arith.constant 0 : i32
    return %c0_i32, %c0_i32_0 : i32, i32
  }
  func.func @transform_6(%arg0: i32, %arg1: i32) -> (i32, i32) {
    %c0_i32 = arith.constant 0 : i32
    %c0_i32_0 = arith.constant 0 : i32
    return %arg0, %c0_i32 : i32, i32
  }
}

</mosaic_0001>

<bundles_post_ra>
// kernel: tpu_custom_call.1
= control target key start
LH: loop header
LB: loop body
LE: loop exit
PB: predicated region body
PF: predicated region fallthrough
CT: control target
= control target key end

     0   :  { %s8157_s0 = inlined_call_operand.hbm [shape: bf16[2,16,16,128], index: 0, kind: input, shape index: {}]   ;;  %s8158_s1 = inlined_call_operand.vmem [shape: f32[1,128], index: 1, kind: input, shape index: {}]   ;;  %s8159_s2 = inlined_call_operand.vmem [shape: f32[1,128], index: 2, kind: input, shape index: {}]   ;;  %s8160_s3 = inlined_call_operand.hbm [shape: bf16[3,384,128], index: 3, kind: input, shape index: {}]   ;;  %s8161_s4 = inlined_call_operand.vmem [shape: f32[1,128], index: 4, kind: input, shape index: {}]   ;;  %s8162_s5 = inlined_call_operand.vmem [shape: f32[1,128], index: 5, kind: input, shape index: {}]   ;;  %s8163_s6 = inlined_call_operand.hbm [shape: bf16[512,128], index: 6, kind: output, shape index: {}]  }
   0x1   :  { %8169 = sst [smem:[#allocation43_spill]] %s8160_s3 }
   0x2   :  { %11 = vsyncpa [#allocation5], 0 }
   0x3   :  { %13 = vsyncpa [#allocation5 + $0x1], 0 }
   0x4   :  { %14 = vsyncpa [#allocation8], 0 }
   0x5   :  { %15 = vsyncpa [#allocation6], 0 }
   0x6   :  { %17 = vsyncpa [#allocation6 + $0x1], 0  ;;  %s6488_s21 = smov 0   ;;  %s6490_s22 = smov 0  }
   0x7   :  { %s6492_s23 = smov 0   ;;  %s6494_s24 = smov 0  }
   0x8   :  { %s6496_s25 = smov 0   ;;  %s6498_s26 = smov 0  }
   0x9 LB: > { %8170 = sst [smem:[#allocation13_spill]] %s6439_s25  ;;  %s4893_s27 = sadd.s32 4294967295, %s6443_s26   ;;  %s6443_s26 = sphi %s6498_s26, %s23_s26   ;;  %s6439_s25 = sphi %s6496_s25, %s8262_s25   ;;  %s6435_s24 = sphi %s6494_s24, %s8261_s24   ;;  %s6431_s23 = sphi %s6492_s23, %s8265_s23   ;;  %s6427_s22 = sphi %s6490_s22, %s8264_s22   ;;  %s6423_s21 = sphi %s6488_s21, %s8263_s21  }
   0xa   : > { %s4894_s28 = sadd.s32 4294967294, %s6443_s26   ;;  %p57_p0 = scmp.ne.s32.totalorder %s6427_s22, %s6423_s21 }
   0xb   : > { %p6522_p1 = scmp.eq.s32.totalorder %s4893_s27, 0  ;;  %p6526_p2 = scmp.eq.s32.totalorder %s4893_s27, 1 }
   0xc   : > { %p207_p3 = scmp.eq.s32.totalorder %s4894_s28, 1  ;;  %p4895_p5 = scmp.ge.s32.totalorder %s6443_s26, 1 }
   0xd   : > { %p6532_p4 = por %p6522_p1, %p57_p0  ;;  %p214_p7 = scmp.lt.s32.totalorder %s6443_s26, 3 }
   0xe   : > { %p6537_p6 = por %p207_p3, %p57_p0  ;;  %s6445_s10 = smov [#allocation7]  }
   0xf   : > { %s8173_s7 = scalar_select %p6532_p4, 1, 0 }
  0x10   : > { %s8174_s8 = scalar_select %p6537_p6, 1, 0 }
  0x11   : > { %p6542_p8 = pnand %p4895_p5, %p214_p7  ;;  %s242_s11 = sshll.u32 %s6445_s10, 4  ;;  %s243_s11 = int_to_ptr.vmem [resolvable:$true] %s242_s11 }
  0x12   : > { %s35_s13 = sadd.s32 1, %s6439_s25  ;;  %s6316_s14 = scalar_lea.vmem %s243_s11, 9216 }
  0x13   : > { %p6012_p9 = pneg %p6542_p8  ;;  %p6317_p13 = scmp.ne.s32.totalorder %s243_s11, %s6316_s14 }
  0x14   : > { %p6324_p5 = scmp.lt.s32.totalorder %s243_s11, %s243_s11  ;;  %p6325_p7 = scmp.lt.s32.totalorder %s6316_s14, %s6316_s14 }
  0x15   : > { %p6551_p11 = pnand %p6012_p9, %p6522_p1 }
  0x16   : > { %p6326_p6 = por %p6325_p7, %p6324_p5 }
  0x17   : > { %p6307_p12 = pneg %p6551_p11 }
  0x19   : > { %p6319_p0 = pnand %p6317_p13, %p6307_p12 }
  0x1b   : > { %p6320_p3 = pneg %p6319_p0 }
  0x1d   : > { %p6327_p4 = pnand %p6326_p6, %p6320_p3 }
  0x1f   : > { %6330 = shalt.err (!%p6327_p4)
}
  0x20   : > { %s8165_s15 = smov 64   ;;  %s8166_s16 = smov 4  }
  0x21   : > { %s8177_s3 = sld [smem:[#allocation43_spill]]  ;;  %p37_p4 = scmp.ge.s32.totalorder %s35_s13, 2 }
  0x22   : > { %s44_s19 = sadd.s32 1, %s6431_s23  ;;  %p51_p6 = scmp.ne.s32.totalorder %s6431_s23, %s6427_s22 }
  0x23   : > { %p52_p9 = scmp.eq.s32.totalorder %s6443_s26, 0  ;;  %s8267_s13 = smov (%p37_p4, %s35_s13), 0 }
  0x24   : > { %8178 = sst [smem:[#allocation14_spill]] %s8267_s13  ;;  %p6578_p13 = por %p6526_p2, %p51_p6 }
  0x25   : > { %p6572_p12 = por %p52_p9, %p51_p6  ;;  %s39_s28 = ssub.s32 %s6439_s25, %s8267_s13 }
  0x26   : > { %p6025_p0 = scmp.lt.s32.totalorder %s6443_s26, 2  ;;  %s262_s10 = sand.u32 1, %s6431_s23  }
  0x27   : > { %6015 = dma.hbm_to_vmem [thread:$0]  (!%p6551_p11), %s8177_s3, 9216, %s243_s11, [#allocation8], %s8165_s15, %s8165_s15, %s8166_s16  }
  0x28   : > { %p42_p11 = scmp.eq.s32.totalorder %s39_s28, 0  ;;  %s4900_s11 = sshll.u32 %s262_s10, 7 }
  0x29   : > { %s5196_s14 = sshll.u32 %s6439_s25, 11  ;;  %s266_s16 = scalar_lea.vmem [#allocation4], %s4900_s11 }
  0x2a   : > { %s6587_s12 = scalar_select %p42_p11, %s6431_s23, %s44_s19  }
  0x2b   : > { %s273_s15 = scalar_lea.hbm %s8157_s0, %s5196_s14  ;;  %s274_s3 = sshll.u32 %s266_s16, 4  ;;  %s275_s3 = int_to_ptr.vmem [resolvable:$true] %s274_s3 }
  0x2c   : > { %p6595_p2 = pnand %p6025_p0, %p6572_p12  ;;  %s263_s13 = scalar_lea.sflag [#allocation5], %s262_s10 }
  0x2d   : > { %s6344_s28 = scalar_lea.vmem %s275_s3, 2048  ;;  %s6448_s19 = smov [#allocation4]  }
  0x2e   : > { %p6333_p3 = pneg %p6595_p2  ;;  %p6345_p5 = scmp.ne.s32.totalorder %s275_s3, %s6344_s28 }
  0x2f   : > { %s6349_s25 = sshll.u32 %s6448_s19, 4  ;;  %s6350_s25 = int_to_ptr.vmem [resolvable:$false] %s6349_s25 }
  0x30   : > { %p6347_p7 = pnand %p6345_p5, %p6333_p3  ;;  %s6351_s14 = scalar_lea.vmem %s6350_s25, 4096 }
  0x31   : > { %p6352_p6 = scmp.lt.s32.totalorder %s275_s3, %s6350_s25  ;;  %p6353_p9 = scmp.lt.s32.totalorder %s6351_s14, %s6344_s28 }
  0x32   : > { %p6348_p4 = pneg %p6347_p7 }
  0x33   : > { %p6354_p11 = por %p6353_p9, %p6352_p6 }
  0x35   : > { %p6355_p10 = pnand %p6354_p11, %p6348_p4 }
  0x37   : > { %6358 = shalt.err (!%p6355_p10)
}
  0x38   : > { %s8182_s16 = smov 4   ;;  %s8183_s20 = smov 64  }
  0x39   : > { %6019 = dma.hbm_to_vmem [thread:$0]  (!%p6595_p2), %s273_s15, 2048, %s275_s3, %s263_s13, %s8183_s20, %s8183_s20, %s8182_s16  }
  0x3a   : > { %286 = sbr.rel (%p6542_p8) target bundleno = 667 (0x29b), region = 44 }
  0x3f   : > { %s6609_s10 = sand.u32 1, %s6427_s22   ;;  %p8184_p10 = scmp.ne.s32.totalorder %s8173_s7, 0 }
  0x40   : > { %s4904_s25 = sshll.u32 %s6609_s10, 7  ;;  %s289_s11 = scalar_lea.sflag [#allocation5], %s6609_s10 }
  0x41   : > { %s6615_s17 = scalar_lea.vmem [#allocation4], %s4904_s25 }
  0x42   : > { %6410 = dma.done.wait (%p8184_p10), %s289_s11, 2048  }
  0x43   : > { %6412 = vsyncadd (%p8184_p10), %s289_s11, 4294965248 }
  0x44   : > { %6414 = dma.done.wait (%p6522_p1), [#allocation8], 9216  }
  0x45   : > { %6416 = vsyncadd (%p6522_p1), [#allocation8], 4294958080  ;;  %v6082_v0 = vld [vmem:[#allocation7 + $0x138] sm:$0xff]   ;;  %v6084_v2 = vld [vmem:[#allocation7 + $0x130] sm:$0xff]   ;;  %vm385_vm0 = vsmask.f32 256 }
  0x46   : > { %v6083_v1 = vld [vmem:[#allocation7 + $0xf8] sm:$0xff]   ;;  %5436 = vmatprep.subr.bf16.mxu0 %v6082_v0  ;;  %5988 = vmatprep.subr.bf16.mxu1 %v6082_v0  ;;  %v6085_v3 = vld [vmem:[#allocation7 + $0xf0] sm:$0xff]   ;;  %v6086_v4 = vld [vmem:[#allocation7 + $0x128] sm:$0xff]   ;;  %vm384_vm1 = vcmask 1040384   ;;  %vm435_vm3 = vsmask.f32 7938 }
  0x47   : > { %5437 = vmatpush3.bf16.msra.mxu0 %v6083_v1  ;;  %5996 = vmatpush3.bf16.msra.mxu1 %v6083_v1  ;;  %v6087_v5 = vld [vmem:[#allocation7 + $0xe8] sm:$0xff]   ;;  %v6088_v6 = vld [vmem:[#allocation7 + $0x120] sm:$0xff]   ;;  %vm6626_vm2 = vmand %vm384_vm1, %vm385_vm0  ;;  %vm756_vm5 = vsmask.f32 4368  ;;  %vm1079_vm6 = vcmask 1043456   ;;  %vm1661_vm10 = vcmask 1046528  }
  0x48   : > { %5438 = vmatprep.subr.bf16.mxu0 %v6084_v2  ;;  %5989 = vmatprep.subr.bf16.mxu1 %v6084_v2  ;;  %v6089_v8 = vld [vmem:[#allocation7 + $0xe0] sm:$0xff]   ;;  %v6090_v9 = vld [vmem:[#allocation7 + $0x118] sm:$0xff]   ;;  %vm6631_vm4 = vmand %vm384_vm1, %vm435_vm3  ;;  %vm1404_vm9 = vsmask.f32 7424  ;;  %s7930_s20 = scalar_lea.vmem [#allocation9], %s4904_s25  ;;  %s5261_s25 = sshll.u32 %s6435_s24, 11 }
  0x49   : > { %v6091_v11 = vld [vmem:[#allocation7 + $0xd8] sm:$0xff]   ;;  %v6092_v12 = vld [vmem:[#allocation7 + $0x110] sm:$0xff]   ;;  %v5263_v15 = vld [vmem:[%s6615_s17] sm:$0xff]   ;;  %s4774_s11 = sshll.u32 %s7930_s20, 4  ;;  %s8106_s29 = scalar_lea.hbm %s8163_s6, %s5261_s25  ;;  %s8108_s11 = int_to_ptr.vmem [resolvable:$true] %s4774_s11 }
  0x4a   : > { %v387_v13 = vld [vmem:[#allocation3 + $0xc] sm:$0x1]  ;;  %v437_v14 = vld [vmem:[#allocation3 + $0x14] sm:$0x1]  ;;  %v5264_v19 = vunpack.c.l.bf16 %v5263_v15  ;;  %v5265_v20 = vunpack.c.h.bf16 %v5263_v15  ;;  %v6643_v21 = vld [vmem:[%s8158_s1] ss:$0 sm:$0xff] }
  0x4b   : > { %5439 = vmatpush3.bf16.msra.mxu0 %v6085_v3  ;;  %5997 = vmatpush3.bf16.msra.mxu1 %v6085_v3  ;;  %v6093_v16 = vld [vmem:[#allocation7 + $0xd0] sm:$0xff]   ;;  %v388_v17 = vsel %vm6626_vm2, 0, %v387_v13  ;;  %v438_v18 = vsel %vm6631_vm4, 0, %v437_v14  ;;  %v6648_v22 = vld [vmem:[%s8159_s2] ss:$0 sm:$0xff]  ;;  %v5417_v25 = vld [vmem:[%s6615_s17 + $0x60] sm:$0xff]  }
  0x4c   : > { %5440 = vmatprep.subr.bf16.mxu0 %v6086_v4  ;;  %5990 = vmatprep.subr.bf16.mxu1 %v6086_v4  ;;  %389 = vst [vmem:[#allocation3 + $0xc] sm:$0x1] %v388_v17  ;;  %439 = vst [vmem:[#allocation3 + $0x14] sm:$0x1] %v438_v18  ;;  %v423_v23 = vld [vmem:[#allocation3 + $0x9c] sm:$0x1]  ;;  %v556_v26 = vmul.f32 %v5264_v19, %v6643_v21  ;;  %v557_v27 = vmul.f32 %v5265_v20, %v6643_v21  ;;  %v5312_v31 = vunpack.c.l.bf16 %v5417_v25 }
  0x4d   : > { %v473_v24 = vld [vmem:[#allocation3 + $0xa4] sm:$0x1]  ;;  %v424_v28 = vsel %vm6626_vm2, 0, %v423_v23  ;;  %v5313_v32 = vunpack.c.h.bf16 %v5417_v25  ;;  %v390_v38 = vld [vmem:[#allocation3 + $0x18] sm:$0x1]  ;;  %v6677_v2 = vld [vmem:[#allocation7 + $0xb8] sm:$0xff]  }
  0x4e   : > { %v474_v29 = vsel %vm6631_vm4, 0, %v473_v24  ;;  %v6094_v30 = vld [vmem:[#allocation7 + $0x108] sm:$0xff]   ;;  %425 = vst [vmem:[#allocation3 + $0x9c] sm:$0x1] %v424_v28  ;;  %v595_v33 = vadd.f32 %v6648_v22, %v556_v26  ;;  %v596_v34 = vadd.f32 %v6648_v22, %v557_v27  ;;  %v580_v36 = vmul.f32 %v5312_v31, %v6643_v21  ;;  %v6096_v40 = vld [vmem:[#allocation7 + $0x100] sm:$0xff]   ;;  %v6679_v3 = vld [vmem:[#allocation7 + $0x178] sm:$0xff]  }
  0x4f   : > { %5441 = vmatpush3.bf16.msra.mxu0 %v6087_v5  ;;  %5998 = vmatpush3.bf16.msra.mxu1 %v6087_v5  ;;  %475 = vst [vmem:[#allocation3 + $0xa4] sm:$0x1] %v474_v29  ;;  %v6095_v35 = vld [vmem:[#allocation7 + $0xc8] sm:$0xff]   ;;  %v581_v37 = vmul.f32 %v5313_v32, %v6643_v21  ;;  %v391_v43 = vsel %vm6626_vm2, 0, %v390_v38  ;;  %v426_v50 = vld [vmem:[#allocation3 + $0xa8] sm:$0x1]  ;;  %vm6685_vm7 = vmor %vm385_vm0, %vm756_vm5 }
  0x50   : > { %5442 = vmatprep.subr.bf16.mxu0 %v6088_v6  ;;  %5991 = vmatprep.subr.bf16.mxu1 %v6088_v6  ;;  %v440_v39 = vld [vmem:[#allocation3 + $0x20] sm:$0x1]  ;;  %v627_v41 = vmax.f32 %v595_v33, 0.0  ;;  %v628_v42 = vmax.f32 %v596_v34, 0.0  ;;  %v619_v46 = vadd.f32 %v6648_v22, %v580_v36  ;;  %392 = vst [vmem:[#allocation3 + $0x18] sm:$0x1] %v391_v43  ;;  %vm6693_vm8 = vmand %vm1079_vm6, %vm435_vm3 }
  0x51   : > { %v441_v44 = vsel %vm6631_vm4, 0, %v440_v39  ;;  %v5406_v45 = vld [vmem:[%s6615_s17 + $0x8] sm:$0xff]   ;;  %v620_v47 = vadd.f32 %v6648_v22, %v581_v37  ;;  %v476_v51 = vld [vmem:[#allocation3 + $0xb0] sm:$0x1]  ;;  %v427_v54 = vsel %vm6626_vm2, 0, %v426_v50  ;;  %v6097_v57 = vld [vmem:[#allocation7 + $0xc0] sm:$0xff]  }
  0x52   : > { %442 = vst [vmem:[#allocation3 + $0x20] sm:$0x1] %v441_v44  ;;  %v5268_v48 = vunpack.c.l.bf16 %v5406_v45  ;;  %v5269_v49 = vunpack.c.h.bf16 %v5406_v45  ;;  %v5197_v52 = vpack.c.bf16 %v627_v41, %v627_v41  ;;  %v5198_v53 = vpack.c.bf16 %v628_v42, %v628_v42  ;;  %v6673_v56 = vld [vmem:[%s6615_s17 + $0x68] sm:$0xff]   ;;  %428 = vst [vmem:[#allocation3 + $0xa8] sm:$0x1] %v427_v54  ;;  %v5407_v44 = vld [vmem:[%s6615_s17 + $0x10] sm:$0xff]  }
  0x53   : > { %5443 = vmatpush3.bf16.msra.mxu0 %v6089_v8  ;;  %5999 = vmatpush3.bf16.msra.mxu1 %v6089_v8  ;;  %v477_v55 = vsel %vm6631_vm4, 0, %v476_v51  ;;  %v651_v58 = vmax.f32 %v619_v46, 0.0  ;;  %v652_v59 = vmax.f32 %v620_v47, 0.0  ;;  %v1082_v4 = vld [vmem:[#allocation3 + $0xc] sm:$0xf]  ;;  %v5317_v15 = vunpack.c.h.bf16 %v6673_v56  ;;  %s4761_s7 = scalar_lea.sflag [#allocation6], %s6609_s10 }
  0x54   : > { %5444 = vmatprep.subr.bf16.mxu0 %v6090_v9  ;;  %5992 = vmatprep.subr.bf16.mxu1 %v6090_v9  ;;  %v558_v60 = vmul.f32 %v5268_v48, %v6643_v21  ;;  %v559_v61 = vmul.f32 %v5269_v49, %v6643_v21  ;;  %478 = vst [vmem:[#allocation3 + $0xb0] sm:$0x1] %v477_v55  ;;  %v759_v62 = vshrl.u32 %v5197_v52, 16  ;;  %v762_v63 = vshll.u32 %v5197_v52, 16  ;;  %v1088_v17 = vld [vmem:[#allocation3 + $0x14] sm:$0x1] }
  0x55   : > { %v767_v0 = vshrl.u32 %v5198_v53, 16  ;;  %v770_v1 = vshll.u32 %v5198_v53, 16  ;;  %v5221_v5 = vpack.c.bf16 %v651_v58, %v651_v58  ;;  %v5222_v6 = vpack.c.bf16 %v652_v59, %v652_v59  ;;  %v393_v38 = vld [vmem:[#allocation3 + $0x24] sm:$0x1]  ;;  %v443_v43 = vld [vmem:[#allocation3 + $0x2c] sm:$0x1] }
  0x56   : > { %v597_v8 = vadd.f32 %v6648_v22, %v558_v60  ;;  %v5316_v9 = vunpack.c.l.bf16 %v6673_v56  ;;  %v598_v14 = vadd.f32 %v6648_v22, %v559_v61  ;;  %v1172_v36 = vld [vmem:[#allocation3 + $0xa4] sm:$0x1]  ;;  %v583_v47 = vmul.f32 %v5317_v15, %v6643_v21  ;;  %v429_v49 = vld [vmem:[#allocation3 + $0xb4] sm:$0x1]  ;;  %v479_v58 = vld [vmem:[#allocation3 + $0xbc] sm:$0x1] }
  0x57   : > { %5445 = vmatpush3.bf16.msra.mxu0 %v6091_v11  ;;  %6000 = vmatpush3.bf16.msra.mxu1 %v6091_v11  ;;  %v769_v13 = vrot.slane %v767_v0, 7  ;;  %v963_v18 = vshrl.u32 %v5221_v5, 16  ;;  %v966_v19 = vshll.u32 %v5221_v5, 16  ;;  %v971_v20 = vshrl.u32 %v5222_v6, 16  ;;  %s6359_s9 = scalar_lea.vmem %s8108_s11, 2048  ;;  %s6450_s24 = smov [#allocation9]  }
  0x58   : > { %5446 = vmatprep.subr.bf16.mxu0 %v6092_v12  ;;  %5993 = vmatprep.subr.bf16.mxu1 %v6092_v12  ;;  %v761_v12 = vrot.slane %v759_v62, 7  ;;  %v974_v23 = vshll.u32 %v5222_v6, 16  ;;  %v630_v31 = vmax.f32 %v598_v14, 0.0  ;;  %v582_v37 = vmul.f32 %v5316_v9, %v6643_v21  ;;  %p6360_p1 = scmp.ne.s32.totalorder %s8108_s11, %s6359_s9  ;;  %s6363_s13 = sshll.u32 %s6450_s24, 4  ;;  %s6364_s13 = int_to_ptr.vmem [resolvable:$false] %s6363_s13 }
  0x59   : > { %v772_v26 = vor.u32 %v770_v1, %v769_v13  ;;  %v774_v27 = vrot.slane %v769_v13, 4  ;;  %v965_v28 = vrot.slane %v963_v18, 7  ;;  %v973_v29 = vrot.slane %v971_v20, 7  ;;  %s6365_s15 = scalar_lea.vmem %s6364_s13, 4096  ;;  %p6366_p0 = scmp.lt.s32.totalorder %s8108_s11, %s6364_s13 }
  0x5a   : > { %v764_v24 = vor.u32 %v762_v63, %v761_v12  ;;  %v765_v25 = vrot.slane %v761_v12, 4  ;;  %v5200_v46 = vpack.c.bf16 %v630_v31, %v630_v31  ;;  %v621_v48 = vadd.f32 %v6648_v22, %v582_v37  ;;  %v6721_v63 = vld [vmem:[%s6615_s17 + $0x70] sm:$0xff]   ;;  %p6361_p8 = pnand %p6360_p1, %p6578_p13  ;;  %p6367_p2 = scmp.lt.s32.totalorder %s6365_s15, %s6359_s9 }
  0x5b   : > { %5447 = vmatpush3.bf16.msra.mxu0 %v6093_v16  ;;  %6001 = vmatpush3.bf16.msra.mxu1 %v6093_v16  ;;  %v1089_v34 = vsel %vm6626_vm2, %v774_v27, %v1088_v17  ;;  %v968_v39 = vor.u32 %v966_v19, %v965_v28  ;;  %v976_v41 = vor.u32 %v974_v23, %v973_v29  ;;  %v978_v42 = vrot.slane %v973_v29, 4 }
  0x5c   : > { %5448 = vmatprep.subr.bf16.mxu0 %v6094_v30  ;;  %5994 = vmatprep.subr.bf16.mxu1 %v6094_v30  ;;  %v629_v30 = vmax.f32 %v597_v8, 0.0  ;;  %v773_v32 = vsel %vm6685_vm7, %v765_v25, %v772_v26  ;;  %v1083_v33 = vsel %vm6693_vm8, %v764_v24, %v1082_v4  ;;  %1090 = vst [vmem:[#allocation3 + $0x14] sm:$0x1] %v1089_v34  ;;  %v394_v53 = vsel %vm6626_vm2, 0, %v393_v38  ;;  %v1091_v4 = vld [vmem:[#allocation3 + $0x18] sm:$0xf]  ;;  %p6362_p12 = pneg %p6361_p8  ;;  %p6368_p3 = por %p6367_p2, %p6366_p0 }
  0x5d   : > { %1084 = vst [vmem:[#allocation3 + $0xc] sm:$0xf] %v1083_v33  ;;  %1085 = vst [vmem:[#allocation3 + $0x10] sm:$0xf] %v773_v32  ;;  %v1173_v52 = vsel %vm6626_vm2, %v978_v42, %v1172_v36  ;;  %v784_v56 = vshrl.u32 %v5200_v46, 16  ;;  %v622_v59 = vadd.f32 %v6648_v22, %v583_v47  ;;  %v653_v60 = vmax.f32 %v621_v48, 0.0 }
  0x5e   : > { %v5199_v45 = vpack.c.bf16 %v629_v30, %v629_v30  ;;  %1174 = vst [vmem:[#allocation3 + $0xa4] sm:$0x1] %v1173_v52  ;;  %395 = vst [vmem:[#allocation3 + $0x24] sm:$0x1] %v394_v53  ;;  %v444_v61 = vsel %vm6631_vm4, 0, %v443_v43  ;;  %v5272_v62 = vunpack.c.l.bf16 %v5407_v44  ;;  %v5273_v5 = vunpack.c.h.bf16 %v5407_v44  ;;  %p6369_p5 = pnand %p6368_p3, %p6362_p12 }
  0x5f   : > { %5449 = vmatpush3.bf16.msra.mxu0 %v6095_v35  ;;  %6002 = vmatpush3.bf16.msra.mxu1 %v6095_v35  ;;  %v1168_v35 = vld [vmem:[#allocation3 + $0x9c] sm:$0xf]  ;;  %v786_v1 = vrot.slane %v784_v56, 7  ;;  %445 = vst [vmem:[#allocation3 + $0x2c] sm:$0x1] %v444_v61  ;;  %v430_v6 = vsel %vm6626_vm2, 0, %v429_v49  ;;  %v5223_v12 = vpack.c.bf16 %v653_v60, %v653_v60  ;;  %v5320_v23 = vunpack.c.l.bf16 %v6721_v63 }
  0x60   : > { %5450 = vmatprep.subr.bf16.mxu0 %v6096_v40  ;;  %5995 = vmatprep.subr.bf16.mxu1 %v6096_v40  ;;  %v969_v40 = vrot.slane %v965_v28, 4  ;;  %v1169_v51 = vsel %vm6693_vm8, %v968_v39, %v1168_v35  ;;  %v776_v54 = vshrl.u32 %v5199_v45, 16  ;;  %v779_v55 = vshll.u32 %v5199_v45, 16  ;;  %v1095_v8 = vld [vmem:[#allocation3 + $0x20] sm:$0x1]  ;;  %v6110_v61 = vld [vmem:[#allocation7 + $0xb0] sm:$0xff]  }
  0x61   : > { %1170 = vst [vmem:[#allocation3 + $0x9c] sm:$0xf] %v1169_v51  ;;  %v654_v9 = vmax.f32 %v622_v59, 0.0  ;;  %v560_v13 = vmul.f32 %v5272_v62, %v6643_v21  ;;  %431 = vst [vmem:[#allocation3 + $0xb4] sm:$0x1] %v430_v6  ;;  %v480_v14 = vsel %vm6631_vm4, 0, %v479_v58  ;;  %v561_v20 = vmul.f32 %v5273_v5, %v6643_v21 }
  0x62   : > { %v977_v50 = vsel %vm6685_vm7, %v969_v40, %v976_v41  ;;  %v778_v0 = vrot.slane %v776_v54, 7  ;;  %481 = vst [vmem:[#allocation3 + $0xbc] sm:$0x1] %v480_v14  ;;  %v791_v27 = vrot.slane %v786_v1, 4  ;;  %v980_v30 = vshrl.u32 %v5223_v12, 16 }
  0x63   : > { %5451 = vmatpush3.bf16.msra.mxu0 %v6097_v57  ;;  %6003 = vmatpush3.bf16.msra.mxu1 %v6097_v57  ;;  %1171 = vst [vmem:[#allocation3 + $0xa0] sm:$0xf] %v977_v50  ;;  %v787_v57 = vshll.u32 %v5200_v46, 16  ;;  %v6733_v25 = vld [vmem:[#allocation3 + $0x14] ss:$0 sps:$4 sm:$0x11]   ;;  %v5224_v28 = vpack.c.bf16 %v654_v9, %v654_v9  ;;  %v599_v32 = vadd.f32 %v6648_v22, %v560_v13  ;;  %v5321_v14 = vunpack.c.h.bf16 %v6721_v63 }
  0x64   : > { %5892 = vmatprep.subr.bf16.mxu0 %v6677_v2  ;;  %5844 = vmatprep.subr.bf16.mxu1 %v6679_v3  ;;  %v1774_v15 = vld [vmem:[#allocation3 + $0xc] sm:$0xf]  ;;  %v6728_v17 = vld [vmem:[#allocation3 + $0x10] sm:$0xf]  ;;  %v781_v18 = vor.u32 %v779_v55, %v778_v0  ;;  %v782_v26 = vrot.slane %v778_v0, 4  ;;  %v983_v31 = vshll.u32 %v5223_v12, 16  ;;  %v1096_v40 = vsel %vm6626_vm2, %v791_v27, %v1095_v8 }
  0x65   : > { %v789_v19 = vor.u32 %v787_v57, %v786_v1  ;;  %v4989_v24 = vcombine.low %v1774_v15, %v6728_v17  ;;  %v1990_v35 = vshll.u32 %v6733_v25, 16  ;;  %v1175_v38 = vld [vmem:[#allocation3 + $0xa8] sm:$0xf]  ;;  %v982_v41 = vrot.slane %v980_v30, 7  ;;  %1097 = vst [vmem:[#allocation3 + $0x20] sm:$0x1] %v1096_v40 }
  0x66   : > { %v1092_v29 = vsel %vm6693_vm8, %v781_v18, %v1091_v4  ;;  %v988_v42 = vshrl.u32 %v5224_v28, 16  ;;  %v600_v43 = vadd.f32 %v6648_v22, %v561_v20  ;;  %v6101_v47 = vld [vmem:[#allocation3 + $0xa4] ss:$0 sps:$4 sm:$0x11]   ;;  %v991_v48 = vshll.u32 %v5224_v28, 16  ;;  %v6747_v0 = vld [vmem:[%s6615_s17 + $0x18] sm:$0xff]  }
  0x67   : > { %v1983_v33 = vshrl.u32 %v4989_v24, 16  ;;  %v1985_v34 = vshll.u32 %v4989_v24, 16  ;;  %v790_v37 = vsel %vm6685_vm7, %v782_v26, %v789_v19  ;;  %1093 = vst [vmem:[#allocation3 + $0x18] sm:$0xf] %v1092_v29  ;;  %v1992_v45 = vrot.slane %v1990_v35, 1 }
  0x68   : > { %v1798_v36 = vld [vmem:[#allocation3 + $0x9c] sm:$0xf]  ;;  %1094 = vst [vmem:[#allocation3 + $0x1c] sm:$0xf] %v790_v37  ;;  %v985_v49 = vor.u32 %v983_v31, %v982_v41  ;;  %v986_v50 = vrot.slane %v982_v41, 4  ;;  %v990_v51 = vrot.slane %v988_v42, 7  ;;  %v584_v26 = vmul.f32 %v5320_v23, %v6643_v21 }
  0x69   : > { %v1987_v44 = vrot.slane %v1985_v34, 1  ;;  %v631_v52 = vmax.f32 %v599_v32, 0.0  ;;  %v2134_v56 = vshll.u32 %v6101_v47, 16  ;;  %v1179_v57 = vld [vmem:[#allocation3 + $0xb0] sm:$0x1]  ;;  %v632_v62 = vmax.f32 %v600_v43, 0.0 }
  0x6a   : > { %v1799_v39 = vld [vmem:[#allocation3 + $0xa0] sm:$0xf]  ;;  %v993_v58 = vor.u32 %v991_v48, %v990_v51  ;;  %v995_v59 = vrot.slane %v990_v51, 4  ;;  %v1176_v60 = vsel %vm6693_vm8, %v985_v49, %v1175_v38  ;;  %v585_v63 = vmul.f32 %v5321_v14, %v6643_v21  ;;  %v396_v30 = vld [vmem:[#allocation3 + $0x30] sm:$0x1]  ;;  %v6104_v32 = vld [vmem:[#allocation7 + $0x170] sm:$0xff]  }
  0x6b   : > { %v5001_v46 = vcombine.low %v1798_v36, %v1799_v39  ;;  %v1988_v53 = vor.u32 %v1987_v44, %v1983_v33  ;;  %v2136_v5 = vrot.slane %v2134_v56, 1  ;;  %1177 = vst [vmem:[#allocation3 + $0xa8] sm:$0xf] %v1176_v60  ;;  %v5201_v6 = vpack.c.bf16 %v631_v52, %v631_v52  ;;  %v1098_v23 = vld [vmem:[#allocation3 + $0x24] sm:$0xf] }
  0x6c   : > { %v994_v9 = vsel %vm6685_vm7, %v986_v50, %v993_v58  ;;  %v1180_v12 = vsel %vm6626_vm2, %v995_v59, %v1179_v57  ;;  %v5202_v13 = vpack.c.bf16 %v632_v62, %v632_v62  ;;  %v6762_v28 = vld [vmem:[#allocation3 + $0x20] ss:$0 sps:$4 sm:$0x11]   ;;  %v446_v35 = vld [vmem:[#allocation3 + $0x38] sm:$0x1]  ;;  %v624_v44 = vadd.f32 %v6648_v22, %v585_v63 }
  0x6d   : > { %v2127_v54 = vshrl.u32 %v5001_v46, 16  ;;  %v2129_v55 = vshll.u32 %v5001_v46, 16  ;;  %v1993_v1 = vsel %vm1404_vm9, %v1988_v53, %v1992_v45  ;;  %1178 = vst [vmem:[#allocation3 + $0xac] sm:$0xf] %v994_v9  ;;  %1181 = vst [vmem:[#allocation3 + $0xb0] sm:$0x1] %v1180_v12  ;;  %v5277_v12 = vunpack.c.h.bf16 %v6747_v0 }
  0x6e   : > { %2527 = vmatprep.mubr.bf16.mxu0 %v1993_v1  ;;  %v1776_v8 = vld [vmem:[#allocation3 + $0x18] sm:$0xf]  ;;  %v793_v19 = vshrl.u32 %v5201_v6, 16  ;;  %v796_v20 = vshll.u32 %v5201_v6, 16  ;;  %v801_v29 = vshrl.u32 %v5202_v13, 16  ;;  %v804_v34 = vshll.u32 %v5202_v13, 16 }
  0x6f   : > { %v2131_v4 = vrot.slane %v2129_v55, 1  ;;  %2528 = vmatmul.mubr.bf16.vlgmr.msra.gmra.mxu0 %v4989_v24  ;;  %v6755_v18 = vld [vmem:[#allocation3 + $0x1c] sm:$0xf]  ;;  %v5276_v24 = vunpack.c.l.bf16 %v6747_v0  ;;  %v6122_v36 = vld [vmem:[#allocation7 + $0xa8] sm:$0xff]   ;;  %v2002_v39 = vshll.u32 %v6762_v28, 16  ;;  %v397_v56 = vsel %vm6626_vm2, 0, %v396_v30 }
  0x70   : > { %5893 = vmatpush3.bf16.msra.mxu0 %v6677_v2  ;;  %v6760_v27 = vcombine.low %v1776_v8, %v6755_v18  ;;  %v795_v33 = vrot.slane %v793_v19, 7  ;;  %v623_v2 = vadd.f32 %v6648_v22, %v584_v26  ;;  %v803_v40 = vrot.slane %v801_v29, 7  ;;  %v1102_v43 = vld [vmem:[#allocation3 + $0x2c] sm:$0x1]  ;;  %v432_v47 = vld [vmem:[#allocation3 + $0xc0] sm:$0x1] }
  0x71   : > { %v2132_v15 = vor.u32 %v2131_v4, %v2127_v54  ;;  %5894 = vmatprep.subr.bf16.mxu0 %v6110_v61  ;;  %v2004_v49 = vrot.slane %v2002_v39, 1  ;;  %v6109_v51 = vld [vmem:[#allocation7 + $0x168] sm:$0xff]   ;;  %v656_v54 = vmax.f32 %v624_v44, 0.0  ;;  %398 = vst [vmem:[#allocation3 + $0x30] sm:$0x1] %v397_v56  ;;  %v447_v60 = vsel %vm6631_vm4, 0, %v446_v35 }
  0x72   : > { %v1995_v37 = vshrl.u32 %v6760_v27, 16  ;;  %v1997_v38 = vshll.u32 %v6760_v27, 16  ;;  %v798_v41 = vor.u32 %v796_v20, %v795_v33  ;;  %v799_v42 = vrot.slane %v795_v33, 4  ;;  %v1800_v50 = vld [vmem:[#allocation3 + $0xa8] sm:$0xf]  ;;  %v6111_v4 = vld [vmem:[#allocation7 + $0x160] sm:$0xff]  }
  0x73   : > { %v2137_v31 = vsel %vm1404_vm9, %v2132_v15, %v2136_v5  ;;  %v655_v45 = vmax.f32 %v623_v2, 0.0  ;;  %v806_v52 = vor.u32 %v804_v34, %v803_v40  ;;  %v808_v53 = vrot.slane %v803_v40, 4  ;;  %448 = vst [vmem:[#allocation3 + $0x38] sm:$0x1] %v447_v60  ;;  %v5420_v15 = vld [vmem:[%s6615_s17 + $0x78] sm:$0xff]  }
  0x74   : > { %2623 = vmatprep.mubr.bf16.mxu1 %v2137_v31  ;;  %v1999_v48 = vrot.slane %v1997_v38, 1  ;;  %5895 = vmatpush3.bf16.msra.mxu0 %v6110_v61  ;;  %v1801_v58 = vld [vmem:[#allocation3 + $0xac] sm:$0xf]  ;;  %v6131_v61 = vld [vmem:[#allocation7 + $0xa0] sm:$0xff]   ;;  %v5226_v5 = vpack.c.bf16 %v656_v54, %v656_v54  ;;  %v562_v13 = vmul.f32 %v5276_v24, %v6643_v21  ;;  %v433_v14 = vsel %vm6626_vm2, 0, %v432_v47  ;;  %v6141_v38 = vld [vmem:[#allocation7 + $0x98] sm:$0xff]  }
  0x75   : > { %2624 = vmatmul.mubr.bf16.vlgmr.msra.gmra.mxu1 %v5001_v46  ;;  %v1099_v46 = vsel %vm6693_vm8, %v798_v41, %v1098_v23  ;;  %v5225_v55 = vpack.c.bf16 %v655_v45, %v655_v45  ;;  %5896 = vmatprep.subr.bf16.mxu0 %v6122_v36  ;;  %v1103_v59 = vsel %vm6626_vm2, %v808_v53, %v1102_v43  ;;  %v6108_v1 = vld [vmem:[#allocation3 + $0xb0] ss:$0 sps:$4 sm:$0x11]   ;;  %v482_v63 = vld [vmem:[#allocation3 + $0xc8] sm:$0x1]  ;;  %v5324_v44 = vunpack.c.l.bf16 %v5420_v15 }
  0x76   : > { %5845 = vmatpush3.bf16.msra.mxu1 %v6679_v3  ;;  %v2000_v57 = vor.u32 %v1999_v48, %v1995_v37  ;;  %v807_v3 = vsel %vm6685_vm7, %v799_v42, %v806_v52  ;;  %1100 = vst [vmem:[#allocation3 + $0x24] sm:$0xf] %v1099_v46  ;;  %v6783_v62 = vcombine.low %v1800_v50, %v1801_v58  ;;  %1104 = vst [vmem:[#allocation3 + $0x2c] sm:$0x1] %v1103_v59  ;;  %v1182_v24 = vld [vmem:[#allocation3 + $0xb4] sm:$0xf] }
  0x77   : > { %5846 = vmatprep.subr.bf16.mxu1 %v6104_v32  ;;  %1101 = vst [vmem:[#allocation3 + $0x28] sm:$0xf] %v807_v3  ;;  %v997_v6 = vshrl.u32 %v5225_v55, 16  ;;  %v1000_v8 = vshll.u32 %v5225_v55, 16  ;;  %v2146_v26 = vshll.u32 %v6108_v1, 16  ;;  %v1005_v0 = vshrl.u32 %v5226_v5, 16 }
  0x78   : > { %v2005_v9 = vsel %vm1404_vm9, %v2000_v57, %v2004_v49  ;;  %5897 = vmatpush3.bf16.msra.mxu0 %v6122_v36  ;;  %v2139_v19 = vshrl.u32 %v6783_v62, 16  ;;  %v2141_v20 = vshll.u32 %v6783_v62, 16  ;;  %434 = vst [vmem:[#allocation3 + $0xc0] sm:$0x1] %v433_v14  ;;  %v1008_v30 = vshll.u32 %v5226_v5, 16  ;;  %v6116_v43 = vld [vmem:[#allocation7 + $0x158] sm:$0xff]  }
  0x79   : > { %2535 = vmatprep.mubr.bf16.mxu0 %v2005_v9  ;;  %v999_v29 = vrot.slane %v997_v6, 7  ;;  %v563_v31 = vmul.f32 %v5277_v12, %v6643_v21  ;;  %5898 = vmatprep.subr.bf16.mxu0 %v6131_v61  ;;  %v2148_v34 = vrot.slane %v2146_v26, 1  ;;  %v1007_v35 = vrot.slane %v1005_v0, 7  ;;  %v1186_v42 = vld [vmem:[#allocation3 + $0xbc] sm:$0x1]  ;;  %v6117_v58 = vld [vmem:[#allocation7 + $0x150] sm:$0xff]  }
  0x7a   : > { %5847 = vmatpush3.bf16.msra.mxu1 %v6104_v32  ;;  %2536 = vmatmul.mubr.bf16.gmra.mxu0 %v6760_v27  ;;  %v601_v32 = vadd.f32 %v6648_v22, %v562_v13  ;;  %v2143_v33 = vrot.slane %v2141_v20, 1  ;;  %v483_v27 = vsel %vm6631_vm4, 0, %v482_v63  ;;  %v5325_v45 = vunpack.c.h.bf16 %v5420_v15  ;;  %v399_v60 = vld [vmem:[#allocation3 + $0x3c] sm:$0x1]  ;;  %v449_v6 = vld [vmem:[#allocation3 + $0x44] sm:$0x1] }
  0x7b   : > { %5848 = vmatprep.subr.bf16.mxu1 %v6109_v51  ;;  %v1002_v23 = vor.u32 %v1000_v8, %v999_v29  ;;  %v1003_v2 = vrot.slane %v999_v29, 4  ;;  %v602_v36 = vadd.f32 %v6648_v22, %v563_v31  ;;  %484 = vst [vmem:[#allocation3 + $0xc8] sm:$0x1] %v483_v27  ;;  %v1010_v48 = vor.u32 %v1008_v30, %v1007_v35  ;;  %v1105_v13 = vld [vmem:[#allocation3 + $0x30] sm:$0xf]  ;;  %v5409_v15 = vld [vmem:[%s6615_s17 + $0x20] sm:$0xff]  }
  0x7c   : > { %v633_v37 = vmax.f32 %v601_v32, 0.0  ;;  %5899 = vmatpush3.bf16.msra.mxu0 %v6131_v61  ;;  %v2144_v39 = vor.u32 %v2143_v33, %v2139_v19  ;;  %v1012_v49 = vrot.slane %v1007_v35, 4  ;;  %v586_v54 = vmul.f32 %v5324_v44, %v6643_v21  ;;  %v1109_v30 = vld [vmem:[#allocation3 + $0x38] sm:$0x1]  ;;  %v6123_v31 = vld [vmem:[#allocation7 + $0x148] sm:$0xff]  }
  0x7d   : > { %v1778_v40 = vld [vmem:[#allocation3 + $0x24] sm:$0xf]  ;;  %v1183_v41 = vsel %vm6693_vm8, %v1002_v23, %v1182_v24  ;;  %v634_v50 = vmax.f32 %v602_v36, 0.0  ;;  %5900 = vmatprep.subr.bf16.mxu0 %v6141_v38  ;;  %v6807_v46 = vld [vmem:[#allocation3 + $0x2c] ss:$0 sps:$4 sm:$0x11]   ;;  %v587_v55 = vmul.f32 %v5325_v45, %v6643_v21  ;;  %v1011_v56 = vsel %vm6685_vm7, %v1003_v2, %v1010_v48 }
  0x7e   : > { %5849 = vmatpush3.bf16.msra.mxu1 %v6109_v51  ;;  %v6801_v47 = vld [vmem:[#allocation3 + $0x28] sm:$0xf]  ;;  %1184 = vst [vmem:[#allocation3 + $0xb4] sm:$0xf] %v1183_v41  ;;  %v5203_v51 = vpack.c.bf16 %v633_v37, %v633_v37  ;;  %v2149_v52 = vsel %vm1404_vm9, %v2144_v39, %v2148_v34  ;;  %v1187_v57 = vsel %vm6626_vm2, %v1012_v49, %v1186_v42  ;;  %v2014_v5 = vshll.u32 %v6807_v46, 16 }
  0x7f   : > { %5850 = vmatprep.subr.bf16.mxu1 %v6111_v4  ;;  %v6805_v53 = vcombine.low %v1778_v40, %v6801_v47  ;;  %2631 = vmatprep.mubr.bf16.mxu1 %v2149_v52  ;;  %v5204_v3 = vpack.c.bf16 %v634_v50, %v634_v50  ;;  %1185 = vst [vmem:[#allocation3 + $0xb8] sm:$0xf] %v1011_v56  ;;  %1188 = vst [vmem:[#allocation3 + $0xbc] sm:$0x1] %v1187_v57  ;;  %v400_v26 = vsel %vm6626_vm2, 0, %v399_v60  ;;  %v6124_v56 = vld [vmem:[#allocation7 + $0x140] sm:$0xff]  }
  0x80   : > { %v810_v59 = vshrl.u32 %v5203_v51, 16  ;;  %2632 = vmatmul.mubr.bf16.gmra.mxu1 %v6783_v62  ;;  %v625_v14 = vadd.f32 %v6648_v22, %v586_v54  ;;  %5901 = vmatpush3.bf16.msra.mxu0 %v6141_v38  ;;  %v2016_v19 = vrot.slane %v2014_v5, 1  ;;  %v626_v20 = vadd.f32 %v6648_v22, %v587_v55  ;;  %401 = vst [vmem:[#allocation3 + $0x3c] sm:$0x1] %v400_v26  ;;  %v6151_v38 = vld [vmem:[#allocation7 + $0x90] sm:$0xff]  }
  0x81   : > { %v2007_v61 = vshrl.u32 %v6805_v53, 16  ;;  %v2009_v1 = vshll.u32 %v6805_v53, 16  ;;  %v818_v9 = vshrl.u32 %v5204_v3, 16  ;;  %v821_v12 = vshll.u32 %v5204_v3, 16  ;;  %v1189_v3 = vld [vmem:[#allocation3 + $0xc0] sm:$0xf]  ;;  %5902 = vmatprep.subr.bf16.mxu0 %v6151_v38 }
  0x82   : > { %5851 = vmatpush3.bf16.msra.mxu1 %v6111_v4  ;;  %v813_v4 = vshll.u32 %v5203_v51, 16  ;;  %v812_v8 = vrot.slane %v810_v59, 7  ;;  %v657_v24 = vmax.f32 %v625_v14, 0.0  ;;  %v658_v34 = vmax.f32 %v626_v20, 0.0 }
  0x83   : > { %5852 = vmatprep.subr.bf16.mxu1 %v6116_v43  ;;  %v2011_v62 = vrot.slane %v2009_v1, 1  ;;  %v820_v0 = vrot.slane %v818_v9, 7  ;;  %v450_v23 = vsel %vm6631_vm4, 0, %v449_v6  ;;  %v5280_v2 = vunpack.c.l.bf16 %v5409_v15  ;;  %v1823_v1 = vld [vmem:[#allocation3 + $0x18] sm:$0xe] }
  0x84   : > { %v815_v29 = vor.u32 %v813_v4, %v812_v8  ;;  %v816_v63 = vrot.slane %v812_v8, 4  ;;  %v5227_v27 = vpack.c.bf16 %v657_v24, %v657_v24  ;;  %451 = vst [vmem:[#allocation3 + $0x44] sm:$0x1] %v450_v23  ;;  %v5228_v40 = vpack.c.bf16 %v658_v34, %v658_v34  ;;  %v1193_v8 = vld [vmem:[#allocation3 + $0xc8] sm:$0x1]  ;;  %5903 = vmatpush3.bf16.msra.mxu0 %v6151_v38 }
  0x85   : > { %v2012_v32 = vor.u32 %v2011_v62, %v2007_v61  ;;  %v1802_v33 = vld [vmem:[#allocation3 + $0xb4] sm:$0xf]  ;;  %v823_v35 = vor.u32 %v821_v12, %v820_v0  ;;  %v825_v36 = vrot.slane %v820_v0, 4  ;;  %v5281_v41 = vunpack.c.h.bf16 %v5409_v15  ;;  %v402_v0 = vld [vmem:[#allocation3 + $0x48] sm:$0x1] }
  0x86   : > { %5853 = vmatpush3.bf16.msra.mxu1 %v6116_v43  ;;  %v1106_v37 = vsel %vm6693_vm8, %v815_v29, %v1105_v13  ;;  %v564_v42 = vmul.f32 %v5280_v2, %v6643_v21  ;;  %v1822_v43 = vld [vmem:[#allocation3 + $0xc] sm:$0xe]  ;;  %v1803_v44 = vld [vmem:[#allocation3 + $0xb8] sm:$0xf]  ;;  %v1014_v49 = vshrl.u32 %v5227_v27, 16  ;;  %v1017_v50 = vshll.u32 %v5227_v27, 16 }
  0x87   : > { %5854 = vmatprep.subr.bf16.mxu1 %v6117_v58  ;;  %v2017_v39 = vsel %vm1404_vm9, %v2012_v32, %v2016_v19  ;;  %1107 = vst [vmem:[#allocation3 + $0x30] sm:$0xf] %v1106_v37  ;;  %v824_v45 = vsel %vm6685_vm7, %v816_v63, %v823_v35  ;;  %v1110_v48 = vsel %vm6626_vm2, %v825_v36, %v1109_v30  ;;  %v6115_v52 = vld [vmem:[#allocation3 + $0xbc] ss:$0 sps:$4 sm:$0x11]   ;;  %v1022_v54 = vshrl.u32 %v5228_v40, 16 }
  0x88   : > { %2543 = vmatprep.mubr.bf16.mxu0 %v2017_v39  ;;  %v6834_v51 = vcombine.low %v1802_v33, %v1803_v44  ;;  %1108 = vst [vmem:[#allocation3 + $0x34] sm:$0xf] %v824_v45  ;;  %1111 = vst [vmem:[#allocation3 + $0x38] sm:$0x1] %v1110_v48  ;;  %v1025_v55 = vshll.u32 %v5228_v40, 16  ;;  %v565_v57 = vmul.f32 %v5281_v41, %v6643_v21  ;;  %v2239_v61 = vrot.slane %v6733_v25, 1 }
  0x89   : > { %2544 = vmatmul.mubr.bf16.gmra.mxu0 %v6805_v53  ;;  %v603_v59 = vadd.f32 %v6648_v22, %v564_v42  ;;  %v5021_v60 = vcombine.low %v1822_v43, %v6728_v17  ;;  %v2158_v4 = vshll.u32 %v6115_v52, 16  ;;  %v1024_v6 = vrot.slane %v1022_v54, 7  ;;  %v6129_v62 = vld [vmem:[#allocation7 + $0x78] sm:$0xff]   ;;  %v5410_v39 = vld [vmem:[%s6615_s17 + $0x28] sm:$0xff]  }
  0x8a   : > { %5855 = vmatpush3.bf16.msra.mxu1 %v6117_v58  ;;  %v1016_v58 = vrot.slane %v1014_v49, 7  ;;  %v2151_v53 = vshrl.u32 %v6834_v51, 16  ;;  %v2153_v5 = vshll.u32 %v6834_v51, 16  ;;  %v604_v12 = vadd.f32 %v6648_v22, %v565_v57  ;;  %v452_v32 = vld [vmem:[#allocation3 + $0x50] sm:$0x1] }
  0x8b   : > { %5856 = vmatprep.subr.bf16.mxu1 %v6123_v31  ;;  %v635_v13 = vmax.f32 %v603_v59, 0.0  ;;  %v2160_v17 = vrot.slane %v2158_v4, 1  ;;  %v1027_v15 = vor.u32 %v1025_v55, %v1024_v6  ;;  %v1029_v25 = vrot.slane %v1024_v6, 4  ;;  %v1824_v44 = vld [vmem:[#allocation3 + $0x24] sm:$0xe] }
  0x8c   : > { %v1019_v9 = vor.u32 %v1017_v50, %v1016_v58  ;;  %v1020_v21 = vrot.slane %v1016_v58, 4  ;;  %v2155_v14 = vrot.slane %v2153_v5, 1  ;;  %v636_v26 = vmax.f32 %v604_v12, 0.0  ;;  %v1112_v50 = vld [vmem:[#allocation3 + $0x3c] sm:$0xf]  ;;  %v6163_v6 = vld [vmem:[#allocation7 + $0x88] sm:$0xff]  }
  0x8d   : > { %v5205_v29 = vpack.c.bf16 %v635_v13, %v635_v13  ;;  %v2238_v63 = vrot.slane %v5021_v60, 1  ;;  %v1194_v22 = vsel %vm6626_vm2, %v1029_v25, %v1193_v8  ;;  %v2242_v38 = vrot.slane %v6762_v28, 1  ;;  %5904 = vmatprep.subr.bf16.mxu0 %v6163_v6  ;;  %v1836_v7 = vld [vmem:[#allocation3 + $0xb4] sm:$0xe] }
  0x8e   : > { %5857 = vmatpush3.bf16.msra.mxu1 %v6123_v31  ;;  %v1780_v19 = vld [vmem:[#allocation3 + $0x30] sm:$0xf]  ;;  %v1190_v20 = vsel %vm6693_vm8, %v1019_v9, %v1189_v3  ;;  %v2156_v30 = vor.u32 %v2155_v14, %v2151_v53  ;;  %v1028_v24 = vsel %vm6685_vm7, %v1020_v21, %v1027_v15  ;;  %v5022_v31 = vcombine.low %v1823_v1, %v6755_v18  ;;  %v6883_v21 = vld [vmem:[%s8158_s1] ss:$0 sm:$0xff] }
  0x8f   : > { %5858 = vmatprep.subr.bf16.mxu1 %v6124_v56  ;;  %1191 = vst [vmem:[#allocation3 + $0xc0] sm:$0xf] %v1190_v20  ;;  %v6851_v33 = vld [vmem:[#allocation3 + $0x34] sm:$0xf]  ;;  %1192 = vst [vmem:[#allocation3 + $0xc4] sm:$0xf] %v1028_v24  ;;  %v5206_v34 = vpack.c.bf16 %v636_v26, %v636_v26  ;;  %v6854_v35 = vsel %vm1661_vm10, %v2238_v63, %v2239_v61  ;;  %v5284_v3 = vunpack.c.l.bf16 %v5410_v39  ;;  %v5285_v59 = vunpack.c.h.bf16 %v5410_v39 }
  0x90   : > { %1195 = vst [vmem:[#allocation3 + $0xc8] sm:$0x1] %v1194_v22  ;;  %v827_v23 = vshrl.u32 %v5205_v29, 16  ;;  %v830_v2 = vshll.u32 %v5205_v29, 16  ;;  %v2161_v36 = vsel %vm1404_vm9, %v2156_v30, %v2160_v17  ;;  %v6858_v37 = vcombine.low %v1780_v19, %v6851_v33  ;;  %v1825_v60 = vld [vmem:[#allocation3 + $0x30] sm:$0xe]  ;;  %5905 = vmatpush3.bf16.msra.mxu0 %v6163_v6 }
  0x91   : > { %v6860_v27 = vld [vmem:[#allocation3 + $0x38] ss:$0 sps:$4 sm:$0x11]   ;;  %v2241_v18 = vrot.slane %v5022_v31, 1  ;;  %2639 = vmatprep.mubr.bf16.mxu1 %v2161_v36  ;;  %v835_v41 = vshrl.u32 %v5206_v34, 16  ;;  %v838_v42 = vshll.u32 %v5206_v34, 16  ;;  %v5023_v4 = vcombine.low %v1824_v44, %v6801_v47 }
  0x92   : > { %5859 = vmatpush3.bf16.msra.mxu1 %v6124_v56  ;;  %v829_v40 = vrot.slane %v827_v23, 7  ;;  %v403_v43 = vsel %vm6626_vm2, 0, %v402_v0  ;;  %v2019_v45 = vshrl.u32 %v6858_v37, 16  ;;  %v2021_v48 = vshll.u32 %v6858_v37, 16  ;;  %v1116_v56 = vld [vmem:[#allocation3 + $0x44] sm:$0x1] }
  0x93   : > { %5572 = vmatprep.subr.bf16.mxu1 %v6129_v62  ;;  %2640 = vmatmul.mubr.bf16.gmra.mxu1 %v6834_v51  ;;  %v2026_v49 = vshll.u32 %v6860_v27, 16  ;;  %v6871_v28 = vsel %vm1661_vm10, %v2241_v18, %v2242_v38  ;;  %404 = vst [vmem:[#allocation3 + $0x48] sm:$0x1] %v403_v43  ;;  %v837_v55 = vrot.slane %v835_v41, 7  ;;  %v453_v57 = vsel %vm6631_vm4, 0, %v452_v32  ;;  %v5411_v34 = vld [vmem:[%s6615_s17 + $0x30] sm:$0xff]  }
  0x94   : > { %v832_v52 = vor.u32 %v830_v2, %v829_v40  ;;  %v833_v54 = vrot.slane %v829_v40, 4  ;;  %v2023_v58 = vrot.slane %v2021_v48, 1  ;;  %454 = vst [vmem:[#allocation3 + $0x50] sm:$0x1] %v453_v57  ;;  %v566_v12 = vmul.f32 %v6883_v21, %v5284_v3  ;;  %v405_v17 = vld [vmem:[#allocation3 + $0x54] sm:$0x1] }
  0x95   : > { %v2028_v51 = vrot.slane %v2026_v49, 1  ;;  %v840_v1 = vor.u32 %v838_v42, %v837_v55  ;;  %v842_v53 = vrot.slane %v837_v55, 4  ;;  %v567_v13 = vmul.f32 %v6883_v21, %v5285_v59  ;;  %v455_v0 = vld [vmem:[#allocation3 + $0x5c] sm:$0x1]  ;;  %v408_v30 = vld [vmem:[#allocation3 + $0x60] sm:$0x1] }
  0x96   : > { %v1804_v61 = vld [vmem:[#allocation3 + $0xc0] sm:$0xf]  ;;  %v1113_v5 = vsel %vm6693_vm8, %v832_v52, %v1112_v50  ;;  %v2024_v8 = vor.u32 %v2023_v58, %v2019_v45  ;;  %v6878_v9 = vld [vmem:[#allocation3 + $0xc4] sm:$0xf]  ;;  %v2245_v14 = vrot.slane %v6807_v46, 1  ;;  %v2244_v19 = vrot.slane %v5023_v4, 1 }
  0x97   : > { %1114 = vst [vmem:[#allocation3 + $0x3c] sm:$0xf] %v1113_v5  ;;  %v5004_v15 = vcombine.low %v1804_v61, %v6878_v9  ;;  %v6889_v47 = vld [vmem:[#allocation3 + $0xc8] ss:$0 sps:$4 sm:$0x11]   ;;  %v841_v25 = vsel %vm6685_vm7, %v833_v54, %v840_v1  ;;  %v1117_v62 = vsel %vm6626_vm2, %v842_v53, %v1116_v56  ;;  %v5024_v63 = vcombine.low %v1825_v60, %v6851_v33  ;;  %v5412_v45 = vld [vmem:[%s6615_s17 + $0x38] sm:$0xff]  }
  0x98   : > { %v2029_v20 = vsel %vm1404_vm9, %v2024_v8, %v2028_v51  ;;  %1115 = vst [vmem:[#allocation3 + $0x40] sm:$0xf] %v841_v25  ;;  %1118 = vst [vmem:[#allocation3 + $0x44] sm:$0x1] %v1117_v62  ;;  %v6899_v46 = vld [vmem:[%s8159_s2] ss:$0 sm:$0xff]  ;;  %v6906_v32 = vsel %vm1661_vm10, %v2244_v19, %v2245_v14  ;;  %v5292_v61 = vunpack.c.l.bf16 %v5412_v45  ;;  %v5293_v14 = vunpack.c.h.bf16 %v5412_v45 }
  0x99   : > { %v605_v26 = vadd.f32 %v6899_v46, %v566_v12  ;;  %v606_v29 = vadd.f32 %v6899_v46, %v567_v13  ;;  %2551 = vmatprep.mubr.bf16.mxu0 %v2029_v20  ;;  %v2163_v24 = vshrl.u32 %v5004_v15, 16  ;;  %v2165_v22 = vshll.u32 %v5004_v15, 16  ;;  %v458_v23 = vld [vmem:[#allocation3 + $0x68] sm:$0x1]  ;;  %v5413_v45 = vld [vmem:[%s6615_s17 + $0x40] sm:$0xff]  }
  0x9a   : > { %v2170_v31 = vshll.u32 %v6889_v47, 16  ;;  %2552 = vmatmul.mubr.bf16.gmra.mxu0 %v6858_v37  ;;  %v2247_v18 = vrot.slane %v5024_v63, 1  ;;  %v2248_v33 = vrot.slane %v6860_v27, 1  ;;  %v406_v40 = vsel %vm6626_vm2, 0, %v405_v17  ;;  %v1119_v8 = vld [vmem:[#allocation3 + $0x48] sm:$0xf] }
  0x9b   : > { %v637_v2 = vmax.f32 %v605_v26, 0.0  ;;  %v638_v36 = vmax.f32 %v606_v29, 0.0  ;;  %v2167_v38 = vrot.slane %v2165_v22, 1  ;;  %v456_v41 = vsel %vm6631_vm4, 0, %v455_v0  ;;  %407 = vst [vmem:[#allocation3 + $0x54] sm:$0x1] %v406_v40 }
  0x9c   : > { %v2172_v39 = vrot.slane %v2170_v31, 1  ;;  %v6916_v44 = vsel %vm1661_vm10, %v2247_v18, %v2248_v33  ;;  %457 = vst [vmem:[#allocation3 + $0x5c] sm:$0x1] %v456_v41  ;;  %v5288_v37 = vunpack.c.l.bf16 %v5411_v34  ;;  %v5289_v27 = vunpack.c.h.bf16 %v5411_v34  ;;  %v1123_v26 = vld [vmem:[#allocation3 + $0x50] sm:$0x1]  ;;  %v6136_v18 = vld [vmem:[#allocation7 + $0x70] sm:$0xff]  }
  0x9d   : > { %v5207_v42 = vpack.c.bf16 %v637_v2, %v637_v2  ;;  %v5208_v43 = vpack.c.bf16 %v638_v36, %v638_v36  ;;  %v2168_v48 = vor.u32 %v2167_v38, %v2163_v24  ;;  %v409_v52 = vsel %vm6626_vm2, 0, %v408_v30  ;;  %v6130_v22 = vld [vmem:[#allocation7 + $0x38] sm:$0xff]   ;;  %v6172_v2 = vld [vmem:[#allocation7 + $0x80] sm:$0xff]  }
  0x9e   : > { %v1782_v49 = vld [vmem:[#allocation3 + $0x3c] sm:$0xf]  ;;  %v459_v54 = vsel %vm6631_vm4, 0, %v458_v23  ;;  %410 = vst [vmem:[#allocation3 + $0x60] sm:$0x1] %v409_v52  ;;  %v568_v59 = vmul.f32 %v6883_v21, %v5288_v37  ;;  %v569_v60 = vmul.f32 %v6883_v21, %v5289_v27  ;;  %v570_v17 = vmul.f32 %v6883_v21, %v5292_v61  ;;  %5906 = vmatprep.subr.bf16.mxu0 %v6172_v2  ;;  %v6180_v52 = vld [vmem:[#allocation7 + $0x1f8] sm:$0xff]  }
  0x9f   : > { %v1826_v50 = vld [vmem:[#allocation3 + $0x3c] sm:$0xe]  ;;  %v844_v55 = vshrl.u32 %v5207_v42, 16  ;;  %v847_v56 = vshll.u32 %v5207_v42, 16  ;;  %v852_v57 = vshrl.u32 %v5208_v43, 16  ;;  %v855_v58 = vshll.u32 %v5208_v43, 16  ;;  %5907 = vmatpush3.bf16.msra.mxu0 %v6172_v2 }
  0xa0   : > { %460 = vst [vmem:[#allocation3 + $0x68] sm:$0x1] %v459_v54  ;;  %v2173_v51 = vsel %vm1404_vm9, %v2168_v48, %v2172_v39  ;;  %v1783_v3 = vld [vmem:[#allocation3 + $0x40] sm:$0xf]  ;;  %v607_v12 = vadd.f32 %v6899_v46, %v568_v59  ;;  %v608_v13 = vadd.f32 %v6899_v46, %v569_v60  ;;  %v411_v23 = vld [vmem:[#allocation3 + $0x6c] sm:$0x1]  ;;  %v571_v37 = vmul.f32 %v6883_v21, %v5293_v14 }
  0xa1   : > { %2647 = vmatprep.mubr.bf16.mxu1 %v2173_v51  ;;  %v6926_v1 = vcombine.low %v1782_v49, %v1783_v3  ;;  %v6126_v53 = vld [vmem:[#allocation3 + $0x44] ss:$0 sps:$4 sm:$0x11]   ;;  %v846_v5 = vrot.slane %v844_v55, 7  ;;  %v854_v4 = vrot.slane %v852_v57, 7  ;;  %v5025_v6 = vcombine.low %v1826_v50, %v1783_v3  ;;  %v6137_v55 = vld [vmem:[#allocation7 + $0x30] sm:$0xff]   ;;  %5708 = vmatprep.subr.bf16.mxu0 %v6180_v52 }
  0xa2   : > { %2648 = vmatmul.mubr.bf16.gmra.mxu1 %v5004_v15  ;;  %v2038_v19 = vshll.u32 %v6126_v53, 16  ;;  %v639_v0 = vmax.f32 %v607_v12, 0.0  ;;  %v640_v34 = vmax.f32 %v608_v13, 0.0  ;;  %v461_v39 = vld [vmem:[#allocation3 + $0x74] sm:$0x1]  ;;  %v2251_v43 = vrot.slane %v6126_v53, 1 }
  0xa3   : > { %v2031_v25 = vshrl.u32 %v6926_v1, 16  ;;  %v2033_v62 = vshll.u32 %v6926_v1, 16  ;;  %5860 = vmatprep.mubr.bf16.mxu1 %v6854_v35  ;;  %v849_v20 = vor.u32 %v847_v56, %v846_v5  ;;  %v850_v29 = vrot.slane %v846_v5, 4  ;;  %v414_v40 = vld [vmem:[#allocation3 + $0x78] sm:$0x1]  ;;  %v6143_v3 = vld [vmem:[#allocation7 + $0x68] sm:$0xff]  }
  0xa4   : > { %v857_v63 = vor.u32 %v855_v58, %v854_v4  ;;  %v859_v15 = vrot.slane %v854_v4, 4  ;;  %v2040_v24 = vrot.slane %v2038_v19, 1  ;;  %v5209_v33 = vpack.c.bf16 %v639_v0, %v639_v0  ;;  %v1126_v5 = vld [vmem:[#allocation3 + $0x54] sm:$0xf]  ;;  %v1130_v4 = vld [vmem:[#allocation3 + $0x5c] sm:$0x1] }
  0xa5   : > { %v2035_v30 = vrot.slane %v2033_v62, 1  ;;  %v1120_v31 = vsel %vm6693_vm8, %v849_v20, %v1119_v8  ;;  %v2250_v38 = vrot.slane %v5025_v6, 1  ;;  %v5210_v42 = vpack.c.bf16 %v640_v34, %v640_v34 }
  0xa6   : > { %v858_v36 = vsel %vm6685_vm7, %v850_v29, %v857_v63  ;;  %1121 = vst [vmem:[#allocation3 + $0x48] sm:$0xf] %v1120_v31  ;;  %v1124_v35 = vsel %vm6626_vm2, %v859_v15, %v1123_v26  ;;  %v861_v48 = vshrl.u32 %v5209_v33, 16  ;;  %v864_v49 = vshll.u32 %v5209_v33, 16  ;;  %v6149_v33 = vld [vmem:[#allocation7 + $0x60] sm:$0xff]  }
  0xa7   : > { %v2036_v41 = vor.u32 %v2035_v30, %v2031_v25  ;;  %1122 = vst [vmem:[#allocation3 + $0x4c] sm:$0xf] %v858_v36  ;;  %1125 = vst [vmem:[#allocation3 + $0x50] sm:$0x1] %v1124_v35  ;;  %v609_v27 = vadd.f32 %v6899_v46, %v570_v17  ;;  %v412_v50 = vsel %vm6626_vm2, 0, %v411_v23  ;;  %v869_v56 = vshrl.u32 %v5210_v42, 16 }
  0xa8   : > { %v872_v57 = vshll.u32 %v5210_v42, 16  ;;  %v6947_v58 = vsel %vm1661_vm10, %v2250_v38, %v2251_v43  ;;  %413 = vst [vmem:[#allocation3 + $0x6c] sm:$0x1] %v412_v50  ;;  %v863_v51 = vrot.slane %v861_v48, 7  ;;  %v610_v59 = vadd.f32 %v6899_v46, %v571_v37  ;;  %v6144_v23 = vld [vmem:[#allocation7 + $0x28] sm:$0xff]  }
  0xa9   : > { %v2041_v54 = vsel %vm1404_vm9, %v2036_v41, %v2040_v24  ;;  %v641_v60 = vmax.f32 %v609_v27, 0.0  ;;  %v462_v61 = vsel %vm6631_vm4, 0, %v461_v39  ;;  %v871_v53 = vrot.slane %v869_v56, 7  ;;  %v464_v27 = vld [vmem:[#allocation3 + $0x80] sm:$0x1] }
  0xaa   : > { %2559 = vmatprep.mubr.bf16.mxu0 %v2041_v54  ;;  %5861 = vmatmul.mubr.bf16.vlgmr.msra.gmra.mxu1 %v6871_v28  ;;  %463 = vst [vmem:[#allocation3 + $0x74] sm:$0x1] %v462_v61  ;;  %v5296_v6 = vunpack.c.l.bf16 %v5413_v45  ;;  %v5297_v8 = vunpack.c.h.bf16 %v5413_v45  ;;  %v415_v28 = vsel %vm6626_vm2, 0, %v414_v40  ;;  %v866_v12 = vor.u32 %v864_v49, %v863_v51  ;;  %v6150_v49 = vld [vmem:[#allocation7 + $0x20] sm:$0xff]   ;;  %v1137_v54 = vld [vmem:[#allocation3 + $0x68] sm:$0x1] }
  0xab   : > { %2560 = vmatmul.mubr.bf16.gmra.mxu0 %v6926_v1  ;;  %5573 = vmatpush3.bf16.msra.mxu1 %v6130_v22  ;;  %v867_v13 = vrot.slane %v863_v51, 4  ;;  %v642_v14 = vmax.f32 %v610_v59, 0.0  ;;  %v5211_v17 = vpack.c.bf16 %v641_v60, %v641_v60  ;;  %416 = vst [vmem:[#allocation3 + $0x78] sm:$0x1] %v415_v28  ;;  %v874_v1 = vor.u32 %v872_v57, %v871_v53  ;;  %v5414_v57 = vld [vmem:[%s6615_s17 + $0x48] sm:$0xff]  }
  0xac   : > { %5864 = vmatprep.mubr.bf16.mxu1 %v6906_v32  ;;  %5574 = vmatprep.subr.bf16.mxu1 %v6136_v18  ;;  %v876_v62 = vrot.slane %v871_v53, 4  ;;  %v572_v20 = vmul.f32 %v6883_v21, %v5296_v6  ;;  %v573_v26 = vmul.f32 %v6883_v21, %v5297_v8  ;;  %v1127_v63 = vsel %vm6693_vm8, %v866_v12, %v1126_v5  ;;  %v1133_v18 = vld [vmem:[#allocation3 + $0x60] sm:$0xf]  ;;  %v6158_v5 = vld [vmem:[#allocation7 + $0x58] sm:$0xff]  }
  0xad   : > { %v1784_v25 = vld [vmem:[#allocation3 + $0x48] sm:$0xf]  ;;  %v5212_v32 = vpack.c.bf16 %v642_v14, %v642_v14  ;;  %v878_v15 = vshrl.u32 %v5211_v17, 16  ;;  %v881_v0 = vshll.u32 %v5211_v17, 16  ;;  %v875_v22 = vsel %vm6685_vm7, %v867_v13, %v874_v1  ;;  %1128 = vst [vmem:[#allocation3 + $0x54] sm:$0xf] %v1127_v63 }
  0xae   : > { %v1827_v19 = vld [vmem:[#allocation3 + $0x48] sm:$0xe]  ;;  %v1785_v29 = vld [vmem:[#allocation3 + $0x4c] sm:$0xf]  ;;  %v1131_v31 = vsel %vm6626_vm2, %v876_v62, %v1130_v4  ;;  %1129 = vst [vmem:[#allocation3 + $0x58] sm:$0xf] %v875_v22  ;;  %v611_v38 = vadd.f32 %v6899_v46, %v572_v20  ;;  %v5300_v13 = vunpack.c.l.bf16 %v5414_v57  ;;  %v5301_v14 = vunpack.c.h.bf16 %v5414_v57 }
  0xaf   : > { %v6961_v30 = vcombine.low %v1784_v25, %v1785_v29  ;;  %v6133_v24 = vld [vmem:[#allocation3 + $0x50] ss:$0 sps:$4 sm:$0x11]   ;;  %5575 = vmatpush3.bf16.msra.mxu1 %v6137_v55  ;;  %v5026_v34 = vcombine.low %v1827_v19, %v1785_v29  ;;  %1132 = vst [vmem:[#allocation3 + $0x5c] sm:$0x1] %v1131_v31  ;;  %v880_v2 = vrot.slane %v878_v15, 7  ;;  %v612_v55 = vadd.f32 %v6899_v46, %v573_v26 }
  0xb0   : > { %5576 = vmatprep.subr.bf16.mxu1 %v6143_v3  ;;  %v886_v36 = vshrl.u32 %v5212_v32, 16  ;;  %v889_v35 = vshll.u32 %v5212_v32, 16  ;;  %v2050_v41 = vshll.u32 %v6133_v24, 16  ;;  %v2254_v43 = vrot.slane %v6133_v24, 1  ;;  %v6159_v4 = vld [vmem:[#allocation7 + $0x18] sm:$0xff]   ;;  %v6167_v24 = vld [vmem:[#allocation7 + $0x50] sm:$0xff]  }
  0xb1   : > { %v2043_v39 = vshrl.u32 %v6961_v30, 16  ;;  %v2045_v40 = vshll.u32 %v6961_v30, 16  ;;  %v2253_v42 = vrot.slane %v5026_v34, 1  ;;  %v883_v37 = vor.u32 %v881_v0, %v880_v2  ;;  %v417_v17 = vld [vmem:[#allocation3 + $0x84] sm:$0x1] }
  0xb2   : > { %5865 = vmatmul.mubr.bf16.gmra.mxu1 %v6916_v44  ;;  %v884_v45 = vrot.slane %v880_v2, 4  ;;  %v888_v48 = vrot.slane %v886_v36, 7  ;;  %v2052_v52 = vrot.slane %v2050_v41, 1  ;;  %v643_v56 = vmax.f32 %v611_v38, 0.0  ;;  %v1140_v32 = vld [vmem:[#allocation3 + $0x6c] sm:$0xf] }
  0xb3   : > { %v2047_v50 = vrot.slane %v2045_v40, 1  ;;  %5868 = vmatprep.mubr.bf16.mxu1 %v6947_v58  ;;  %5577 = vmatpush3.bf16.msra.mxu1 %v6144_v23  ;;  %v2255_v51 = vsel %vm1661_vm10, %v2253_v42, %v2254_v43  ;;  %v1134_v59 = vsel %vm6693_vm8, %v883_v37, %v1133_v18  ;;  %v644_v61 = vmax.f32 %v612_v55, 0.0  ;;  %v6992_v2 = vld [vmem:[%s6615_s17 + $0x50] sm:$0xff]   ;;  %v6170_v43 = vld [vmem:[#allocation7 + $0x48] sm:$0xff]  }
  0xb4   : > { %v891_v3 = vor.u32 %v889_v35, %v888_v48  ;;  %v893_v44 = vrot.slane %v888_v48, 4  ;;  %5578 = vmatprep.subr.bf16.mxu1 %v6149_v33  ;;  %1135 = vst [vmem:[#allocation3 + $0x60] sm:$0xf] %v1134_v59  ;;  %v5213_v53 = vpack.c.bf16 %v643_v56, %v643_v56  ;;  %v465_v58 = vsel %vm6631_vm4, 0, %v464_v27  ;;  %v1786_v6 = vld [vmem:[#allocation3 + $0x54] sm:$0xf] }
  0xb5   : > { %v2048_v60 = vor.u32 %v2047_v50, %v2043_v39  ;;  %v1828_v12 = vld [vmem:[#allocation3 + $0x54] sm:$0xe]  ;;  %466 = vst [vmem:[#allocation3 + $0x80] sm:$0x1] %v465_v58  ;;  %v1787_v1 = vld [vmem:[#allocation3 + $0x58] sm:$0xf]  ;;  %v5214_v62 = vpack.c.bf16 %v644_v61, %v644_v61  ;;  %v574_v15 = vmul.f32 %v6883_v21, %v5300_v13  ;;  %v575_v0 = vmul.f32 %v6883_v21, %v5301_v14 }
  0xb6   : > { %v892_v8 = vsel %vm6685_vm7, %v884_v45, %v891_v3  ;;  %v1138_v28 = vsel %vm6626_vm2, %v893_v44, %v1137_v54  ;;  %v895_v19 = vshrl.u32 %v5213_v53, 16  ;;  %v898_v20 = vshll.u32 %v5213_v53, 16  ;;  %v6139_v29 = vld [vmem:[#allocation3 + $0x5c] ss:$0 sps:$4 sm:$0x11]   ;;  %v6168_v36 = vld [vmem:[#allocation7 + $0x10] sm:$0xff]  }
  0xb7   : > { %v2053_v25 = vsel %vm1404_vm9, %v2048_v60, %v2052_v52  ;;  %1136 = vst [vmem:[#allocation3 + $0x64] sm:$0xf] %v892_v8  ;;  %1139 = vst [vmem:[#allocation3 + $0x68] sm:$0x1] %v1138_v28  ;;  %5579 = vmatpush3.bf16.msra.mxu1 %v6150_v49  ;;  %v6984_v26 = vcombine.low %v1786_v6, %v1787_v1  ;;  %v5027_v63 = vcombine.low %v1828_v12, %v1787_v1  ;;  %v1144_v39 = vld [vmem:[#allocation3 + $0x74] sm:$0x1] }
  0xb8   : > { %2567 = vmatprep.mubr.bf16.mxu0 %v2053_v25  ;;  %v897_v22 = vrot.slane %v895_v19, 7  ;;  %v903_v31 = vshrl.u32 %v5214_v62, 16  ;;  %v906_v34 = vshll.u32 %v5214_v62, 16  ;;  %5580 = vmatprep.subr.bf16.mxu1 %v6158_v5  ;;  %v418_v23 = vsel %vm6626_vm2, 0, %v417_v17  ;;  %v467_v57 = vld [vmem:[#allocation3 + $0x8c] sm:$0x1] }
  0xb9   : > { %2568 = vmatmul.mubr.bf16.gmra.mxu0 %v6961_v30  ;;  %v2055_v35 = vshrl.u32 %v6984_v26, 16  ;;  %v2057_v18 = vshll.u32 %v6984_v26, 16  ;;  %v2062_v33 = vshll.u32 %v6139_v29, 16  ;;  %v2256_v38 = vrot.slane %v5027_v63, 1  ;;  %419 = vst [vmem:[#allocation3 + $0x84] sm:$0x1] %v418_v23 }
  0xba   : > { %5869 = vmatmul.mubr.bf16.gmra.mxu1 %v2255_v51  ;;  %v2257_v30 = vrot.slane %v6139_v29, 1  ;;  %v900_v40 = vor.u32 %v898_v20, %v897_v22  ;;  %v901_v41 = vrot.slane %v897_v22, 4  ;;  %v905_v42 = vrot.slane %v903_v31, 7  ;;  %v6171_v6 = vld [vmem:[#allocation7 + $0x8] sm:$0xff]   ;;  %v420_v14 = vld [vmem:[#allocation3 + $0x90] sm:$0x1] }
  0xbb   : > { %5581 = vmatpush3.bf16.msra.mxu1 %v6159_v4  ;;  %v2059_v37 = vrot.slane %v2057_v18, 1  ;;  %v2064_v45 = vrot.slane %v2062_v33, 1  ;;  %v1788_v48 = vld [vmem:[#allocation3 + $0x60] sm:$0xf]  ;;  %v613_v27 = vadd.f32 %v6899_v46, %v574_v15  ;;  %v614_v50 = vadd.f32 %v6899_v46, %v575_v0  ;;  %v6175_v17 = vld [vmem:[#allocation7 + $0x40] sm:$0xff]  }
  0xbc   : > { %v1829_v49 = vld [vmem:[#allocation3 + $0x60] sm:$0xe]  ;;  %5582 = vmatprep.subr.bf16.mxu1 %v6167_v24  ;;  %v2258_v52 = vsel %vm1661_vm10, %v2256_v38, %v2257_v30  ;;  %v908_v54 = vor.u32 %v906_v34, %v905_v42  ;;  %v910_v55 = vrot.slane %v905_v42, 4  ;;  %v1141_v56 = vsel %vm6693_vm8, %v900_v40, %v1140_v32  ;;  %v470_v20 = vld [vmem:[#allocation3 + $0x98] sm:$0x1]  ;;  %v5416_v34 = vld [vmem:[%s6615_s17 + $0x58] sm:$0xff]  }
  0xbd   : > { %v2060_v51 = vor.u32 %v2059_v37, %v2055_v35  ;;  %5872 = vmatprep.mubr.bf16.mxu1 %v2258_v52  ;;  %1142 = vst [vmem:[#allocation3 + $0x6c] sm:$0xf] %v1141_v56  ;;  %v645_v44 = vmax.f32 %v613_v27, 0.0  ;;  %v646_v59 = vmax.f32 %v614_v50, 0.0  ;;  %v5304_v60 = vunpack.c.l.bf16 %v6992_v2  ;;  %v6176_v23 = vld [vmem:[#allocation7] sm:$0xff]  }
  0xbe   : > { %v1789_v3 = vld [vmem:[#allocation3 + $0x64] sm:$0xf]  ;;  %v6146_v53 = vld [vmem:[#allocation3 + $0x68] ss:$0 sps:$4 sm:$0x11]   ;;  %v909_v5 = vsel %vm6685_vm7, %v901_v41, %v908_v54  ;;  %v1145_v4 = vsel %vm6626_vm2, %v910_v55, %v1144_v39  ;;  %v468_v13 = vsel %vm6631_vm4, 0, %v467_v57  ;;  %v5305_v31 = vunpack.c.h.bf16 %v6992_v2 }
  0xbf   : > { %v7002_v61 = vcombine.low %v1788_v48, %v1789_v3  ;;  %v5028_v58 = vcombine.low %v1829_v49, %v1789_v3  ;;  %5583 = vmatpush3.bf16.msra.mxu1 %v6168_v36  ;;  %v2065_v8 = vsel %vm1404_vm9, %v2060_v51, %v2064_v45  ;;  %1143 = vst [vmem:[#allocation3 + $0x70] sm:$0xf] %v909_v5  ;;  %1146 = vst [vmem:[#allocation3 + $0x74] sm:$0x1] %v1145_v4  ;;  %v7016_v36 = vld [vmem:[#allocation7 + $0x238] sm:$0xff]  }
  0xc0   : > { %v5215_v28 = vpack.c.bf16 %v645_v44, %v645_v44  ;;  %v5216_v12 = vpack.c.bf16 %v646_v59, %v646_v59  ;;  %5584 = vmatprep.subr.bf16.mxu1 %v6170_v43  ;;  %2575 = vmatprep.mubr.bf16.mxu0 %v2065_v8  ;;  %v2074_v62 = vshll.u32 %v6146_v53, 16  ;;  %469 = vst [vmem:[#allocation3 + $0x8c] sm:$0x1] %v468_v13  ;;  %v2260_v29 = vrot.slane %v6146_v53, 1  ;;  %v1147_v38 = vld [vmem:[#allocation3 + $0x78] sm:$0xf] }
  0xc1   : > { %v2067_v25 = vshrl.u32 %v7002_v61, 16  ;;  %v2069_v1 = vshll.u32 %v7002_v61, 16  ;;  %v2259_v19 = vrot.slane %v5028_v58, 1  ;;  %2576 = vmatmul.mubr.bf16.gmra.mxu0 %v6984_v26  ;;  %v1151_v26 = vld [vmem:[#allocation3 + $0x80] sm:$0x1]  ;;  %v576_v39 = vmul.f32 %v6883_v21, %v5304_v60 }
  0xc2   : > { %v912_v63 = vshrl.u32 %v5215_v28, 16  ;;  %v915_v32 = vshll.u32 %v5215_v28, 16  ;;  %v920_v15 = vshrl.u32 %v5216_v12, 16  ;;  %v2076_v24 = vrot.slane %v2074_v62, 1 }
  0xc3   : > { %v2071_v0 = vrot.slane %v2069_v1, 1  ;;  %v923_v22 = vshll.u32 %v5216_v12, 16  ;;  %5585 = vmatpush3.bf16.msra.mxu1 %v6171_v6  ;;  %v2261_v35 = vsel %vm1661_vm10, %v2259_v19, %v2260_v29  ;;  %v577_v2 = vmul.f32 %v6883_v21, %v5305_v31 }
  0xc4   : > { %v914_v18 = vrot.slane %v912_v63, 7  ;;  %v922_v33 = vrot.slane %v920_v15, 7  ;;  %5586 = vmatprep.subr.bf16.mxu1 %v6175_v17  ;;  %5873 = vmatmul.mubr.bf16.gmra.mxu1 %v2261_v35  ;;  %v1790_v40 = vld [vmem:[#allocation3 + $0x6c] sm:$0xf]  ;;  %v421_v42 = vsel %vm6626_vm2, 0, %v420_v14  ;;  %v471_v43 = vsel %vm6631_vm4, 0, %v470_v20 }
  0xc5   : > { %v2072_v30 = vor.u32 %v2071_v0, %v2067_v25  ;;  %v1830_v41 = vld [vmem:[#allocation3 + $0x6c] sm:$0xe]  ;;  %422 = vst [vmem:[#allocation3 + $0x90] sm:$0x1] %v421_v42  ;;  %472 = vst [vmem:[#allocation3 + $0x98] sm:$0x1] %v471_v43  ;;  %v615_v52 = vadd.f32 %v6899_v46, %v576_v39  ;;  %v616_v54 = vadd.f32 %v6899_v46, %v577_v2  ;;  %v5308_v55 = vunpack.c.l.bf16 %v5416_v34 }
  0xc6   : > { %v917_v37 = vor.u32 %v915_v32, %v914_v18  ;;  %v918_v45 = vrot.slane %v914_v18, 4  ;;  %v925_v48 = vor.u32 %v923_v22, %v922_v33  ;;  %v927_v49 = vrot.slane %v922_v33, 4  ;;  %v1791_v50 = vld [vmem:[#allocation3 + $0x70] sm:$0xf]  ;;  %v1154_v22 = vld [vmem:[#allocation3 + $0x84] sm:$0xf] }
  0xc7   : > { %v2077_v27 = vsel %vm1404_vm9, %v2072_v30, %v2076_v24  ;;  %5587 = vmatpush3.bf16.msra.mxu1 %v6176_v23  ;;  %v4997_v56 = vcombine.low %v1790_v40, %v1791_v50  ;;  %v6153_v57 = vld [vmem:[#allocation3 + $0x74] ss:$0 sps:$4 sm:$0x11]   ;;  %v5029_v10 = vcombine.low %v1830_v41, %v1791_v50  ;;  %v647_v59 = vmax.f32 %v615_v52, 0.0  ;;  %v1158_v31 = vld [vmem:[#allocation3 + $0x8c] sm:$0x1] }
  0xc8   : > { %2583 = vmatprep.mubr.bf16.mxu0 %v2077_v27  ;;  %v926_v51 = vsel %vm6685_vm7, %v918_v45, %v925_v48  ;;  %v1148_v3 = vsel %vm6693_vm8, %v917_v37, %v1147_v38  ;;  %v1152_v44 = vsel %vm6626_vm2, %v927_v49, %v1151_v26  ;;  %v648_v60 = vmax.f32 %v616_v54, 0.0  ;;  %5940 = vmatprep.subr.bf16.mxu1 %v7016_v36 }
  0xc9   : > { %1149 = vst [vmem:[#allocation3 + $0x78] sm:$0xf] %v1148_v3  ;;  %1150 = vst [vmem:[#allocation3 + $0x7c] sm:$0xf] %v926_v51  ;;  %v5309_v53 = vunpack.c.h.bf16 %v5416_v34  ;;  %2584 = vmatmul.mubr.bf16.gmra.mxu0 %v7002_v61  ;;  %v2079_v58 = vshrl.u32 %v4997_v56, 16  ;;  %v2081_v5 = vshll.u32 %v4997_v56, 16  ;;  %v5217_v28 = vpack.c.bf16 %v647_v59, %v647_v59 }
  0xca   : > { %v2086_v4 = vshll.u32 %v6153_v57, 16  ;;  %v2262_v6 = vrot.slane %v5029_v10, 1  ;;  %1153 = vst [vmem:[#allocation3 + $0x80] sm:$0x1] %v1152_v44  ;;  %v2263_v8 = vrot.slane %v6153_v57, 1  ;;  %v5218_v12 = vpack.c.bf16 %v648_v60, %v648_v60 }
  0xcb   : > { %v578_v13 = vmul.f32 %v6883_v21, %v5308_v55  ;;  %v2083_v14 = vrot.slane %v2081_v5, 1  ;;  %v579_v25 = vmul.f32 %v6883_v21, %v5309_v53  ;;  %v929_v62 = vshrl.u32 %v5217_v28, 16  ;;  %v1837_v61 = vld [vmem:[#allocation3 + $0xc0] sm:$0xe] }
  0xcc   : > { %v2088_v17 = vrot.slane %v2086_v4, 1  ;;  %v2264_v1 = vsel %vm1661_vm10, %v2262_v6, %v2263_v8  ;;  %v932_v19 = vshll.u32 %v5217_v28, 16  ;;  %v937_v20 = vshrl.u32 %v5218_v12, 16  ;;  %v1161_v59 = vld [vmem:[#allocation3 + $0x90] sm:$0xf] }
  0xcd   : > { %v2084_v29 = vor.u32 %v2083_v14, %v2079_v58  ;;  %5876 = vmatprep.mubr.bf16.mxu1 %v2264_v1  ;;  %v940_v63 = vshll.u32 %v5218_v12, 16  ;;  %v617_v32 = vadd.f32 %v6899_v46, %v578_v13  ;;  %v618_v15 = vadd.f32 %v6899_v46, %v579_v25  ;;  %v1165_v60 = vld [vmem:[#allocation3 + $0x98] sm:$0x1]  ;;  %v1834_v14 = vld [vmem:[#allocation3 + $0x9c] sm:$0xe] }
  0xce   : > { %v931_v0 = vrot.slane %v929_v62, 7  ;;  %v939_v24 = vrot.slane %v937_v20, 7  ;;  %v5036_v18 = vcombine.low %v1837_v61, %v6878_v9  ;;  %v2284_v6 = vrot.slane %v6889_v47, 1 }
  0xcf   : > { %v2089_v34 = vsel %vm1404_vm9, %v2084_v29, %v2088_v17  ;;  %v649_v41 = vmax.f32 %v617_v32, 0.0  ;;  %v650_v2 = vmax.f32 %v618_v15, 0.0  ;;  %v6449_v17 = vmov 0  }
  0xd0   : > { %v1792_v21 = vld [vmem:[#allocation3 + $0x78] sm:$0xf]  ;;  %v1793_v23 = vld [vmem:[#allocation3 + $0x7c] sm:$0xf]  ;;  %2591 = vmatprep.mubr.bf16.mxu0 %v2089_v34  ;;  %v934_v39 = vor.u32 %v932_v19, %v931_v0  ;;  %v935_v30 = vrot.slane %v931_v0, 4  ;;  %v942_v40 = vor.u32 %v940_v63, %v939_v24  ;;  %v944_v46 = vrot.slane %v939_v24, 4 }
  0xd1   : > { %v1831_v35 = vld [vmem:[#allocation3 + $0x78] sm:$0xe]  ;;  %v4998_v33 = vcombine.low %v1792_v21, %v1793_v23  ;;  %v6156_v38 = vld [vmem:[#allocation3 + $0x80] ss:$0 sps:$4 sm:$0x11]   ;;  %2592 = vmatmul.mubr.bf16.gmra.mxu0 %v4997_v56  ;;  %v5219_v54 = vpack.c.bf16 %v649_v41, %v649_v41  ;;  %v5220_v55 = vpack.c.bf16 %v650_v2, %v650_v2  ;;  %v2283_v4 = vrot.slane %v5036_v18, 1 }
  0xd2   : > { %v5030_v26 = vcombine.low %v1831_v35, %v1793_v23  ;;  %v2266_v43 = vrot.slane %v6156_v38, 1  ;;  %v2098_v48 = vshll.u32 %v6156_v38, 16  ;;  %v943_v49 = vsel %vm6685_vm7, %v935_v30, %v942_v40  ;;  %376 = vst [vmem:[#allocation3] sm:$0xf] %v6449_v17  ;;  %377 = vst [vmem:[#allocation3 + $0x4] sm:$0xf] %v6449_v17 }
  0xd3   : > { %v2091_v37 = vshrl.u32 %v4998_v33, 16  ;;  %v2093_v45 = vshll.u32 %v4998_v33, 16  ;;  %v1155_v9 = vsel %vm6693_vm8, %v934_v39, %v1154_v22  ;;  %v1159_v27 = vsel %vm6626_vm2, %v944_v46, %v1158_v31  ;;  %1157 = vst [vmem:[#allocation3 + $0x88] sm:$0xf] %v943_v49  ;;  %378 = vst [vmem:[#allocation3 + $0x8] sm:$0x1] %v6449_v17 }
  0xd4   : > { %v2265_v42 = vrot.slane %v5030_v26, 1  ;;  %1156 = vst [vmem:[#allocation3 + $0x84] sm:$0xf] %v1155_v9  ;;  %1160 = vst [vmem:[#allocation3 + $0x8c] sm:$0x1] %v1159_v27  ;;  %v2100_v56 = vrot.slane %v2098_v48, 1  ;;  %v7053_v62 = vsel %vm1661_vm10, %v2283_v4, %v2284_v6 }
  0xd5   : > { %v2095_v52 = vrot.slane %v2093_v45, 1  ;;  %v946_v10 = vshrl.u32 %v5219_v54, 16  ;;  %v949_v51 = vshll.u32 %v5219_v54, 16  ;;  %v954_v3 = vshrl.u32 %v5220_v55, 16  ;;  %380 = vst [vmem:[#allocation3 + $0xcc] sm:$0xf] %v6449_v17 }
  0xd6   : > { %v2267_v50 = vsel %vm1661_vm10, %v2265_v42, %v2266_v43  ;;  %v957_v44 = vshll.u32 %v5220_v55, 16  ;;  %381 = vst [vmem:[#allocation3 + $0xd0] sm:$0xf] %v6449_v17  ;;  %382 = vst [vmem:[#allocation3 + $0xd4] sm:$0x1] %v6449_v17 }
  0xd7   : > { %5877 = vmatmul.mubr.bf16.gmra.mxu1 %v2267_v50  ;;  %v2096_v57 = vor.u32 %v2095_v52, %v2091_v37  ;;  %v948_v58 = vrot.slane %v946_v10, 7  ;;  %v956_v5 = vrot.slane %v954_v3, 7  ;;  %v6299_v34 = vld [vmem:[#allocation3 + $0xa0] sm:$0xf]  ;;  %v1835_v18 = vld [vmem:[#allocation3 + $0xa8] sm:$0xe] }
  0xd8   : > { %v5033_v21 = vcombine.low %v1834_v14, %v6299_v34  ;;  %v6300_v26 = vld [vmem:[#allocation3 + $0xa4] ss:$0 sps:$4 sm:$0x11]   ;;  %v6301_v49 = vld [vmem:[#allocation3 + $0xac] sm:$0xf] }
  0xd9   : > { %v2101_v53 = vsel %vm1404_vm9, %v2096_v57, %v2100_v56  ;;  %v951_v8 = vor.u32 %v949_v51, %v948_v58  ;;  %v952_v28 = vrot.slane %v948_v58, 4  ;;  %v959_v12 = vor.u32 %v957_v44, %v956_v5  ;;  %v1196_v30 = vld [vmem:[#allocation3] sm:$0xf]  ;;  %v1197_v40 = vld [vmem:[#allocation3 + $0x4] sm:$0xf] }
  0xda   : > { %2599 = vmatprep.mubr.bf16.mxu0 %v2101_v53  ;;  %v961_v13 = vrot.slane %v956_v5, 4  ;;  %v1795_v1 = vld [vmem:[#allocation3 + $0x88] sm:$0xf]  ;;  %v2274_v38 = vrot.slane %v5033_v21, 1  ;;  %v2275_v39 = vrot.slane %v6300_v26, 1  ;;  %v5034_v9 = vcombine.low %v1835_v18, %v6301_v49 }
  0xdb   : > { %2600 = vmatmul.mubr.bf16.gmra.mxu0 %v4998_v33  ;;  %v1794_v25 = vld [vmem:[#allocation3 + $0x84] sm:$0xf]  ;;  %v6161_v20 = vld [vmem:[#allocation3 + $0x8c] ss:$0 sps:$4 sm:$0x11]   ;;  %v960_v61 = vsel %vm6685_vm7, %v952_v28, %v959_v12  ;;  %v1162_v29 = vsel %vm6693_vm8, %v951_v8, %v1161_v59  ;;  %v7064_v59 = vcombine.low %v1196_v30, %v1197_v40 }
  0xdc   : > { %v1832_v19 = vld [vmem:[#allocation3 + $0x84] sm:$0xe]  ;;  %v4999_v47 = vcombine.low %v1794_v25, %v1795_v1  ;;  %v1166_v63 = vsel %vm6626_vm2, %v961_v13, %v1165_v60  ;;  %1163 = vst [vmem:[#allocation3 + $0x90] sm:$0xf] %v1162_v29  ;;  %1164 = vst [vmem:[#allocation3 + $0x94] sm:$0xf] %v960_v61  ;;  %v2276_v44 = vsel %vm1661_vm10, %v2274_v38, %v2275_v39 }
  0xdd   : > { %v5031_v32 = vcombine.low %v1832_v19, %v1795_v1  ;;  %1167 = vst [vmem:[#allocation3 + $0x98] sm:$0x1] %v1166_v63  ;;  %v2269_v15 = vrot.slane %v6161_v20, 1  ;;  %v2110_v22 = vshll.u32 %v6161_v20, 16  ;;  %v1244_v33 = vld [vmem:[#allocation3] sm:$0xe] }
  0xde   : > { %v2103_v0 = vshrl.u32 %v4999_v47, 16  ;;  %v2105_v24 = vshll.u32 %v4999_v47, 16  ;;  %v4973_v45 = vcombine.low %v1244_v33, %v1197_v40  ;;  %v6302_v27 = vld [vmem:[#allocation3 + $0xb8] sm:$0xf]  ;;  %v1199_v10 = vld [vmem:[#allocation3 + $0x10] sm:$0xf] }
  0xdf   : > { %v2268_v31 = vrot.slane %v5031_v32, 1  ;;  %v2112_v11 = vrot.slane %v2110_v22, 1  ;;  %v5035_v50 = vcombine.low %v1836_v7, %v6302_v27  ;;  %v6178_v52 = vld [vmem:[#allocation3 + $0x8] ss:$0 sps:$4 sm:$0x11]   ;;  %v2277_v28 = vrot.slane %v5034_v9, 1 }
  0xe0   : > { %v2107_v23 = vrot.slane %v2105_v24, 1  ;;  %v1245_v51 = vld [vmem:[#allocation3 + $0xc] sm:$0xe]  ;;  %v1201_v60 = vld [vmem:[#allocation3 + $0x1c] sm:$0xf]  ;;  %v1662_v4 = vrot.slane %v4973_v45, 1 }
  0xe1   : > { %v2270_v35 = vsel %vm1661_vm10, %v2268_v31, %v2269_v15  ;;  %v1246_v53 = vld [vmem:[#allocation3 + $0x18] sm:$0xe]  ;;  %v1663_v6 = vrot.slane %v6178_v52, 1  ;;  %v6303_v12 = vld [vmem:[#allocation3 + $0xb0] ss:$0 sps:$4 sm:$0x11]  }
  0xe2   : > { %5880 = vmatprep.mubr.bf16.mxu1 %v2270_v35  ;;  %v2108_v16 = vor.u32 %v2107_v23, %v2103_v0  ;;  %v2278_v13 = vrot.slane %v6303_v12, 1  ;;  %v2280_v17 = vrot.slane %v5035_v50, 1  ;;  %v6304_v25 = vld [vmem:[#allocation3 + $0xbc] ss:$0 sps:$4 sm:$0x11]   ;;  %v4975_v20 = vcombine.low %v1246_v53, %v1201_v60  ;;  %v6189_v45 = vld [vmem:[#allocation7 + $0x1f0] sm:$0xff]  }
  0xe3   : > { %v1796_v46 = vld [vmem:[#allocation3 + $0x90] sm:$0xf]  ;;  %v1797_v41 = vld [vmem:[#allocation3 + $0x94] sm:$0xf]  ;;  %v2281_v1 = vrot.slane %v6304_v25, 1  ;;  %v1408_v29 = vshll.u32 %v7064_v59, 16  ;;  %v1664_v63 = vsel %vm1661_vm10, %v1662_v4, %v1663_v6 }
  0xe4   : > { %v2113_v2 = vsel %vm1404_vm9, %v2108_v16, %v2112_v11  ;;  %v1833_v42 = vld [vmem:[#allocation3 + $0x90] sm:$0xe]  ;;  %v5000_v43 = vcombine.low %v1796_v46, %v1797_v41  ;;  %v6165_v37 = vld [vmem:[#allocation3 + $0x98] ss:$0 sps:$4 sm:$0x11]   ;;  %v2279_v0 = vsel %vm1661_vm10, %v2277_v28, %v2278_v13  ;;  %v1668_v23 = vrot.slane %v4975_v20, 1 }
  0xe5   : > { %2607 = vmatprep.mubr.bf16.mxu0 %v2113_v2  ;;  %v5032_v48 = vcombine.low %v1833_v42, %v1797_v41  ;;  %v2272_v54 = vrot.slane %v6165_v37, 1  ;;  %v2122_v57 = vshll.u32 %v6165_v37, 16  ;;  %v7067_v19 = vld [vmem:[#allocation3 + $0x14] ss:$0 sps:$4 sm:$0x11]   ;;  %v2282_v24 = vsel %vm1661_vm10, %v2280_v17, %v2281_v1  ;;  %v6193_v49 = vld [vmem:[#allocation7 + $0x1b0] sm:$0xff]  }
  0xe6   : > { %2608 = vmatmul.mubr.bf16.gmra.mxu0 %v4999_v47  ;;  %v2115_v55 = vshrl.u32 %v5000_v43, 16  ;;  %v2117_v56 = vshll.u32 %v5000_v43, 16  ;;  %v4974_v47 = vcombine.low %v1245_v51, %v1199_v10  ;;  %v1198_v32 = vld [vmem:[#allocation3 + $0xc] sm:$0xf]  ;;  %v1203_v22 = vld [vmem:[#allocation3 + $0x28] sm:$0xf] }
  0xe7   : > { %v2271_v3 = vrot.slane %v5032_v48, 1  ;;  %v2124_v5 = vrot.slane %v2122_v57, 1  ;;  %v7072_v15 = vld [vmem:[#allocation3 + $0x20] ss:$0 sps:$4 sm:$0x11]   ;;  %v1666_v34 = vrot.slane %v7067_v19, 1  ;;  %v7077_v21 = vcombine.low %v1198_v32, %v1199_v10 }
  0xe8   : > { %v2119_v58 = vrot.slane %v2117_v56, 1  ;;  %v1665_v31 = vrot.slane %v4974_v47, 1  ;;  %v1406_v11 = vshrl.u32 %v7064_v59, 16  ;;  %v1410_v35 = vrot.slane %v1408_v29, 1  ;;  %v1247_v7 = vld [vmem:[#allocation3 + $0x24] sm:$0xe] }
  0xe9   : > { %v2273_v8 = vsel %vm1661_vm10, %v2271_v3, %v2272_v54  ;;  %v1413_v16 = vshll.u32 %v6178_v52, 16  ;;  %v1669_v18 = vrot.slane %v7072_v15, 1  ;;  %v1200_v33 = vld [vmem:[#allocation3 + $0x18] sm:$0xf]  ;;  %v7081_v38 = vld [vmem:[#allocation3 + $0x34] sm:$0xf]  ;;  %v4976_v2 = vcombine.low %v1247_v7, %v1203_v22 }
  0xea   : > { %5881 = vmatmul.mubr.bf16.gmra.mxu1 %v2273_v8  ;;  %v2120_v14 = vor.u32 %v2119_v58, %v2115_v55  ;;  %v1248_v26 = vld [vmem:[#allocation3 + $0x30] sm:$0xe]  ;;  %v7083_v39 = vld [vmem:[#allocation3 + $0x2c] ss:$0 sps:$4 sm:$0x11]   ;;  %v1667_v40 = vsel %vm1661_vm10, %v1665_v31, %v1666_v34  ;;  %v1420_v41 = vshll.u32 %v7077_v21, 16  ;;  %v1411_v42 = vor.u32 %v1410_v35, %v1406_v11 }
  0xeb   : > { %5884 = vmatprep.mubr.bf16.mxu1 %v2276_v44  ;;  %v7085_v30 = vld [vmem:[#allocation3 + $0x38] ss:$0 sps:$4 sm:$0x11]   ;;  %v6183_v46 = vld [vmem:[#allocation7 + $0x1b8] sm:$0xff]   ;;  %v1670_v37 = vsel %vm1661_vm10, %v1668_v23, %v1669_v18  ;;  %v4977_v48 = vcombine.low %v1248_v26, %v7081_v38  ;;  %v7091_v9 = vcombine.low %v1200_v33, %v1201_v60  ;;  %v7093_v27 = vld [vmem:[#allocation3 + $0x40] sm:$0xf] }
  0xec   : > { %v2125_v61 = vsel %vm1404_vm9, %v2120_v14, %v2124_v5  ;;  %v1249_v50 = vld [vmem:[#allocation3 + $0x3c] sm:$0xe]  ;;  %v1418_v52 = vshrl.u32 %v7077_v21, 16  ;;  %v1425_v54 = vshll.u32 %v7067_v19, 16  ;;  %v1671_v55 = vrot.slane %v4976_v2, 1  ;;  %v6197_v44 = vld [vmem:[#allocation7 + $0x1e8] sm:$0xff]  }
  0xed   : > { %2615 = vmatprep.mubr.bf16.mxu0 %v2125_v61  ;;  %v1672_v56 = vrot.slane %v7083_v39, 1  ;;  %v1422_v10 = vrot.slane %v1420_v41, 1  ;;  %v1674_v51 = vrot.slane %v4977_v48, 1  ;;  %v1675_v3 = vrot.slane %v7085_v30, 1  ;;  %v6201_v60 = vld [vmem:[#allocation7 + $0x1a8] sm:$0xff]   ;;  %v6206_v4 = vld [vmem:[#allocation7 + $0x1e0] sm:$0xff]  }
  0xee   : > { %2616 = vmatmul.mubr.bf16.gmra.mxu0 %v5000_v43  ;;  %v1415_v43 = vrot.slane %v1413_v16, 1  ;;  %v7100_v53 = vld [vmem:[#allocation3 + $0x4c] sm:$0xf]  ;;  %v1250_v58 = vld [vmem:[#allocation3 + $0x48] sm:$0xe]  ;;  %v1432_v8 = vshll.u32 %v7091_v9, 16  ;;  %v4978_v12 = vcombine.low %v1249_v50, %v7093_v27 }
  0xef   : > { %5908 = vmatprep.mubr.bf16.mxu0 %v1664_v63  ;;  %v1202_v5 = vld [vmem:[#allocation3 + $0x24] sm:$0xf]  ;;  %v1673_v6 = vsel %vm1661_vm10, %v1671_v55, %v1672_v56  ;;  %v1423_v13 = vor.u32 %v1422_v10, %v1418_v52  ;;  %v1427_v14 = vrot.slane %v1425_v54, 1  ;;  %v1676_v17 = vsel %vm1661_vm10, %v1674_v51, %v1675_v3  ;;  %v7109_v25 = vld [vmem:[#allocation3 + $0x50] ss:$0 sps:$4 sm:$0x11]  }
  0xf0   : > { %v1416_v57 = vsel %vm1404_vm9, %v1411_v42, %v1415_v43  ;;  %v7105_v28 = vld [vmem:[#allocation3 + $0x44] ss:$0 sps:$4 sm:$0x11]   ;;  %v7112_v1 = vcombine.low %v1202_v5, %v1203_v22  ;;  %v1430_v19 = vshrl.u32 %v7091_v9, 16  ;;  %v6202_v47 = vld [vmem:[#allocation7 + $0x230] sm:$0xff]   ;;  %v6210_v29 = vld [vmem:[#allocation7 + $0x1a0] sm:$0xff]  }
  0xf1   : > { %v7115_v20 = vld [vmem:[#allocation3 + $0x58] sm:$0xf]  ;;  %v1251_v61 = vld [vmem:[#allocation3 + $0x54] sm:$0xe]  ;;  %v1434_v63 = vrot.slane %v1432_v8, 1  ;;  %v1437_v32 = vshll.u32 %v7072_v15, 16  ;;  %v1428_v31 = vsel %vm1404_vm9, %v1423_v13, %v1427_v14 }
  0xf2   : > { %5885 = vmatmul.mubr.bf16.gmra.mxu1 %v2279_v0  ;;  %v1677_v0 = vrot.slane %v4978_v12, 1  ;;  %v1681_v34 = vrot.slane %v7109_v25, 1  ;;  %v7121_v23 = vld [vmem:[#allocation3 + $0x64] sm:$0xf]  ;;  %v1444_v11 = vshll.u32 %v7112_v1, 16  ;;  %v6214_v16 = vld [vmem:[#allocation7 + $0x1d8] sm:$0xff]   ;;  %v4980_v26 = vcombine.low %v1251_v61, %v7115_v20 }
  0xf3   : > { %5888 = vmatprep.mubr.bf16.mxu1 %v2282_v24  ;;  %v1678_v24 = vrot.slane %v7105_v28, 1  ;;  %v1252_v35 = vld [vmem:[#allocation3 + $0x60] sm:$0xe]  ;;  %v6218_v15 = vld [vmem:[#allocation7 + $0x198] sm:$0xff]   ;;  %v1439_v41 = vrot.slane %v1437_v32, 1  ;;  %v1449_v48 = vshll.u32 %v7083_v39, 16 }
  0xf4   : > { %v1204_v18 = vld [vmem:[#allocation3 + $0x30] sm:$0xf]  ;;  %v7127_v33 = vld [vmem:[#allocation3 + $0x5c] ss:$0 sps:$4 sm:$0x11]   ;;  %v1683_v52 = vrot.slane %v4980_v26, 1 }
  0xf5   : > { %v1679_v7 = vsel %vm1661_vm10, %v1677_v0, %v1678_v24  ;;  %v7131_v42 = vld [vmem:[#allocation3 + $0x68] ss:$0 sps:$4 sm:$0x11]   ;;  %v7135_v43 = vcombine.low %v1204_v18, %v7081_v38  ;;  %v6236_v50 = vld [vmem:[#allocation7 + $0x220] sm:$0xff]   ;;  %v1684_v54 = vrot.slane %v7127_v33, 1  ;;  %v6231_v56 = vld [vmem:[#allocation7 + $0x1c8] sm:$0xff]  }
  0xf6   : > { %5909 = vmatmul.mubr.bf16.vlgmr.msra.gmra.mxu0 %v1667_v40  ;;  %v6219_v40 = vld [vmem:[#allocation7 + $0x228] sm:$0xff]   ;;  %v7140_v55 = vld [vmem:[#allocation3 + $0x70] sm:$0xf]  ;;  %v1687_v10 = vrot.slane %v7131_v42, 1  ;;  %v1253_v51 = vld [vmem:[#allocation3 + $0x6c] sm:$0xe] }
  0xf7   : > { %5709 = vmatpush3.bf16.msra.mxu0 %v6183_v46  ;;  %5912 = vmatprep.mubr.bf16.mxu0 %v1670_v37  ;;  %v1435_v46 = vor.u32 %v1434_v63, %v1430_v19  ;;  %v1442_v37 = vshrl.u32 %v7112_v1, 16  ;;  %v7144_v3 = vld [vmem:[#allocation3 + $0x7c] sm:$0xf]  ;;  %v1254_v39 = vld [vmem:[#allocation3 + $0x78] sm:$0xe]  ;;  %v1685_v5 = vsel %vm1661_vm10, %v1683_v52, %v1684_v54  ;;  %v1451_v13 = vrot.slane %v1449_v48, 1 }
  0xf8   : > { %5710 = vmatprep.subr.bf16.mxu0 %v6189_v45  ;;  %v1446_v45 = vrot.slane %v1444_v11, 1  ;;  %v7152_v8 = vld [vmem:[#allocation3 + $0x80] ss:$0 sps:$4 sm:$0x11]   ;;  %v6240_v19 = vld [vmem:[#allocation7 + $0x1c0] sm:$0xff]   ;;  %v1454_v61 = vshrl.u32 %v7135_v43, 16 }
  0xf9   : > { %v1461_v63 = vshll.u32 %v7085_v30, 16  ;;  %v6244_v24 = vld [vmem:[#allocation7 + $0x180] sm:$0xff]   ;;  %v7164_v11 = vld [vmem:[#allocation3 + $0x88] sm:$0xf]  ;;  %v1256_v18 = vld [vmem:[#allocation3 + $0x90] sm:$0xe] }
  0xfa   : > { %5889 = vmatmul.mubr.bf16.gmra.mxu1 %v7053_v62  ;;  %v4979_v62 = vcombine.low %v1250_v58, %v7100_v53  ;;  %v6235_v58 = vld [vmem:[#allocation7 + $0x188] sm:$0xff]   ;;  %v1447_v12 = vor.u32 %v1446_v45, %v1442_v37  ;;  %v1473_v48 = vshll.u32 %v7105_v28, 16  ;;  %v1257_v52 = vld [vmem:[#allocation3 + $0x9c] sm:$0xe] }
  0xfb   : > { %2993 = vmatprep.mubr.bf16.mxu1 %v1416_v57  ;;  %5711 = vmatpush3.bf16.msra.mxu0 %v6193_v49  ;;  %v6227_v49 = vld [vmem:[#allocation7 + $0x190] sm:$0xff]   ;;  %v1440_v57 = vsel %vm1404_vm9, %v1435_v46, %v1439_v41  ;;  %v7177_v41 = vld [vmem:[#allocation3 + $0x98] ss:$0 sps:$4 sm:$0x11]  }
  0xfc   : > { %5712 = vmatprep.subr.bf16.mxu0 %v6197_v44  ;;  %v1680_v22 = vrot.slane %v4979_v62, 1  ;;  %v1206_v44 = vld [vmem:[#allocation3 + $0x3c] sm:$0xf] }
  0xfd   : > { %v7157_v62 = vcombine.low %v1206_v44, %v7093_v27  ;;  %v6262_v54 = vld [vmem:[#allocation7 + $0x200] sm:$0xff]   ;;  %v1699_v44 = vrot.slane %v7177_v41, 1 }
  0xfe   : > { %5913 = vmatmul.mubr.bf16.gmra.mxu0 %v1673_v6  ;;  %v1682_v2 = vsel %vm1661_vm10, %v1680_v22, %v1681_v34  ;;  %v4982_v6 = vcombine.low %v1253_v51, %v7140_v55  ;;  %v1452_v22 = vsel %vm1404_vm9, %v1447_v12, %v1451_v13  ;;  %v1693_v34 = vrot.slane %v7152_v8, 1  ;;  %v7191_v51 = vld [vmem:[#allocation3 + $0xa4] ss:$0 sps:$4 sm:$0x11]   ;;  %v1258_v12 = vld [vmem:[#allocation3 + $0xa8] sm:$0xe] }
  0xff   : > { %5916 = vmatprep.mubr.bf16.mxu0 %v1676_v17  ;;  %5713 = vmatpush3.bf16.msra.mxu0 %v6201_v60  ;;  %v1456_v60 = vshll.u32 %v7135_v43, 16  ;;  %v6247_v17 = vld [vmem:[#allocation7 + $0x218] sm:$0xff]   ;;  %v1468_v30 = vshll.u32 %v7157_v62, 16  ;;  %v1466_v37 = vshrl.u32 %v7157_v62, 16 }
 0x100   : > { %5714 = vmatprep.subr.bf16.mxu0 %v6206_v4  ;;  %v7149_v4 = vld [vmem:[#allocation3 + $0x74] ss:$0 sps:$4 sm:$0x11]   ;;  %v1689_v32 = vrot.slane %v4982_v6, 1  ;;  %v1225_v6 = vld [vmem:[#allocation3 + $0xac] sm:$0xf] }
 0x101   : > { %v1690_v0 = vrot.slane %v7149_v4, 1  ;;  %v1470_v45 = vrot.slane %v1468_v30, 1 }
 0x102   : > { %2994 = vmatmul.mubr.bf16.vlgmr.msra.gmra.mxu1 %v7064_v59  ;;  %v4981_v59 = vcombine.low %v1252_v35, %v7121_v23  ;;  %v1255_v35 = vld [vmem:[#allocation3 + $0x84] sm:$0xe] }
 0x103   : > { %5941 = vmatpush3.bf16.msra.mxu1 %v7016_v36  ;;  %3001 = vmatprep.mubr.bf16.mxu1 %v1428_v31  ;;  %v6223_v36 = vld [vmem:[#allocation7 + $0x1d0] sm:$0xff]   ;;  %v1691_v26 = vsel %vm1661_vm10, %v1689_v32, %v1690_v0  ;;  %v4984_v46 = vcombine.low %v1255_v35, %v7164_v11  ;;  %v1212_v32 = vld [vmem:[#allocation3 + $0x60] sm:$0xf]  ;;  %v1259_v35 = vld [vmem:[#allocation3 + $0xb4] sm:$0xe] }
 0x104   : > { %5942 = vmatprep.subr.bf16.mxu1 %v6202_v47  ;;  %5715 = vmatpush3.bf16.msra.mxu0 %v6210_v29  ;;  %v1686_v38 = vrot.slane %v4981_v59, 1  ;;  %v1458_v29 = vrot.slane %v1456_v60, 1  ;;  %v6252_v31 = vld [vmem:[#allocation7 + $0x210] sm:$0xff]   ;;  %v3284_v60 = vld [vmem:[#allocation3 + $0x18] sm:$0xf] }
 0x105   : > { %5716 = vmatprep.subr.bf16.mxu0 %v6214_v16 }
 0x106   : > { %5917 = vmatmul.mubr.bf16.gmra.mxu0 %v1679_v7  ;;  %v1688_v14 = vsel %vm1661_vm10, %v1686_v38, %v1687_v10  ;;  %v1210_v7 = vld [vmem:[#allocation3 + $0x54] sm:$0xf]  ;;  %v1485_v10 = vshll.u32 %v7109_v25, 16  ;;  %v1475_v25 = vrot.slane %v1473_v48, 1  ;;  %v7218_v48 = vld [vmem:[#allocation3 + $0x28] sm:$0xf] }
 0x107   : > { %5943 = vmatpush3.bf16.msra.mxu1 %v6202_v47  ;;  %5920 = vmatprep.mubr.bf16.mxu0 %v1682_v2  ;;  %v1208_v47 = vld [vmem:[#allocation3 + $0x48] sm:$0xf]  ;;  %v1463_v2 = vrot.slane %v1461_v63, 1 }
 0x108   : > { %5717 = vmatpush3.bf16.msra.mxu0 %v6218_v15  ;;  %5944 = vmatprep.subr.bf16.mxu1 %v6219_v40  ;;  %v7167_v16 = vcombine.low %v1208_v47, %v7100_v53  ;;  %v7170_v15 = vld [vmem:[#allocation3 + $0x94] sm:$0xf]  ;;  %v1459_v53 = vor.u32 %v1458_v29, %v1454_v61  ;;  %v1487_v0 = vrot.slane %v1485_v10, 1 }
 0x109   : > { %5718 = vmatprep.subr.bf16.mxu0 %v6223_v36  ;;  %v4985_v36 = vcombine.low %v1256_v18, %v7170_v15 }
 0x10a   : > { %3002 = vmatmul.mubr.bf16.gmra.mxu1 %v7077_v21  ;;  %v4983_v21 = vcombine.low %v1254_v39, %v7144_v3  ;;  %v1464_v28 = vsel %vm1404_vm9, %v1459_v53, %v1463_v2  ;;  %v1478_v13 = vshrl.u32 %v7167_v16, 16 }
 0x10b   : > { %3009 = vmatprep.mubr.bf16.mxu1 %v1440_v57  ;;  %5945 = vmatpush3.bf16.msra.mxu1 %v6219_v40  ;;  %v7174_v40 = vld [vmem:[#allocation3 + $0x8c] ss:$0 sps:$4 sm:$0x11]   ;;  %v1695_v57 = vrot.slane %v4984_v46, 1  ;;  %v1698_v39 = vrot.slane %v4985_v36, 1 }
 0x10c   : > { %5719 = vmatpush3.bf16.msra.mxu0 %v6227_v49  ;;  %5946 = vmatprep.subr.bf16.mxu1 %v6236_v50  ;;  %v1692_v27 = vrot.slane %v4983_v21, 1  ;;  %v1480_v49 = vshll.u32 %v7167_v16, 16  ;;  %v1696_v38 = vrot.slane %v7174_v40, 1 }
 0x10d   : > { %5720 = vmatprep.subr.bf16.mxu0 %v6231_v56  ;;  %v7187_v56 = vcombine.low %v1210_v7, %v7115_v20  ;;  %v1700_v29 = vsel %vm1661_vm10, %v1698_v39, %v1699_v44 }
 0x10e   : > { %5921 = vmatmul.mubr.bf16.gmra.mxu0 %v1685_v5  ;;  %v1694_v59 = vsel %vm1661_vm10, %v1692_v27, %v1693_v34  ;;  %v1224_v5 = vld [vmem:[#allocation3 + $0xa8] sm:$0xf]  ;;  %v1697_v21 = vsel %vm1661_vm10, %v1695_v57, %v1696_v38  ;;  %v1482_v61 = vrot.slane %v1480_v49, 1  ;;  %v1226_v27 = vld [vmem:[#allocation3 + $0xb4] sm:$0xf]  ;;  %v7221_v49 = vcombine.low %v1212_v32, %v7121_v23 }
 0x10f   : > { %5924 = vmatprep.mubr.bf16.mxu0 %v1688_v14  ;;  %5947 = vmatpush3.bf16.msra.mxu1 %v6236_v50  ;;  %v7184_v50 = vld [vmem:[#allocation3 + $0xa0] sm:$0xf]  ;;  %v1471_v14 = vor.u32 %v1470_v45, %v1466_v37  ;;  %v7206_v63 = vcombine.low %v1224_v5, %v1225_v6  ;;  %v1227_v34 = vld [vmem:[#allocation3 + $0xb8] sm:$0xf]  ;;  %v3286_v45 = vld [vmem:[#allocation3 + $0x24] sm:$0xf] }
 0x110   : > { %5721 = vmatpush3.bf16.msra.mxu0 %v6235_v58  ;;  %5948 = vmatprep.subr.bf16.mxu1 %v6247_v17  ;;  %v7195_v58 = vld [vmem:[#allocation3 + $0x1c] sm:$0xf]  ;;  %v4986_v20 = vcombine.low %v1257_v52, %v7184_v50  ;;  %v4988_v37 = vcombine.low %v1259_v35, %v1227_v34  ;;  %v1483_v52 = vor.u32 %v1482_v61, %v1478_v13  ;;  %v3288_v35 = vld [vmem:[#allocation3 + $0x30] sm:$0xf] }
 0x111   : > { %5722 = vmatprep.subr.bf16.mxu0 %v6240_v19  ;;  %v6238_v19 = vld [vmem:[#allocation3 + $0xb0] ss:$0 sps:$4 sm:$0x11]   ;;  %v7203_v47 = vcombine.low %v3284_v60, %v7195_v58  ;;  %v1476_v30 = vsel %vm1404_vm9, %v1471_v14, %v1475_v25  ;;  %v1574_v2 = vshrl.u32 %v7206_v63, 16  ;;  %v1497_v60 = vshll.u32 %v7127_v33, 16 }
 0x112   : > { %3010 = vmatmul.mubr.bf16.gmra.mxu1 %v7091_v9  ;;  %v6257_v9 = vld [vmem:[#allocation7 + $0x208] sm:$0xff]   ;;  %v1705_v7 = vrot.slane %v6238_v19, 1  ;;  %v1581_v36 = vshll.u32 %v6238_v19, 16  ;;  %v6242_v57 = vld [vmem:[#allocation3 + $0xbc] ss:$0 sps:$4 sm:$0x11]   ;;  %v7230_v23 = vcombine.low %v3286_v45, %v7218_v48 }
 0x113   : > { %3017 = vmatprep.mubr.bf16.mxu1 %v1452_v22  ;;  %5949 = vmatpush3.bf16.msra.mxu1 %v6247_v17  ;;  %v1492_v17 = vshll.u32 %v7187_v56, 16  ;;  %v1490_v22 = vshrl.u32 %v7187_v56, 16  ;;  %v3495_v46 = vshll.u32 %v7203_v47, 16  ;;  %v3493_v10 = vshrl.u32 %v7203_v47, 16 }
 0x114   : > { %5723 = vmatpush3.bf16.msra.mxu0 %v6244_v24  ;;  %5950 = vmatprep.subr.bf16.mxu1 %v6252_v31  ;;  %v1701_v24 = vrot.slane %v4986_v20, 1  ;;  %v1583_v44 = vrot.slane %v1581_v36, 1  ;;  %v1707_v5 = vrot.slane %v4988_v37, 1  ;;  %v1593_v25 = vshll.u32 %v6242_v57, 16  ;;  %v3333_v36 = vld [vmem:[#allocation3 + $0x24] sm:$0xe] }
 0x115   : > { %v1494_v18 = vrot.slane %v1492_v17, 1  ;;  %v1708_v13 = vrot.slane %v6242_v57, 1  ;;  %v6249_v14 = vld [vmem:[#allocation3 + $0x2c] ss:$0 sps:$4 sm:$0x11]   ;;  %v3507_v32 = vshll.u32 %v7230_v23, 16  ;;  %v5118_v57 = vcombine.low %v3333_v36, %v7218_v48 }
 0x116   : > { %5925 = vmatmul.mubr.bf16.gmra.mxu0 %v1691_v26  ;;  %v7211_v26 = vld [vmem:[#allocation3 + $0x20] ss:$0 sps:$4 sm:$0x11]   ;;  %v1595_v61 = vrot.slane %v1593_v25, 1  ;;  %v3752_v37 = vrot.slane %v6249_v14, 1 }
 0x117   : > { %5928 = vmatprep.mubr.bf16.mxu0 %v1694_v59  ;;  %5951 = vmatpush3.bf16.msra.mxu1 %v6252_v31  ;;  %v1702_v31 = vrot.slane %v7191_v51, 1  ;;  %v1576_v59 = vshll.u32 %v7206_v63, 16  ;;  %v3500_v39 = vshll.u32 %v7211_v26, 16  ;;  %v7261_v48 = vld [vmem:[#allocation3 + $0x44] ss:$0 sps:$4 sm:$0x11]  }
 0x118   : > { %5952 = vmatprep.subr.bf16.mxu1 %v6257_v9 }
 0x119   : > { %v1578_v38 = vrot.slane %v1576_v59, 1  ;;  %v3502_v17 = vrot.slane %v3500_v39, 1  ;;  %v3749_v59 = vrot.slane %v7211_v26, 1  ;;  %v1509_v26 = vshll.u32 %v7131_v42, 16 }
 0x11a   : > { %3018 = vmatmul.mubr.bf16.gmra.mxu1 %v7112_v1  ;;  %v4987_v1 = vcombine.low %v1258_v12, %v1225_v6 }
 0x11b   : > { %3025 = vmatprep.mubr.bf16.mxu1 %v1464_v28  ;;  %5953 = vmatpush3.bf16.msra.mxu1 %v6257_v9  ;;  %v7216_v9 = vcombine.low %v1226_v27, %v1227_v34  ;;  %v3497_v28 = vrot.slane %v3495_v46, 1  ;;  %v1502_v27 = vshrl.u32 %v7221_v49, 16  ;;  %v1504_v34 = vshll.u32 %v7221_v49, 16  ;;  %v1214_v46 = vld [vmem:[#allocation3 + $0x6c] sm:$0xf] }
 0x11c   : > { %5954 = vmatprep.subr.bf16.mxu1 %v6262_v54  ;;  %v1704_v53 = vrot.slane %v4987_v1, 1  ;;  %v1499_v1 = vrot.slane %v1497_v60, 1 }
 0x11d   : > { %v1586_v6 = vshrl.u32 %v7216_v9, 16  ;;  %v1588_v12 = vshll.u32 %v7216_v9, 16  ;;  %v3498_v33 = vor.u32 %v3497_v28, %v3493_v10  ;;  %v3334_v28 = vld [vmem:[#allocation3 + $0x30] sm:$0xe]  ;;  %v1506_v39 = vrot.slane %v1504_v34, 1 }
 0x11e   : > { %5929 = vmatmul.mubr.bf16.gmra.mxu0 %v1697_v21  ;;  %v1706_v20 = vsel %vm1661_vm10, %v1704_v53, %v1705_v7  ;;  %v1709_v53 = vsel %vm1661_vm10, %v1707_v5, %v1708_v13  ;;  %v3291_v13 = vld [vmem:[#allocation3 + $0x40] sm:$0xf] }
 0x11f   : > { %5932 = vmatprep.mubr.bf16.mxu0 %v1700_v29  ;;  %5955 = vmatpush3.bf16.msra.mxu1 %v6262_v54  ;;  %v1703_v54 = vsel %vm1661_vm10, %v1701_v24, %v1702_v31  ;;  %v1590_v19 = vrot.slane %v1588_v12, 1  ;;  %v1488_v29 = vsel %vm1404_vm9, %v1483_v52, %v1487_v0  ;;  %v3332_v24 = vld [vmem:[#allocation3 + $0x18] sm:$0xe]  ;;  %v1495_v31 = vor.u32 %v1494_v18, %v1490_v22 }
 0x120   : > { %v5117_v0 = vcombine.low %v3332_v24, %v7195_v58  ;;  %v3503_v22 = vsel %vm1404_vm9, %v3498_v33, %v3502_v17  ;;  %v3505_v18 = vshrl.u32 %v7230_v23, 16  ;;  %v3509_v52 = vrot.slane %v3507_v32, 1  ;;  %v3290_v17 = vld [vmem:[#allocation3 + $0x3c] sm:$0xf] }
 0x121   : > { %v1591_v7 = vor.u32 %v1590_v19, %v1586_v6  ;;  %v7254_v58 = vcombine.low %v1214_v46, %v7140_v55  ;;  %v1500_v5 = vsel %vm1404_vm9, %v1495_v31, %v1499_v1  ;;  %v3758_v32 = vrot.slane %v7261_v48, 1 }
 0x122   : > { %3026 = vmatmul.mubr.bf16.gmra.mxu1 %v7135_v43  ;;  %v1579_v43 = vor.u32 %v1578_v38, %v1574_v2  ;;  %v3512_v2 = vshll.u32 %v6249_v14, 16  ;;  %v6251_v38 = vld [vmem:[#allocation3 + $0x38] ss:$0 sps:$4 sm:$0x11]   ;;  %v3510_v42 = vor.u32 %v3509_v52, %v3505_v18  ;;  %v1507_v24 = vor.u32 %v1506_v39, %v1502_v27 }
 0x123   : > { %3033 = vmatprep.mubr.bf16.mxu1 %v1476_v30  ;;  %v3289_v30 = vld [vmem:[#allocation3 + $0x34] sm:$0xf]  ;;  %v7248_v45 = vsel %vm1404_vm9, %v1591_v7, %v1595_v61  ;;  %v3755_v12 = vrot.slane %v6251_v38, 1  ;;  %v1511_v31 = vrot.slane %v1509_v26, 1  ;;  %v1516_v34 = vshll.u32 %v7254_v58, 16 }
 0x124   : > { %v7235_v21 = vsel %vm1404_vm9, %v1579_v43, %v1583_v44  ;;  %v3514_v44 = vrot.slane %v3512_v2, 1  ;;  %v3335_v43 = vld [vmem:[#allocation3 + $0x3c] sm:$0xe]  ;;  %v5119_v6 = vcombine.low %v3334_v28, %v3289_v30  ;;  %v1216_v2 = vld [vmem:[#allocation3 + $0x78] sm:$0xf]  ;;  %v7279_v36 = vcombine.low %v3290_v17, %v3291_v13 }
 0x125   : > { %v5120_v1 = vcombine.low %v3335_v43, %v3291_v13  ;;  %v1521_v18 = vshll.u32 %v7149_v4, 16  ;;  %v1514_v52 = vshrl.u32 %v7254_v58, 16  ;;  %v1512_v26 = vsel %vm1404_vm9, %v1507_v24, %v1511_v31 }
 0x126   : > { %5933 = vmatmul.mubr.bf16.gmra.mxu0 %v1703_v54  ;;  %v7250_v54 = vcombine.low %v3288_v35, %v3289_v30  ;;  %v3524_v30 = vshll.u32 %v6251_v38, 16  ;;  %v3531_v28 = vshll.u32 %v7279_v36, 16  ;;  %v3536_v13 = vshll.u32 %v7261_v48, 16 }
 0x127   : > { %5936 = vmatprep.mubr.bf16.mxu0 %v1706_v20  ;;  %v3751_v20 = vrot.slane %v5118_v57, 1  ;;  %v1533_v24 = vshll.u32 %v7152_v8, 16  ;;  %v1220_v8 = vld [vmem:[#allocation3 + $0x90] sm:$0xf] }
 0x128   : > { %v3519_v25 = vshll.u32 %v7250_v54, 16  ;;  %v3517_v35 = vshrl.u32 %v7250_v54, 16 }
 0x129   : > { %v7267_v33 = vsel %vm1661_vm10, %v3751_v20, %v3752_v37  ;;  %v7291_v37 = vcombine.low %v1216_v2, %v7144_v3  ;;  %v1523_v3 = vrot.slane %v1521_v18, 1  ;;  %v1218_v20 = vld [vmem:[#allocation3 + $0x84] sm:$0xf]  ;;  %v1535_v18 = vrot.slane %v1533_v24, 1 }
 0x12a   : > { %3034 = vmatmul.mubr.bf16.gmra.mxu1 %v7157_v62  ;;  %v3748_v62 = vrot.slane %v5117_v0, 1  ;;  %v3515_v0 = vsel %vm1404_vm9, %v3510_v42, %v3514_v44  ;;  %v3292_v44 = vld [vmem:[#allocation3 + $0x48] sm:$0xf] }
 0x12b   : > { %3041 = vmatprep.mubr.bf16.mxu1 %v1488_v29  ;;  %v3754_v29 = vrot.slane %v5119_v6, 1 }
 0x12c   : > { %v7258_v60 = vsel %vm1661_vm10, %v3748_v62, %v3749_v59  ;;  %v3521_v59 = vrot.slane %v3519_v25, 1  ;;  %v1518_v62 = vrot.slane %v1516_v34, 1  ;;  %v3533_v25 = vrot.slane %v3531_v28, 1 }
 0x12d   : > { %v7276_v46 = vsel %vm1661_vm10, %v3754_v29, %v3755_v12 }
 0x12e   : > { %5937 = vmatmul.mubr.bf16.gmra.mxu0 %v1709_v53  ;;  %v3757_v53 = vrot.slane %v5120_v1, 1  ;;  %v3522_v38 = vor.u32 %v3521_v59, %v3517_v35  ;;  %v1519_v43 = vor.u32 %v1518_v62, %v1514_v52  ;;  %v1526_v1 = vshrl.u32 %v7291_v37, 16 }
 0x12f   : > { %v5452_v10 = vpop.f32.mrf.mxu0  ;;  %4037 = vmatprep.mubr.bf16.mxu0 %v3503_v22 }
 0x130   : > { %v7286_v22 = vsel %vm1661_vm10, %v3757_v53, %v3758_v32  ;;  %v1524_v48 = vsel %vm1404_vm9, %v1519_v43, %v1523_v3  ;;  %v3294_v53 = vld [vmem:[#allocation3 + $0x54] sm:$0xf]  ;;  %v1545_v3 = vshll.u32 %v7174_v40, 16 }
 0x131   : > { %v5453_v55 = vpop.f32.mrf.mxu0 }
 0x132   : > { %v7264_v14 = vadd.f32 %v5453_v55, %v5452_v10  ;;  %3042 = vmatmul.mubr.bf16.gmra.mxu1 %v7167_v16  ;;  %v3526_v10 = vrot.slane %v3524_v30, 1  ;;  %v3529_v55 = vshrl.u32 %v7279_v36, 16  ;;  %v3538_v30 = vrot.slane %v3536_v13, 1  ;;  %v7348_v13 = vld [vmem:[#allocation3 + $0x64] sm:$0xf] }
 0x133   : > { %v7269_v61 = vpop.f32.mrf.mxu0  ;;  %3049 = vmatprep.mubr.bf16.mxu1 %v1500_v5  ;;  %v1528_v5 = vshll.u32 %v7291_v37, 16 }
 0x134   : > { %v3527_v42 = vsel %vm1404_vm9, %v3522_v38, %v3526_v10  ;;  %v3534_v35 = vor.u32 %v3533_v25, %v3529_v55 }
 0x135   : > { %v5524_v19 = vpop.f32.mrf.mxu1  ;;  %v7283_v27 = vpop.f32.mrf.mxu0  ;;  %v1530_v32 = vrot.slane %v1528_v5, 1 }
 0x136   : > { %4038 = vmatmul.mubr.bf16.vlgmr.msra.gmra.mxu0 %v7203_v47  ;;  %v7298_v47 = vld [vmem:[#allocation3 + $0x4c] sm:$0xf] }
 0x137   : > { %v5525_v7 = vpop.f32.mrf.mxu1  ;;  %4045 = vmatprep.mubr.bf16.mxu0 %v3515_v0  ;;  %v1531_v59 = vor.u32 %v1530_v32, %v1526_v1  ;;  %v1547_v1 = vrot.slane %v1545_v3, 1  ;;  %v7374_v3 = vld [vmem:[#allocation3 + $0x70] sm:$0xf] }
 0x138   : > { %v7281_v16 = vadd.f32 %v5525_v7, %v5524_v19  ;;  %v7313_v19 = vcombine.low %v1218_v20, %v7164_v11  ;;  %v7321_v7 = vld [vmem:[#allocation3 + $0x50] ss:$0 sps:$4 sm:$0x11]  }
 0x139   : > { %v7294_v57 = vpop.f32.mrf.mxu1  ;;  %v3548_v10 = vshll.u32 %v7321_v7, 16  ;;  %v1536_v43 = vsel %vm1404_vm9, %v1531_v59, %v1535_v18 }
 0x13a   : > { %v5458_v39 = vpop.f32.mrf.mxu0  ;;  %3050 = vmatmul.mubr.bf16.gmra.mxu1 %v7187_v56  ;;  %v7310_v56 = vcombine.low %v3292_v44, %v7298_v47  ;;  %v1540_v52 = vshll.u32 %v7313_v19, 16 }
 0x13b   : > { %3057 = vmatprep.mubr.bf16.mxu1 %v1512_v26  ;;  %v7303_v6 = vpop.f32.mrf.mxu1  ;;  %v3539_v26 = vsel %vm1404_vm9, %v3534_v35, %v3538_v30  ;;  %v3550_v55 = vrot.slane %v3548_v10, 1 }
 0x13c   : > { %v5459_v4 = vpop.f32.mrf.mxu0  ;;  %v3543_v11 = vshll.u32 %v7310_v56, 16  ;;  %v3541_v62 = vshrl.u32 %v7310_v56, 16  ;;  %v1542_v44 = vrot.slane %v1540_v52, 1  ;;  %v1557_v52 = vshll.u32 %v7177_v41, 16 }
 0x13d   : > { %v7305_v12 = vadd.f32 %v5459_v4, %v5458_v39  ;;  %v1538_v39 = vshrl.u32 %v7313_v19, 16  ;;  %v7342_v4 = vld [vmem:[#allocation3 + $0x5c] ss:$0 sps:$4 sm:$0x11]  }
 0x13e   : > { %v5461_v17 = vpop.f32.mrf.mxu0  ;;  %4046 = vmatmul.mubr.bf16.gmra.mxu0 %v7230_v23  ;;  %v7324_v23 = vld [vmem:[#allocation3 + $0x58] sm:$0xf]  ;;  %v3545_v38 = vrot.slane %v3543_v11, 1  ;;  %v3560_v32 = vshll.u32 %v7342_v4, 16 }
 0x13f   : > { %4053 = vmatprep.mubr.bf16.mxu0 %v3527_v42  ;;  %v7334_v28 = vcombine.low %v3294_v53, %v7324_v23 }
 0x140   : > { %v5462_v29 = vpop.f32.mrf.mxu0  ;;  %v5530_v31 = vpop.f32.mrf.mxu1  ;;  %v3546_v5 = vor.u32 %v3545_v38, %v3541_v62  ;;  %v7370_v62 = vld [vmem:[#allocation3 + $0x68] ss:$0 sps:$4 sm:$0x11]   ;;  %v3562_v10 = vrot.slane %v3560_v32, 1 }
 0x141   : > { %v7318_v34 = vadd.f32 %v5462_v29, %v5461_v17  ;;  %v3555_v42 = vshll.u32 %v7334_v28, 16  ;;  %v1543_v29 = vor.u32 %v1542_v44, %v1538_v39  ;;  %v3553_v35 = vshrl.u32 %v7334_v28, 16  ;;  %v3298_v44 = vld [vmem:[#allocation3 + $0x6c] sm:$0xf] }
 0x142   : > { %v5531_v2 = vpop.f32.mrf.mxu1  ;;  %3058 = vmatmul.mubr.bf16.gmra.mxu1 %v7221_v49  ;;  %v7337_v49 = vcombine.low %v1220_v8, %v7170_v15  ;;  %v3296_v15 = vld [vmem:[#allocation3 + $0x60] sm:$0xf] }
 0x143   : > { %v7327_v0 = vadd.f32 %v5531_v2, %v5530_v31  ;;  %3065 = vmatprep.mubr.bf16.mxu1 %v1524_v48  ;;  %v1222_v31 = vld [vmem:[#allocation3 + $0x9c] sm:$0xf]  ;;  %v3551_v48 = vsel %vm1404_vm9, %v3546_v5, %v3550_v55  ;;  %v3557_v30 = vrot.slane %v3555_v42, 1  ;;  %v7358_v11 = vcombine.low %v3296_v15, %v7348_v13 }
 0x144   : > { %v7346_v25 = vpop.f32.mrf.mxu1  ;;  %v1552_v40 = vshll.u32 %v7337_v49, 16  ;;  %v1550_v2 = vshrl.u32 %v7337_v49, 16  ;;  %v7367_v18 = vcombine.low %v1222_v31, %v7184_v50  ;;  %v1559_v50 = vrot.slane %v1557_v52, 1  ;;  %v3300_v52 = vld [vmem:[#allocation3 + $0x78] sm:$0xf] }
 0x145   : > { %v3558_v38 = vor.u32 %v3557_v30, %v3553_v35  ;;  %v3567_v39 = vshll.u32 %v7358_v11, 16  ;;  %v3572_v5 = vshll.u32 %v7370_v62, 16 }
 0x146   : > { %4054 = vmatmul.mubr.bf16.gmra.mxu0 %v7250_v54  ;;  %v1554_v8 = vrot.slane %v1552_v40, 1  ;;  %v1564_v41 = vshll.u32 %v7367_v18, 16  ;;  %v7384_v40 = vcombine.low %v3298_v44, %v7374_v3 }
 0x147   : > { %4061 = vmatprep.mubr.bf16.mxu0 %v3539_v26  ;;  %v1548_v26 = vsel %vm1404_vm9, %v1543_v29, %v1547_v1  ;;  %v3563_v42 = vsel %vm1404_vm9, %v3558_v38, %v3562_v10  ;;  %v3569_v15 = vrot.slane %v3567_v39, 1  ;;  %v1562_v1 = vshrl.u32 %v7367_v18, 16 }
 0x148   : > { %v1566_v32 = vrot.slane %v1564_v41, 1  ;;  %v3574_v30 = vrot.slane %v3572_v5, 1  ;;  %v7408_v5 = vld [vmem:[#allocation3 + $0x80] ss:$0 sps:$4 sm:$0x11]  }
 0x149   : > { %v5464_v20 = vpop.f32.mrf.mxu0 }
 0x14a   : > { %3066 = vmatmul.mubr.bf16.gmra.mxu1 %v7254_v58  ;;  %v7360_v58 = vpop.f32.mrf.mxu1 }
 0x14b   : > { %v5465_v54 = vpop.f32.mrf.mxu0  ;;  %3073 = vmatprep.mubr.bf16.mxu1 %v1536_v43  ;;  %v3565_v43 = vshrl.u32 %v7358_v11, 16 }
 0x14c   : > { %v7352_v17 = vadd.f32 %v5465_v54, %v5464_v20  ;;  %v1555_v20 = vor.u32 %v1554_v8, %v1550_v2  ;;  %v3579_v2 = vshll.u32 %v7384_v40, 16 }
 0x14d   : > { %v5467_v24 = vpop.f32.mrf.mxu0  ;;  %v3570_v35 = vor.u32 %v3569_v15, %v3565_v43 }
 0x14e   : > { %4062 = vmatmul.mubr.bf16.gmra.mxu0 %v7279_v36  ;;  %v3581_v44 = vrot.slane %v3579_v2, 1 }
 0x14f   : > { %v5468_v53 = vpop.f32.mrf.mxu0  ;;  %4069 = vmatprep.mubr.bf16.mxu0 %v3551_v48  ;;  %v7390_v48 = vld [vmem:[#allocation3 + $0x74] ss:$0 sps:$4 sm:$0x11]  }
 0x150   : > { %v7364_v59 = vadd.f32 %v5468_v53, %v5467_v24  ;;  %v1569_v24 = vshll.u32 %v7191_v51, 16  ;;  %v3577_v51 = vshrl.u32 %v7384_v40, 16  ;;  %v3584_v10 = vshll.u32 %v7390_v48, 16 }
 0x152   : > { %3074 = vmatmul.mubr.bf16.gmra.mxu1 %v7291_v37  ;;  %v1560_v37 = vsel %vm1404_vm9, %v1555_v20, %v1559_v50  ;;  %v1571_v38 = vrot.slane %v1569_v24, 1 }
 0x153   : > { %v5536_v36 = vpop.f32.mrf.mxu1  ;;  %3081 = vmatprep.mubr.bf16.mxu1 %v1548_v26  ;;  %v1567_v26 = vor.u32 %v1566_v32, %v1562_v1  ;;  %v3302_v1 = vld [vmem:[#allocation3 + $0x84] sm:$0xf]  ;;  %v7413_v32 = vld [vmem:[#allocation3 + $0x88] sm:$0xf] }
 0x155   : > { %v5537_v55 = vpop.f32.mrf.mxu1 }
 0x156   : > { %v7381_v54 = vadd.f32 %v5537_v55, %v5536_v36  ;;  %4070 = vmatmul.mubr.bf16.gmra.mxu0 %v7310_v56  ;;  %v7395_v56 = vld [vmem:[#allocation3 + $0x7c] sm:$0xf]  ;;  %v3575_v36 = vsel %vm1404_vm9, %v3570_v35, %v3574_v30  ;;  %v3582_v55 = vor.u32 %v3581_v44, %v3577_v51 }
 0x157   : > { %v5539_v29 = vpop.f32.mrf.mxu1  ;;  %4077 = vmatprep.mubr.bf16.mxu0 %v3563_v42  ;;  %v7404_v50 = vcombine.low %v3300_v52, %v7395_v56  ;;  %v3586_v42 = vrot.slane %v3584_v10, 1  ;;  %v7422_v52 = vcombine.low %v3302_v1, %v7413_v32 }
 0x159   : > { %v5540_v31 = vpop.f32.mrf.mxu1  ;;  %v3587_v35 = vsel %vm1404_vm9, %v3582_v55, %v3586_v42  ;;  %v3589_v2 = vshrl.u32 %v7404_v50, 16 }
 0x15a   : > { %v7392_v53 = vadd.f32 %v5540_v31, %v5539_v29  ;;  %v5470_v8 = vpop.f32.mrf.mxu0  ;;  %3082 = vmatmul.mubr.bf16.gmra.mxu1 %v7313_v19  ;;  %v1572_v19 = vsel %vm1404_vm9, %v1567_v26, %v1571_v38  ;;  %v3596_v31 = vshll.u32 %v7408_v5, 16  ;;  %v7427_v38 = vld [vmem:[#allocation3 + $0x8c] ss:$0 sps:$4 sm:$0x11]  }
 0x15b   : > { %3089 = vmatprep.mubr.bf16.mxu1 %v1560_v37  ;;  %v3591_v37 = vshll.u32 %v7404_v50, 16 }
 0x15c   : > { %v5471_v39 = vpop.f32.mrf.mxu0  ;;  %v3598_v10 = vrot.slane %v3596_v31, 1 }
 0x15d   : > { %v7401_v20 = vadd.f32 %v5471_v39, %v5470_v8  ;;  %v3593_v8 = vrot.slane %v3591_v37, 1  ;;  %v3608_v37 = vshll.u32 %v7427_v38, 16 }
 0x15e   : > { %v5473_v41 = vpop.f32.mrf.mxu0  ;;  %4078 = vmatmul.mubr.bf16.gmra.mxu0 %v7334_v28 }
 0x15f   : > { %4085 = vmatprep.mubr.bf16.mxu0 %v3575_v36  ;;  %v3594_v51 = vor.u32 %v3593_v8, %v3589_v2  ;;  %v3603_v36 = vshll.u32 %v7422_v52, 16 }
 0x160   : > { %v5474_v43 = vpop.f32.mrf.mxu0 }
 0x161   : > { %v7410_v29 = vadd.f32 %v5474_v43, %v5473_v41  ;;  %v7433_v43 = vld [vmem:[#allocation3 + $0x94] sm:$0xf]  ;;  %v3599_v1 = vsel %vm1404_vm9, %v3594_v51, %v3598_v10  ;;  %v3605_v31 = vrot.slane %v3603_v36, 1 }
 0x162   : > { %v5542_v15 = vpop.f32.mrf.mxu1  ;;  %3090 = vmatmul.mubr.bf16.gmra.mxu1 %v7337_v49 }
 0x163   : > { %3097 = vmatprep.mubr.bf16.mxu1 %v1572_v19  ;;  %v3304_v19 = vld [vmem:[#allocation3 + $0x90] sm:$0xf] }
 0x164   : > { %v5543_v24 = vpop.f32.mrf.mxu1 }
 0x165   : > { %v7416_v28 = vadd.f32 %v5543_v24, %v5542_v15  ;;  %v3601_v15 = vshrl.u32 %v7422_v52, 16 }
 0x166   : > { %v5545_v30 = vpop.f32.mrf.mxu1  ;;  %4086 = vmatmul.mubr.bf16.gmra.mxu0 %v7358_v11 }
 0x167   : > { %4093 = vmatprep.mubr.bf16.mxu0 %v3587_v35  ;;  %v7444_v35 = vcombine.low %v3304_v19, %v7433_v43  ;;  %v3606_v10 = vor.u32 %v3605_v31, %v3601_v15  ;;  %v7480_v31 = vld [vmem:[#allocation3 + $0xa4] ss:$0 sps:$4 sm:$0x11]  }
 0x168   : > { %v5546_v26 = vpop.f32.mrf.mxu1 }
 0x169   : > { %v7425_v49 = vadd.f32 %v5546_v26, %v5545_v30  ;;  %v7454_v26 = vld [vmem:[#allocation3 + $0x98] ss:$0 sps:$4 sm:$0x11]  }
 0x16a   : > { %v5862_v39 = vpop.f32.mrf.mxu1  ;;  %3098 = vmatmul.mubr.bf16.gmra.mxu1 %v7367_v18  ;;  %v5457_v18 = vadd.f32 %v7283_v27, %v7269_v61  ;;  %v3306_v27 = vld [vmem:[#allocation3 + $0x9c] sm:$0xf] }
 0x16b   : > { %v5476_v44 = vpop.f32.mrf.mxu0  ;;  %v7431_v41 = vadd.f32 %v5862_v39, %v7305_v12  ;;  %3105 = vmatprep.mubr.bf16.mxu1 %v7235_v21  ;;  %v3610_v39 = vrot.slane %v3608_v37, 1  ;;  %v3613_v37 = vshrl.u32 %v7444_v35, 16 }
 0x16c   : > { %v2690_v11 = vpop.f32.mrf.mxu1 }
 0x16d   : > { %v5477_v55 = vpop.f32.mrf.mxu0  ;;  %v7438_v42 = vadd.f32 %v7264_v14, %v2690_v11  ;;  %v3620_v11 = vshll.u32 %v7454_v26, 16 }
 0x16e   : > { %v5478_v12 = vadd.f32 %v5477_v55, %v5476_v44  ;;  %v5863_v24 = vpop.f32.mrf.mxu1  ;;  %4094 = vmatmul.mubr.bf16.gmra.mxu0 %v7384_v40  ;;  %v3615_v44 = vshll.u32 %v7444_v35, 16  ;;  %v3611_v55 = vsel %vm1404_vm9, %v3606_v10, %v3610_v39  ;;  %v3308_v39 = vld [vmem:[#allocation3 + $0xa8] sm:$0xf] }
 0x16f   : > { %v5479_v21 = vpop.f32.mrf.mxu0  ;;  %v7449_v30 = vadd.f32 %v5863_v24, %v7318_v34  ;;  %4101 = vmatprep.mubr.bf16.mxu0 %v3599_v1  ;;  %v7460_v34 = vld [vmem:[#allocation3 + $0xa0] sm:$0xf] }
 0x170   : > { %v2693_v14 = vpop.f32.mrf.mxu1  ;;  %v7471_v1 = vcombine.low %v3306_v27, %v7460_v34 }
 0x171   : > { %v5480_v2 = vpop.f32.mrf.mxu0  ;;  %v7452_v8 = vadd.f32 %v5457_v18, %v2693_v14 }
 0x172   : > { %v5481_v51 = vadd.f32 %v5480_v2, %v5479_v21  ;;  %v5866_v36 = vpop.f32.mrf.mxu1  ;;  %3106 = vmatmul.mubr.bf16.gmra.mxu1 %v7206_v63  ;;  %v3622_v21 = vrot.slane %v3620_v11, 1  ;;  %v3627_v2 = vshll.u32 %v7471_v1, 16  ;;  %v3625_v27 = vshrl.u32 %v7471_v1, 16 }
 0x173   : > { %v7458_v61 = vadd.f32 %v5866_v36, %v7401_v20  ;;  %3113 = vmatprep.mubr.bf16.mxu1 %v7248_v45  ;;  %v3617_v20 = vrot.slane %v3615_v44, 1  ;;  %v7483_v36 = vld [vmem:[#allocation3 + $0xac] sm:$0xf] }
 0x174   : > { %v2706_v40 = vpop.f32.mrf.mxu1 }
 0x175   : > { %v7465_v19 = vadd.f32 %v7352_v17, %v2706_v40  ;;  %v3618_v18 = vor.u32 %v3617_v20, %v3613_v37  ;;  %v3632_v40 = vshll.u32 %v7480_v31, 16  ;;  %v3629_v20 = vrot.slane %v3627_v2, 1 }
 0x176   : > { %v5867_v15 = vpop.f32.mrf.mxu1  ;;  %4102 = vmatmul.mubr.bf16.gmra.mxu0 %v7404_v50 }
 0x177   : > { %v7474_v24 = vadd.f32 %v5867_v15, %v7410_v29  ;;  %4109 = vmatprep.mubr.bf16.mxu0 %v3611_v55  ;;  %v3623_v11 = vsel %vm1404_vm9, %v3618_v18, %v3622_v21  ;;  %v3336_v55 = vld [vmem:[#allocation3 + $0x48] sm:$0xe]  ;;  %v3634_v2 = vrot.slane %v3632_v40, 1 }
 0x178   : > { %v2709_v63 = vpop.f32.mrf.mxu1 }
 0x179   : > { %8193 = vst [vmem:[#allocation15_spill] sm:$0xff] %v7474_v24  ;;  %v5482_v45 = vpop.f32.mrf.mxu0  ;;  %v7478_v17 = vadd.f32 %v7364_v59, %v2709_v63  ;;  %v3312_v24 = vld [vmem:[#allocation3 + $0xc0] sm:$0xf] }
 0x17a   : > { %v5870_v14 = vpop.f32.mrf.mxu1  ;;  %3114 = vmatmul.mubr.bf16.gmra.mxu1 %v7216_v9  ;;  %v7495_v9 = vcombine.low %v3308_v39, %v7483_v36 }
 0x17b   : > { %v5483_v10 = vpop.f32.mrf.mxu0  ;;  %5956 = vmatprep.mubr.bf16.mxu1 %v7258_v60 }
 0x17c   : > { %v5484_v50 = vadd.f32 %v5483_v10, %v5482_v45  ;;  %v2722_v29 = vpop.f32.mrf.mxu1  ;;  %v5121_v45 = vcombine.low %v3336_v55, %v7298_v47  ;;  %v3639_v39 = vshll.u32 %v7495_v9, 16 }
 0x17d   : > { %v5485_v44 = vpop.f32.mrf.mxu0  ;;  %v7487_v59 = vadd.f32 %v5478_v12, %v2722_v29  ;;  %v7501_v29 = vld [vmem:[#allocation3 + $0xb0] ss:$0 sps:$4 sm:$0x11]  }
 0x17e   : > { %v7492_v15 = vadd.f32 %v5870_v14, %v5484_v50  ;;  %v5871_v37 = vpop.f32.mrf.mxu1  ;;  %4110 = vmatmul.mubr.bf16.gmra.mxu0 %v7422_v52  ;;  %v3630_v14 = vor.u32 %v3629_v20, %v3625_v27  ;;  %v3310_v50 = vld [vmem:[#allocation3 + $0xb4] sm:$0xf]  ;;  %v3760_v47 = vrot.slane %v5121_v45, 1  ;;  %v3338_v20 = vld [vmem:[#allocation3 + $0x60] sm:$0xe] }
 0x17f   : > { %8194 = vst [vmem:[#allocation16_spill] sm:$0xff] %v7487_v59  ;;  %v5486_v63 = vpop.f32.mrf.mxu0  ;;  %4117 = vmatprep.mubr.bf16.mxu0 %v3623_v11 }
 0x180   : > { %8195 = vst [vmem:[#allocation17_spill] sm:$0xff] %v7492_v15  ;;  %v5487_v60 = vadd.f32 %v5486_v63, %v5485_v44  ;;  %v2725_v12 = vpop.f32.mrf.mxu1  ;;  %v7506_v15 = vld [vmem:[#allocation3 + $0xb8] sm:$0xf]  ;;  %v3337_v44 = vld [vmem:[#allocation3 + $0x54] sm:$0xe]  ;;  %v3635_v40 = vsel %vm1404_vm9, %v3630_v14, %v3634_v2  ;;  %v3637_v63 = vshrl.u32 %v7495_v9, 16 }
 0x181   : > { %v7499_v10 = vadd.f32 %v5481_v51, %v2725_v12  ;;  %v5488_v18 = vpop.f32.mrf.mxu0  ;;  %v3761_v51 = vrot.slane %v7321_v7, 1  ;;  %v7522_v2 = vld [vmem:[#allocation3 + $0xbc] ss:$0 sps:$4 sm:$0x11]  }
 0x182   : > { %v7503_v21 = vadd.f32 %v5871_v37, %v5487_v60  ;;  %5957 = vmatmul.mubr.bf16.vlgmr.msra.gmra.mxu1 %v7267_v33  ;;  %v3644_v37 = vshll.u32 %v7501_v29, 16  ;;  %v3641_v60 = vrot.slane %v3639_v39, 1  ;;  %v7515_v33 = vcombine.low %v3310_v50, %v7506_v15 }
 0x183   : > { %8196 = vst [vmem:[#allocation18_spill] sm:$0xff] %v7499_v10  ;;  %v5489_v52 = vpop.f32.mrf.mxu0  ;;  %5960 = vmatprep.mubr.bf16.mxu1 %v7276_v46  ;;  %v5122_v46 = vcombine.low %v3337_v44, %v7324_v23  ;;  %v3762_v39 = vsel %vm1661_vm10, %v3760_v47, %v3761_v51  ;;  %v7526_v23 = vld [vmem:[#allocation3 + $0xc4] sm:$0xf]  ;;  %v3767_v47 = vrot.slane %v7370_v62, 1  ;;  %v3339_v51 = vld [vmem:[#allocation3 + $0x6c] sm:$0xe] }
 0x184   : > { %8197 = vst [vmem:[#allocation19_spill] sm:$0xff] %v7503_v21  ;;  %v5490_v11 = vadd.f32 %v5489_v52, %v5488_v18  ;;  %v5874_v55 = vpop.f32.mrf.mxu1  ;;  %v5123_v52 = vcombine.low %v3338_v20, %v7348_v13  ;;  %v3642_v50 = vor.u32 %v3641_v60, %v3637_v63  ;;  %v3646_v10 = vrot.slane %v3644_v37, 1 }
 0x185   : > { %v5491_v27 = vpop.f32.mrf.mxu0  ;;  %v3651_v59 = vshll.u32 %v7515_v33, 16  ;;  %v3763_v44 = vrot.slane %v5122_v46, 1  ;;  %v3656_v20 = vshll.u32 %v7522_v2, 16  ;;  %v5124_v62 = vcombine.low %v3339_v51, %v7374_v3  ;;  %v7551_v3 = vld [vmem:[#allocation3 + $0xd0] sm:$0xf] }
 0x186   : > { %v2738_v12 = vpop.f32.mrf.mxu1  ;;  %4118 = vmatmul.mubr.bf16.gmra.mxu0 %v7444_v35  ;;  %v3647_v60 = vsel %vm1404_vm9, %v3642_v50, %v3646_v10 }
 0x187   : > { %v5492_v7 = vpop.f32.mrf.mxu0  ;;  %v7519_v45 = vadd.f32 %v5490_v11, %v2738_v12  ;;  %4125 = vmatprep.mubr.bf16.mxu0 %v3635_v40  ;;  %v3764_v11 = vrot.slane %v7342_v4, 1  ;;  %v3766_v40 = vrot.slane %v5123_v52, 1  ;;  %v3340_v12 = vld [vmem:[#allocation3 + $0x78] sm:$0xe]  ;;  %v3653_v46 = vrot.slane %v3651_v59, 1 }
 0x188   : > { %v5493_v18 = vadd.f32 %v5492_v7, %v5491_v27  ;;  %v5875_v14 = vpop.f32.mrf.mxu1  ;;  %v7537_v4 = vcombine.low %v3312_v24, %v7526_v23  ;;  %v5125_v10 = vcombine.low %v3340_v12, %v7395_v56  ;;  %v3342_v12 = vld [vmem:[#allocation3 + $0x90] sm:$0xe] }
 0x189   : > { %v5494_v21 = vpop.f32.mrf.mxu0  ;;  %v3768_v59 = vsel %vm1661_vm10, %v3766_v40, %v3767_v47  ;;  %v3341_v40 = vld [vmem:[#allocation3 + $0x84] sm:$0xe] }
 0x18a   : > { %v2741_v35 = vpop.f32.mrf.mxu1  ;;  %5961 = vmatmul.mubr.bf16.gmra.mxu1 %v7286_v22  ;;  %v3649_v22 = vshrl.u32 %v7515_v33, 16  ;;  %v3772_v56 = vrot.slane %v5125_v10, 1 }
 0x18b   : > { %v5495_v13 = vpop.f32.mrf.mxu0  ;;  %v7530_v27 = vadd.f32 %v5493_v18, %v2741_v35  ;;  %5964 = vmatprep.mubr.bf16.mxu1 %v3762_v39  ;;  %v7545_v39 = vld [vmem:[#allocation3 + $0xc8] ss:$0 sps:$4 sm:$0x11]   ;;  %v3658_v35 = vrot.slane %v3656_v20, 1 }
 0x18c   : > { %v5496_v37 = vadd.f32 %v5495_v13, %v5494_v21  ;;  %v3765_v21 = vsel %vm1661_vm10, %v3763_v44, %v3764_v11  ;;  %v3654_v24 = vor.u32 %v3653_v46, %v3649_v22  ;;  %v3769_v44 = vrot.slane %v5124_v62, 1 }
 0x18d   : > { %v5497_v63 = vpop.f32.mrf.mxu0  ;;  %v3770_v11 = vrot.slane %v7390_v48, 1  ;;  %v3668_v20 = vshll.u32 %v7545_v39, 16  ;;  %v3661_v22 = vshrl.u32 %v7537_v4, 16  ;;  %v5126_v48 = vcombine.low %v3341_v40, %v7413_v32 }
 0x18e   : > { %v7539_v7 = vadd.f32 %v5874_v55, %v5496_v37  ;;  %4126 = vmatmul.mubr.bf16.gmra.mxu0 %v7471_v1  ;;  %v3663_v55 = vshll.u32 %v7537_v4, 16  ;;  %v3314_v1 = vld [vmem:[#allocation3 + $0xcc] sm:$0xf]  ;;  %v3773_v37 = vrot.slane %v7408_v5, 1 }
 0x18f   : > { %v5498_v18 = vpop.f32.mrf.mxu0  ;;  %4133 = vmatprep.mubr.bf16.mxu0 %v3647_v60  ;;  %v7559_v62 = vcombine.low %v3314_v1, %v7551_v3  ;;  %v3670_v1 = vrot.slane %v3668_v20, 1 }
 0x190   : > { %v5499_v52 = vadd.f32 %v5498_v18, %v5497_v63  ;;  %v3665_v46 = vrot.slane %v3663_v55, 1 }
 0x191   : > { %v5500_v50 = vpop.f32.mrf.mxu0 }
 0x192   : > { %v7549_v13 = vadd.f32 %v5875_v14, %v5499_v52  ;;  %5965 = vmatmul.mubr.bf16.gmra.mxu1 %v3765_v21  ;;  %v3659_v14 = vsel %vm1404_vm9, %v3654_v24, %v3658_v35  ;;  %v3771_v21 = vsel %vm1661_vm10, %v3769_v44, %v3770_v11  ;;  %v3774_v24 = vsel %vm1661_vm10, %v3772_v56, %v3773_v37  ;;  %v3343_v37 = vld [vmem:[#allocation3 + $0x9c] sm:$0xe] }
 0x193   : > { %v5501_v51 = vpop.f32.mrf.mxu0  ;;  %5968 = vmatprep.mubr.bf16.mxu1 %v3768_v59  ;;  %v5127_v59 = vcombine.low %v3342_v12, %v7433_v43  ;;  %v3666_v55 = vor.u32 %v3665_v46, %v3661_v22  ;;  %v3776_v44 = vrot.slane %v7427_v38, 1  ;;  %v3779_v43 = vrot.slane %v7454_v26, 1 }
 0x194   : > { %v5502_v47 = vadd.f32 %v5501_v51, %v5500_v50  ;;  %v7567_v50 = vld [vmem:[#allocation3 + $0xd4] ss:$0 sps:$4 sm:$0x11]   ;;  %v3775_v51 = vrot.slane %v5126_v48, 1  ;;  %v3673_v12 = vshrl.u32 %v7559_v62, 16 }
 0x195   : > { %v5503_v60 = vpop.f32.mrf.mxu0  ;;  %v3680_v56 = vshll.u32 %v7567_v50, 16  ;;  %v3671_v20 = vsel %vm1404_vm9, %v3666_v55, %v3670_v1  ;;  %v3344_v48 = vld [vmem:[#allocation3 + $0xa8] sm:$0xe] }
 0x196   : > { %4134 = vmatmul.mubr.bf16.gmra.mxu0 %v7495_v9  ;;  %v3675_v9 = vshll.u32 %v7559_v62, 16 }
 0x197   : > { %v5878_v63 = vpop.f32.mrf.mxu1  ;;  %v5504_v18 = vpop.f32.mrf.mxu0  ;;  %4141 = vmatprep.mubr.bf16.mxu0 %v3659_v14  ;;  %v3682_v55 = vrot.slane %v3680_v56, 1 }
 0x198   : > { %v5505_v10 = vadd.f32 %v5504_v18, %v5503_v60  ;;  %v3677_v22 = vrot.slane %v3675_v9, 1  ;;  %v5128_v18 = vcombine.low %v3343_v37, %v7460_v34 }
 0x199   : > { %v2754_v5 = vpop.f32.mrf.mxu1 }
 0x19a   : > { %v7564_v52 = vadd.f32 %v5502_v47, %v2754_v5  ;;  %5969 = vmatmul.mubr.bf16.gmra.mxu1 %v3771_v21  ;;  %v3778_v47 = vrot.slane %v5127_v59, 1  ;;  %v3777_v5 = vsel %vm1661_vm10, %v3775_v51, %v3776_v44  ;;  %v5129_v59 = vcombine.low %v3344_v48, %v7483_v36  ;;  %v3345_v51 = vld [vmem:[#allocation3 + $0xb4] sm:$0xe] }
 0x19b   : > { %v5879_v35 = vpop.f32.mrf.mxu1  ;;  %v5506_v32 = vpop.f32.mrf.mxu0  ;;  %5972 = vmatprep.mubr.bf16.mxu1 %v3774_v24  ;;  %v3678_v24 = vor.u32 %v3677_v22, %v3673_v12 }
 0x19c   : > { %v3780_v26 = vsel %vm1661_vm10, %v3778_v47, %v3779_v43  ;;  %v3784_v9 = vrot.slane %v5129_v59, 1  ;;  %v5130_v47 = vcombine.low %v3345_v51, %v7506_v15  ;;  %v3791_v15 = vrot.slane %v7545_v39, 1 }
 0x19d   : > { %v2757_v11 = vpop.f32.mrf.mxu1  ;;  %v5507_v60 = vpop.f32.mrf.mxu0  ;;  %v3683_v34 = vsel %vm1404_vm9, %v3678_v24, %v3682_v55  ;;  %v5535_v51 = vadd.f32 %v7360_v58, %v7346_v25 }
 0x19e   : > { %v7572_v40 = vadd.f32 %v5505_v10, %v2757_v11  ;;  %v5508_v14 = vadd.f32 %v5507_v60, %v5506_v32  ;;  %4142 = vmatmul.mubr.bf16.gmra.mxu0 %v7515_v33  ;;  %v3781_v33 = vrot.slane %v5128_v18, 1  ;;  %v3785_v32 = vrot.slane %v7501_v29, 1  ;;  %v3346_v11 = vld [vmem:[#allocation3 + $0xc0] sm:$0xe] }
 0x19f   : > { %v5509_v46 = vpop.f32.mrf.mxu0  ;;  %4149 = vmatprep.mubr.bf16.mxu0 %v3671_v20  ;;  %v3787_v37 = vrot.slane %v5130_v47, 1 }
 0x1a0   : > { %v7579_v38 = vadd.f32 %v5878_v63, %v5508_v14  ;;  %v3782_v63 = vrot.slane %v7480_v31, 1  ;;  %v3786_v43 = vsel %vm1661_vm10, %v3784_v9, %v3785_v32  ;;  %v5131_v31 = vcombine.low %v3346_v11, %v7526_v23 }
 0x1a1   : > { %v5510_v21 = vpop.f32.mrf.mxu0  ;;  %v3788_v14 = vrot.slane %v7522_v2, 1 }
 0x1a2   : > { %v5511_v10 = vadd.f32 %v5510_v21, %v5509_v46  ;;  %5973 = vmatmul.mubr.bf16.gmra.mxu1 %v3777_v5  ;;  %v3783_v36 = vsel %vm1661_vm10, %v3781_v33, %v3782_v63  ;;  %v3790_v22 = vrot.slane %v5131_v31, 1  ;;  %v3347_v46 = vld [vmem:[#allocation3 + $0xcc] sm:$0xe] }
 0x1a3   : > { %5976 = vmatprep.mubr.bf16.mxu1 %v3780_v26  ;;  %v3789_v23 = vsel %vm1661_vm10, %v3787_v37, %v3788_v14  ;;  %v5132_v18 = vcombine.low %v3347_v46, %v7551_v3 }
 0x1a4   : > { %v7585_v1 = vadd.f32 %v5879_v35, %v5511_v10  ;;  %v3792_v2 = vsel %vm1661_vm10, %v3790_v22, %v3791_v15 }
 0x1a5   : > { %v3793_v63 = vrot.slane %v5132_v18, 1 }
 0x1a6   : > { %v5512_v44 = vpop.f32.mrf.mxu0  ;;  %4150 = vmatmul.mubr.bf16.gmra.mxu0 %v7537_v4 }
 0x1a7   : > { %4157 = vmatprep.mubr.bf16.mxu0 %v3683_v34 }
 0x1a8   : > { %v5513_v35 = vpop.f32.mrf.mxu0 }
 0x1a9   : > { %v5514_v60 = vadd.f32 %v5513_v35, %v5512_v44 }
 0x1aa   : > { %v5515_v56 = vpop.f32.mrf.mxu0  ;;  %v5882_v29 = vpop.f32.mrf.mxu1  ;;  %5977 = vmatmul.mubr.bf16.gmra.mxu1 %v3783_v36 }
 0x1ab   : > { %5980 = vmatprep.mubr.bf16.mxu1 %v3786_v43 }
 0x1ac   : > { %v5516_v20 = vpop.f32.mrf.mxu0  ;;  %v2770_v4 = vpop.f32.mrf.mxu1 }
 0x1ad   : > { %v5517_v12 = vadd.f32 %v5516_v20, %v5515_v56  ;;  %v7597_v48 = vadd.f32 %v5514_v60, %v2770_v4 }
 0x1ae   : > { %v5883_v5 = vpop.f32.mrf.mxu1  ;;  %v5518_v26 = vpop.f32.mrf.mxu0  ;;  %4158 = vmatmul.mubr.bf16.gmra.mxu0 %v7559_v62  ;;  %v3794_v62 = vrot.slane %v7567_v50, 1 }
 0x1b0   : > { %v2773_v21 = vpop.f32.mrf.mxu1  ;;  %v5519_v10 = vpop.f32.mrf.mxu0  ;;  %v3795_v50 = vsel %vm1661_vm10, %v3793_v63, %v3794_v62 }
 0x1b1   : > { %v7603_v59 = vadd.f32 %v5517_v12, %v2773_v21  ;;  %v5520_v24 = vadd.f32 %v5519_v10, %v5518_v26 }
 0x1b2   : > { %v5886_v55 = vpop.f32.mrf.mxu1  ;;  %5981 = vmatmul.mubr.bf16.gmra.mxu1 %v3789_v23  ;;  %v5521_v39 = vpop.f32.mrf.mxu0 }
 0x1b3   : > { %v7606_v33 = vadd.f32 %v5886_v55, %v7327_v0  ;;  %5984 = vmatprep.mubr.bf16.mxu1 %v3792_v2  ;;  %v7609_v9 = vadd.f32 %v5882_v29, %v5520_v24  ;;  %v5529_v0 = vadd.f32 %v7303_v6, %v7294_v57 }
 0x1b4   : > { %v2786_v3 = vpop.f32.mrf.mxu1  ;;  %v5522_v32 = vpop.f32.mrf.mxu0 }
 0x1b5   : > { %v7614_v34 = vadd.f32 %v7281_v16, %v2786_v3  ;;  %v5523_v44 = vadd.f32 %v5522_v32, %v5521_v39 }
 0x1b6   : > { %v5887_v11 = vpop.f32.mrf.mxu1  ;;  %v5910_v36 = vpop.f32.mrf.mxu0 }
 0x1b7   : > { %v7618_v47 = vadd.f32 %v5887_v11, %v5535_v51  ;;  %v7621_v35 = vadd.f32 %v5883_v5, %v5523_v44 }
 0x1b8   : > { %v2789_v43 = vpop.f32.mrf.mxu1  ;;  %v3156_v60 = vpop.f32.mrf.mxu0 }
 0x1b9   : > { %v7623_v31 = vadd.f32 %v5529_v0, %v2789_v43 }
 0x1ba   : > { %v5890_v25 = vpop.f32.mrf.mxu1  ;;  %5985 = vmatmul.mubr.bf16.gmra.mxu1 %v3795_v50  ;;  %v5911_v16 = vpop.f32.mrf.mxu0 }
 0x1bb   : > { %v7626_v58 = vadd.f32 %v5890_v25, %v7416_v28 }
 0x1bc   : > { %v2802_v56 = vpop.f32.mrf.mxu1  ;;  %v3159_v29 = vpop.f32.mrf.mxu0 }
 0x1bd   : > { %v7629_v57 = vadd.f32 %v7381_v54, %v2802_v56 }
 0x1be   : > { %v5891_v6 = vpop.f32.mrf.mxu1  ;;  %v5914_v37 = vpop.f32.mrf.mxu0 }
 0x1bf   : > { %v7632_v14 = vadd.f32 %v5891_v6, %v7425_v49 }
 0x1c0   : > { %v2805_v20 = vpop.f32.mrf.mxu1  ;;  %v3172_v4 = vpop.f32.mrf.mxu0 }
 0x1c1   : > { %8198 = vst [vmem:[#allocation20_spill] sm:$0xff] %v7632_v14  ;;  %v7635_v12 = vadd.f32 %v7392_v53, %v2805_v20 }
 0x1c2   : > { %v5588_v22 = vpop.f32.mrf.mxu1  ;;  %v5915_v15 = vpop.f32.mrf.mxu0 }
 0x1c4   : > { %v5589_v46 = vpop.f32.mrf.mxu1  ;;  %v3175_v28 = vpop.f32.mrf.mxu0 }
 0x1c5   : > { %v5590_v5 = vadd.f32 %v5589_v46, %v5588_v22 }
 0x1c6   : > { %v5591_v26 = vpop.f32.mrf.mxu1  ;;  %v7637_v23 = vpop.f32.mrf.mxu0 }
 0x1c7   : > { %v2996_v54 = vadd.f32 %v5590_v5, %v7438_v42 }
 0x1c8   : > { %v5592_v18 = vpop.f32.mrf.mxu1  ;;  %v3188_v21 = vpop.f32.mrf.mxu0 }
 0x1c9   : > { %v7640_v2 = vadd.f32 %v3156_v60, %v2996_v54  ;;  %v5593_v49 = vadd.f32 %v5592_v18, %v5591_v26 }
 0x1ca   : > { %v5594_v10 = vpop.f32.mrf.mxu1  ;;  %v7642_v24 = vpop.f32.mrf.mxu0 }
 0x1cb   : > { %v2999_v53 = vadd.f32 %v5593_v49, %v7452_v8 }
 0x1cc   : > { %v5595_v55 = vpop.f32.mrf.mxu1  ;;  %v3191_v39 = vpop.f32.mrf.mxu0 }
 0x1cd   : > { %v7645_v63 = vadd.f32 %v3159_v29, %v2999_v53  ;;  %v5596_v62 = vadd.f32 %v5595_v55, %v5594_v10 }
 0x1ce   : > { %v5597_v3 = vpop.f32.mrf.mxu1  ;;  %v7647_v32 = vpop.f32.mrf.mxu0 }
 0x1cf   : > { %v3004_v42 = vadd.f32 %v5596_v62, %v7431_v41 }
 0x1d0   : > { %v5598_v51 = vpop.f32.mrf.mxu1  ;;  %v7650_v44 = vpop.f32.mrf.mxu0 }
 0x1d1   : > { %v5599_v11 = vadd.f32 %v5598_v51, %v5597_v3  ;;  %v7652_v0 = vadd.f32 %v5910_v36, %v3004_v42 }
 0x1d2   : > { %v5600_v50 = vpop.f32.mrf.mxu1  ;;  %v7654_v43 = vpop.f32.mrf.mxu0 }
 0x1d3   : > { %v3007_v8 = vadd.f32 %v5599_v11, %v7449_v30 }
 0x1d4   : > { %v5601_v60 = vpop.f32.mrf.mxu1  ;;  %v7657_v25 = vpop.f32.mrf.mxu0 }
 0x1d5   : > { %v5602_v56 = vadd.f32 %v5601_v60, %v5600_v50  ;;  %v7659_v29 = vadd.f32 %v5911_v16, %v3007_v8 }
 0x1d6   : > { %v5603_v6 = vpop.f32.mrf.mxu1  ;;  %v7661_v20 = vpop.f32.mrf.mxu0 }
 0x1d7   : > { %v3012_v41 = vadd.f32 %v5602_v56, %v7465_v19 }
 0x1d8   : > { %v5604_v22 = vpop.f32.mrf.mxu1  ;;  %v7664_v46 = vpop.f32.mrf.mxu0 }
 0x1d9   : > { %v5605_v36 = vadd.f32 %v5604_v22, %v5603_v6  ;;  %v7666_v5 = vadd.f32 %v3172_v4, %v3012_v41 }
 0x1da   : > { %v5606_v26 = vpop.f32.mrf.mxu1  ;;  %v7668_v54 = vpop.f32.mrf.mxu0 }
 0x1db   : > { %v3015_v30 = vadd.f32 %v5605_v36, %v7478_v17  ;;  %v8201_v17 = vld [vmem:[#allocation15_spill] sm:$0xff] }
 0x1dc   : > { %v5607_v18 = vpop.f32.mrf.mxu1  ;;  %v7671_v49 = vpop.f32.mrf.mxu0 }
 0x1dd   : > { %v5608_v16 = vadd.f32 %v5607_v18, %v5606_v26  ;;  %v7673_v10 = vadd.f32 %v3175_v28, %v3015_v30 }
 0x1de   : > { %v5609_v53 = vpop.f32.mrf.mxu1  ;;  %v7675_v55 = vpop.f32.mrf.mxu0 }
 0x1df   : > { %8199 = vst [vmem:[#allocation21_spill] sm:$0xff] %v7675_v55  ;;  %v3020_v19 = vadd.f32 %v5608_v16, %v7458_v61  ;;  %v8203_v61 = vld [vmem:[#allocation16_spill] sm:$0xff] }
 0x1e0   : > { %v5610_v62 = vpop.f32.mrf.mxu1  ;;  %v7678_v3 = vpop.f32.mrf.mxu0 }
 0x1e1   : > { %v5611_v4 = vadd.f32 %v5610_v62, %v5609_v53  ;;  %v7680_v42 = vadd.f32 %v5914_v37, %v3020_v19  ;;  %v8205_v53 = vld [vmem:[#allocation18_spill] sm:$0xff] }
 0x1e2   : > { %v5612_v51 = vpop.f32.mrf.mxu1  ;;  %v7682_v11 = vpop.f32.mrf.mxu0 }
 0x1e3   : > { %8200 = vst [vmem:[#allocation22_spill] sm:$0xff] %v7682_v11  ;;  %v3023_v50 = vadd.f32 %v5611_v4, %v8201_v17 }
 0x1e4   : > { %v5613_v8 = vpop.f32.mrf.mxu1  ;;  %v7685_v60 = vpop.f32.mrf.mxu0 }
 0x1e5   : > { %v5614_v28 = vadd.f32 %v5613_v8, %v5612_v51  ;;  %v7687_v56 = vadd.f32 %v5915_v15, %v3023_v50  ;;  %v8207_v8 = vld [vmem:[#allocation17_spill] sm:$0xff] }
 0x1e6   : > { %v5615_v6 = vpop.f32.mrf.mxu1  ;;  %v7689_v41 = vpop.f32.mrf.mxu0 }
 0x1e7   : > { %8202 = vst [vmem:[#allocation15_spill] sm:$0xff] %v7689_v41  ;;  %v3028_v22 = vadd.f32 %v5614_v28, %v8203_v61 }
 0x1e8   : > { %v5616_v36 = vpop.f32.mrf.mxu1  ;;  %v7692_v26 = vpop.f32.mrf.mxu0 }
 0x1e9   : > { %v5617_v37 = vadd.f32 %v5616_v36, %v5615_v6  ;;  %v7694_v30 = vadd.f32 %v3188_v21, %v3028_v22 }
 0x1ea   : > { %v5618_v18 = vpop.f32.mrf.mxu1  ;;  %v7696_v16 = vpop.f32.mrf.mxu0 }
 0x1eb   : > { %8204 = vst [vmem:[#allocation16_spill] sm:$0xff] %v7696_v16  ;;  %v3031_v19 = vadd.f32 %v5617_v37, %v8205_v53  ;;  %v8210_v53 = vld [vmem:[#allocation19_spill] sm:$0xff] }
 0x1ec   : > { %v5619_v62 = vpop.f32.mrf.mxu1  ;;  %v7699_v4 = vpop.f32.mrf.mxu0 }
 0x1ed   : > { %v5620_v15 = vadd.f32 %v5619_v62, %v5618_v18  ;;  %v7701_v51 = vadd.f32 %v3191_v39, %v3031_v19 }
 0x1ee   : > { %v5621_v17 = vpop.f32.mrf.mxu1  ;;  %v7703_v50 = vpop.f32.mrf.mxu0 }
 0x1ef   : > { %8206 = vst [vmem:[#allocation18_spill] sm:$0xff] %v7703_v50  ;;  %v3036_v28 = vadd.f32 %v5620_v15, %v8207_v8 }
 0x1f0   : > { %v5622_v61 = vpop.f32.mrf.mxu1  ;;  %v7706_v6 = vpop.f32.mrf.mxu0 }
 0x1f1   : > { %8208 = vst [vmem:[#allocation17_spill] sm:$0xff] %v7706_v6  ;;  %v5623_v21 = vadd.f32 %v5622_v61, %v5621_v17  ;;  %v7709_v22 = vadd.f32 %v7637_v23, %v3036_v28 }
 0x1f2   : > { %v5624_v36 = vpop.f32.mrf.mxu1  ;;  %v7711_v37 = vpop.f32.mrf.mxu0 }
 0x1f3   : > { %8209 = vst [vmem:[#allocation23_spill] sm:$0xff] %v7711_v37  ;;  %v3039_v14 = vadd.f32 %v5623_v21, %v8210_v53 }
 0x1f4   : > { %v5625_v18 = vpop.f32.mrf.mxu1  ;;  %v7714_v39 = vpop.f32.mrf.mxu0 }
 0x1f5   : > { %8211 = vst [vmem:[#allocation19_spill] sm:$0xff] %v7714_v39  ;;  %v5626_v19 = vadd.f32 %v5625_v18, %v5624_v36  ;;  %v7717_v62 = vadd.f32 %v7642_v24, %v3039_v14 }
 0x1f6   : > { %v5627_v15 = vpop.f32.mrf.mxu1  ;;  %v5724_v8 = vpop.f32.mrf.mxu0 }
 0x1f7   : > { %v3044_v6 = vadd.f32 %v5626_v19, %v7519_v45 }
 0x1f8   : > { %v5628_v17 = vpop.f32.mrf.mxu1  ;;  %v5725_v61 = vpop.f32.mrf.mxu0 }
 0x1f9   : > { %v5629_v23 = vadd.f32 %v5628_v17, %v5627_v15  ;;  %v7720_v28 = vadd.f32 %v5725_v61, %v5724_v8  ;;  %v7723_v37 = vadd.f32 %v7650_v44, %v3044_v6 }
 0x1fa   : > { %v5630_v21 = vpop.f32.mrf.mxu1  ;;  %v5727_v53 = vpop.f32.mrf.mxu0 }
 0x1fb   : > { %v3047_v39 = vadd.f32 %v5629_v23, %v7530_v27 }
 0x1fc   : > { %v5631_v36 = vpop.f32.mrf.mxu1  ;;  %v5728_v18 = vpop.f32.mrf.mxu0 }
 0x1fd   : > { %v5632_v14 = vadd.f32 %v5631_v36, %v5630_v21  ;;  %v7726_v24 = vadd.f32 %v5728_v18, %v5727_v53  ;;  %v7729_v50 = vadd.f32 %v7657_v25, %v3047_v39 }
 0x1fe   : > { %v5633_v45 = vpop.f32.mrf.mxu1  ;;  %v7731_v19 = vpop.f32.mrf.mxu0 }
 0x1ff   : > { %v3052_v15 = vadd.f32 %v5632_v14, %v7539_v7 }
 0x200   : > { %v5634_v8 = vpop.f32.mrf.mxu1  ;;  %v7734_v44 = vpop.f32.mrf.mxu0 }
 0x201   : > { %v5635_v6 = vadd.f32 %v5634_v8, %v5633_v45  ;;  %v7737_v17 = vadd.f32 %v7647_v32, %v3052_v15 }
 0x202   : > { %v5636_v27 = vpop.f32.mrf.mxu1  ;;  %v7739_v61 = vpop.f32.mrf.mxu0 }
 0x203   : > { %v3055_v23 = vadd.f32 %v5635_v6, %v7549_v13 }
 0x204   : > { %v5637_v21 = vpop.f32.mrf.mxu1  ;;  %v7742_v25 = vpop.f32.mrf.mxu0 }
 0x205   : > { %v5638_v39 = vadd.f32 %v5637_v21, %v5636_v27  ;;  %v7745_v53 = vadd.f32 %v7654_v43, %v3055_v23 }
 0x206   : > { %v5639_v7 = vpop.f32.mrf.mxu1  ;;  %v7747_v36 = vpop.f32.mrf.mxu0 }
 0x207   : > { %v3060_v18 = vadd.f32 %v5638_v39, %v7564_v52 }
 0x208   : > { %v5640_v14 = vpop.f32.mrf.mxu1  ;;  %v7750_v32 = vpop.f32.mrf.mxu0 }
 0x209   : > { %v5641_v45 = vadd.f32 %v5640_v14, %v5639_v7  ;;  %v7753_v15 = vadd.f32 %v7664_v46, %v3060_v18 }
 0x20a   : > { %v5642_v13 = vpop.f32.mrf.mxu1  ;;  %v7755_v8 = vpop.f32.mrf.mxu0 }
 0x20b   : > { %8212 = vst [vmem:[#allocation24_spill] sm:$0xff] %v7753_v15  ;;  %v3063_v6 = vadd.f32 %v5641_v45, %v7572_v40 }
 0x20c   : > { %v5643_v27 = vpop.f32.mrf.mxu1  ;;  %v7758_v43 = vpop.f32.mrf.mxu0 }
 0x20d   : > { %v5644_v23 = vadd.f32 %v5643_v27, %v5642_v13  ;;  %v7761_v21 = vadd.f32 %v7671_v49, %v3063_v6 }
 0x20e   : > { %v5645_v52 = vpop.f32.mrf.mxu1  ;;  %v7763_v39 = vpop.f32.mrf.mxu0 }
 0x20f   : > { %8213 = vst [vmem:[#allocation25_spill] sm:$0xff] %v7761_v21  ;;  %v3068_v7 = vadd.f32 %v5644_v23, %v7579_v38 }
 0x210   : > { %v5646_v14 = vpop.f32.mrf.mxu1  ;;  %v7766_v46 = vpop.f32.mrf.mxu0 }
 0x211   : > { %v5647_v18 = vadd.f32 %v5646_v14, %v5645_v52  ;;  %v7769_v16 = vadd.f32 %v7661_v20, %v3068_v7 }
 0x212   : > { %v5648_v40 = vpop.f32.mrf.mxu1  ;;  %v7771_v45 = vpop.f32.mrf.mxu0 }
 0x213   : > { %8214 = vst [vmem:[#allocation26_spill] sm:$0xff] %v7769_v16  ;;  %v3071_v13 = vadd.f32 %v5647_v18, %v7585_v1 }
 0x214   : > { %v5649_v27 = vpop.f32.mrf.mxu1  ;;  %v7774_v49 = vpop.f32.mrf.mxu0 }
 0x215   : > { %v5650_v6 = vadd.f32 %v5649_v27, %v5648_v40  ;;  %v7777_v41 = vadd.f32 %v7668_v54, %v3071_v13 }
 0x216   : > { %v5651_v38 = vpop.f32.mrf.mxu1  ;;  %v7779_v23 = vpop.f32.mrf.mxu0 }
 0x217   : > { %8215 = vst [vmem:[#allocation27_spill] sm:$0xff] %v7777_v41  ;;  %v3076_v52 = vadd.f32 %v5650_v6, %v7597_v48 }
 0x218   : > { %v5652_v14 = vpop.f32.mrf.mxu1  ;;  %v7782_v20 = vpop.f32.mrf.mxu0 }
 0x219   : > { %v5653_v7 = vadd.f32 %v5652_v14, %v5651_v38  ;;  %v7785_v11 = vadd.f32 %v7678_v3, %v3076_v52 }
 0x21a   : > { %v5654_v1 = vpop.f32.mrf.mxu1  ;;  %v7787_v18 = vpop.f32.mrf.mxu0 }
 0x21b   : > { %8216 = vst [vmem:[#allocation28_spill] sm:$0xff] %v7785_v11  ;;  %v3079_v40 = vadd.f32 %v5653_v7, %v7603_v59 }
 0x21c   : > { %v5655_v27 = vpop.f32.mrf.mxu1  ;;  %v7790_v54 = vpop.f32.mrf.mxu0 }
 0x21d   : > { %v5656_v13 = vadd.f32 %v5655_v27, %v5654_v1  ;;  %v7793_v21 = vadd.f32 %v7685_v60, %v3079_v40 }
 0x21e   : > { %v5657_v48 = vpop.f32.mrf.mxu1  ;;  %v7795_v6 = vpop.f32.mrf.mxu0 }
 0x21f   : > { %8217 = vst [vmem:[#allocation29_spill] sm:$0xff] %v7793_v21  ;;  %v7798_v38 = vadd.f32 %v5656_v13, %v7609_v9 }
 0x220   : > { %v5658_v3 = vpop.f32.mrf.mxu1  ;;  %v7800_v52 = vpop.f32.mrf.mxu0 }
 0x221   : > { %8218 = vst [vmem:[#allocation30_spill] sm:$0xff] %v7798_v38  ;;  %v5659_v14 = vadd.f32 %v5658_v3, %v5657_v48 }
 0x222   : > { %v5660_v11 = vpop.f32.mrf.mxu1  ;;  %v7802_v55 = vpop.f32.mrf.mxu0 }
 0x223   : > { %v7805_v59 = vadd.f32 %v5659_v14, %v7621_v35 }
 0x224   : > { %v5661_v7 = vpop.f32.mrf.mxu1  ;;  %v7807_v1 = vpop.f32.mrf.mxu0 }
 0x225   : > { %8219 = vst [vmem:[#allocation31_spill] sm:$0xff] %v7805_v59  ;;  %v5662_v60 = vadd.f32 %v5661_v7, %v5660_v11 }
 0x226   : > { %v5663_v40 = vpop.f32.mrf.mxu1  ;;  %v7809_v27 = vpop.f32.mrf.mxu0 }
 0x227   : > { %v3092_v9 = vadd.f32 %v5662_v60, %v7614_v34 }
 0x228   : > { %v5664_v13 = vpop.f32.mrf.mxu1  ;;  %v7812_v21 = vpop.f32.mrf.mxu0 }
 0x229   : > { %v5665_v38 = vadd.f32 %v5664_v13, %v5663_v40  ;;  %v7815_v48 = vadd.f32 %v7692_v26, %v3092_v9 }
 0x22a   : > { %v5666_v3 = vpop.f32.mrf.mxu1  ;;  %v7817_v41 = vpop.f32.mrf.mxu0 }
 0x22b   : > { %8220 = vst [vmem:[#allocation32_spill] sm:$0xff] %v7815_v48  ;;  %v3095_v35 = vadd.f32 %v5665_v38, %v7623_v31 }
 0x22c   : > { %v5667_v14 = vpop.f32.mrf.mxu1  ;;  %v7820_v59 = vpop.f32.mrf.mxu0 }
 0x22d   : > { %v5668_v11 = vadd.f32 %v5667_v14, %v5666_v3  ;;  %v7823_v7 = vadd.f32 %v7699_v4, %v3095_v35 }
 0x22e   : > { %v5669_v34 = vpop.f32.mrf.mxu1  ;;  %v7825_v60 = vpop.f32.mrf.mxu0 }
 0x22f   : > { %8221 = vst [vmem:[#allocation33_spill] sm:$0xff] %v7823_v7  ;;  %v7828_v40 = vadd.f32 %v5668_v11, %v7606_v33 }
 0x230   : > { %v5670_v26 = vpop.f32.mrf.mxu1  ;;  %v7830_v9 = vpop.f32.mrf.mxu0 }
 0x231   : > { %8222 = vst [vmem:[#allocation34_spill] sm:$0xff] %v7828_v40  ;;  %v5671_v13 = vadd.f32 %v5670_v26, %v5669_v34 }
 0x232   : > { %v5672_v48 = vpop.f32.mrf.mxu1  ;;  %v7832_v15 = vpop.f32.mrf.mxu0 }
 0x233   : > { %v7835_v31 = vadd.f32 %v5671_v13, %v7618_v47 }
 0x234   : > { %v5673_v38 = vpop.f32.mrf.mxu1  ;;  %v7837_v3 = vpop.f32.mrf.mxu0 }
 0x235   : > { %8223 = vst [vmem:[#allocation35_spill] sm:$0xff] %v7835_v31  ;;  %v5674_v4 = vadd.f32 %v5673_v38, %v5672_v48 }
 0x236   : > { %v5675_v35 = vpop.f32.mrf.mxu1  ;;  %v7839_v14 = vpop.f32.mrf.mxu0 }
 0x237   : > { %v7842_v33 = vadd.f32 %v5674_v4, %v7629_v57 }
 0x238   : > { %v5676_v11 = vpop.f32.mrf.mxu1  ;;  %v7844_v7 = vpop.f32.mrf.mxu0 }
 0x239   : > { %8224 = vst [vmem:[#allocation36_spill] sm:$0xff] %v7842_v33  ;;  %v5677_v34 = vadd.f32 %v5676_v11, %v5675_v35  ;;  %v5732_v11 = vadd.f32 %v7734_v44, %v7731_v19 }
 0x23a   : > { %v5678_v26 = vpop.f32.mrf.mxu1  ;;  %v7846_v40 = vpop.f32.mrf.mxu0 }
 0x23b   : > { %8225 = vst [vmem:[#allocation37_spill] sm:$0xff] %v7846_v40  ;;  %v7849_v47 = vadd.f32 %v5677_v34, %v7635_v12 }
 0x23c   : > { %v5679_v13 = vpop.f32.mrf.mxu1  ;;  %v7851_v31 = vpop.f32.mrf.mxu0 }
 0x23d   : > { %8226 = vst [vmem:[#allocation38_spill] sm:$0xff] %v7849_v47  ;;  %8227 = vst [vmem:[#allocation39_spill] sm:$0xff] %v7851_v31  ;;  %v5680_v48 = vadd.f32 %v5679_v13, %v5678_v26  ;;  %v7871_v26 = vld [vmem:[%s8161_s4] ss:$0 sm:$0xff] }
 0x23e   : > { %v7853_v38 = vpop.f32.mrf.mxu1  ;;  %v7855_v16 = vpop.f32.mrf.mxu0 }
 0x23f   : > { %8228 = vst [vmem:[#allocation40_spill] sm:$0xff] %v7853_v38  ;;  %v7858_v57 = vadd.f32 %v5680_v48, %v7626_v58  ;;  %v5735_v58 = vadd.f32 %v7742_v25, %v7739_v61  ;;  %v5744_v25 = vadd.f32 %v7766_v46, %v7763_v39  ;;  %v5747_v39 = vadd.f32 %v7774_v49, %v7771_v45 }
 0x240   : > { %v7860_v4 = vpop.f32.mrf.mxu1  ;;  %v7862_v35 = vpop.f32.mrf.mxu0  ;;  %v5741_v45 = vadd.f32 %v7758_v43, %v7755_v8  ;;  %v5756_v49 = vadd.f32 %v7800_v52, %v7795_v6  ;;  %v5750_v43 = vadd.f32 %v7782_v20, %v7779_v23 }
 0x241   : > { %8229 = vst [vmem:[#allocation41_spill] sm:$0xff] %v7858_v57  ;;  %8230 = vst [vmem:[#allocation42_spill] sm:$0xff] %v7860_v4 }
 0x242   : > { %v5958_v12 = vpop.f32.mrf.mxu1  ;;  %v7866_v34 = vpop.f32.mrf.mxu0 }
 0x243   : > { %v4209_v47 = vadd.f32 %v5958_v12, %v5732_v11  ;;  %v7885_v12 = vld [vmem:[%s8162_s5] ss:$0 sm:$0xff] }
 0x244   : > { %v4200_v13 = vpop.f32.mrf.mxu1  ;;  %v7873_v33 = vpop.f32.mrf.mxu0 }
 0x245   : > { %v4329_v48 = vadd.f32 %v4209_v47, %v7652_v0  ;;  %v4201_v57 = vadd.f32 %v7720_v28, %v4200_v13 }
 0x246   : > { %v5959_v19 = vpop.f32.mrf.mxu1  ;;  %v7879_v44 = vpop.f32.mrf.mxu0 }
 0x247   : > { %v4499_v11 = vmul.f32 %v7871_v26, %v4329_v48  ;;  %v4327_v4 = vadd.f32 %v4201_v57, %v7640_v2  ;;  %v4212_v38 = vadd.f32 %v5959_v19, %v5735_v58  ;;  %v5738_v2 = vadd.f32 %v7750_v32, %v7747_v36 }
 0x248   : > { %v4203_v31 = vpop.f32.mrf.mxu1  ;;  %v7888_v40 = vpop.f32.mrf.mxu0 }
 0x249   : > { %v4497_v0 = vmul.f32 %v7871_v26, %v4327_v4  ;;  %v4330_v28 = vadd.f32 %v4212_v38, %v7659_v29  ;;  %v4204_v61 = vadd.f32 %v7726_v24, %v4203_v31  ;;  %v4538_v47 = vadd.f32 %v7885_v12, %v4499_v11 }
 0x24a   : > { %v5962_v13 = vpop.f32.mrf.mxu1  ;;  %v7896_v48 = vpop.f32.mrf.mxu0 }
 0x24b   : > { %v4500_v57 = vmul.f32 %v7871_v26, %v4330_v28  ;;  %v4328_v58 = vadd.f32 %v4204_v61, %v7645_v63  ;;  %v4536_v4 = vadd.f32 %v7885_v12, %v4497_v0  ;;  %v4225_v29 = vadd.f32 %v5962_v13, %v5744_v25 }
 0x24c   : > { %v4216_v38 = vpop.f32.mrf.mxu1  ;;  %v7903_v24 = vpop.f32.mrf.mxu0  ;;  %v4570_v11 = vmax.f32 %v4538_v47, 0.0 }
 0x24d   : > { %v4539_v46 = vadd.f32 %v7885_v12, %v4500_v57  ;;  %v4498_v31 = vmul.f32 %v7871_v26, %v4328_v58  ;;  %v4217_v19 = vadd.f32 %v5738_v2, %v4216_v38  ;;  %v4333_v36 = vadd.f32 %v4225_v29, %v7680_v42 }
 0x24e   : > { %v5963_v32 = vpop.f32.mrf.mxu1  ;;  %v7910_v28 = vpop.f32.mrf.mxu0  ;;  %v4568_v13 = vmax.f32 %v4536_v4, 0.0 }
 0x24f   : > { %v4571_v63 = vmax.f32 %v4539_v46, 0.0  ;;  %v4537_v0 = vadd.f32 %v7885_v12, %v4498_v31  ;;  %v4331_v61 = vadd.f32 %v4217_v19, %v7666_v5  ;;  %v4228_v25 = vadd.f32 %v5963_v32, %v5747_v39 }
 0x250   : > { %v4503_v47 = vmul.f32 %v7871_v26, %v4333_v36  ;;  %v4219_v42 = vpop.f32.mrf.mxu1  ;;  %v7919_v2 = vpop.f32.mrf.mxu0 }
 0x251   : > { %v5334_v57 = vpack.c.bf16 %v4571_v63, %v4570_v11  ;;  %v4569_v58 = vmax.f32 %v4537_v0, 0.0  ;;  %v4501_v29 = vmul.f32 %v7871_v26, %v4331_v61  ;;  %v4334_v5 = vadd.f32 %v4228_v25, %v7687_v56 }
 0x252   : > { %v4542_v38 = vadd.f32 %v7885_v12, %v4503_v47  ;;  %v4220_v39 = vadd.f32 %v5741_v45, %v4219_v42  ;;  %v5966_v46 = vpop.f32.mrf.mxu1  ;;  %v7924_v8 = vpop.f32.mrf.mxu0  ;;  %v5759_v56 = vadd.f32 %v7807_v1, %v7802_v55  ;;  %v5768_v42 = vadd.f32 %v7830_v9, %v7825_v60 }
 0x253   : > { %5421 = vst [vmem:[%s7930_s20 + $0x8] sm:$0xff] %v5334_v57   ;;  %v5329_v6 = vpack.c.bf16 %v4569_v58, %v4568_v13  ;;  %v4504_v52 = vmul.f32 %v7871_v26, %v4334_v5  ;;  %v4241_v4 = vadd.f32 %v5966_v46, %v5756_v49  ;;  %v4540_v23 = vadd.f32 %v7885_v12, %v4501_v29 }
 0x254   : > { %v4332_v31 = vadd.f32 %v4220_v39, %v7673_v10  ;;  %v4232_v19 = vpop.f32.mrf.mxu1  ;;  %v7937_v11 = vpop.f32.mrf.mxu0  ;;  %v4574_v63 = vmax.f32 %v4542_v38, 0.0  ;;  %v5753_v49 = vadd.f32 %v7790_v54, %v7787_v18  ;;  %v5762_v46 = vadd.f32 %v7812_v21, %v7809_v27 }
 0x255   : > { %5330 = vst [vmem:[%s7930_s20] sm:$0xff] %v5329_v6   ;;  %v4543_v20 = vadd.f32 %v7885_v12, %v4504_v52  ;;  %v4337_v36 = vadd.f32 %v4241_v4, %v7709_v22  ;;  %v4233_v32 = vadd.f32 %v5750_v43, %v4232_v19  ;;  %v4572_v57 = vmax.f32 %v4540_v23, 0.0 }
 0x256   : > { %v4502_v0 = vmul.f32 %v7871_v26, %v4332_v31  ;;  %v5967_v61 = vpop.f32.mrf.mxu1  ;;  %v7944_v25 = vpop.f32.mrf.mxu0  ;;  %v5771_v4 = vadd.f32 %v7837_v3, %v7832_v15 }
 0x257   : > { %v4575_v55 = vmax.f32 %v4543_v20, 0.0  ;;  %v4507_v10 = vmul.f32 %v7871_v26, %v4337_v36  ;;  %v4335_v1 = vadd.f32 %v4233_v32, %v7694_v30  ;;  %v4244_v45 = vadd.f32 %v5967_v61, %v5759_v56 }
 0x258   : > { %v4541_v13 = vadd.f32 %v7885_v12, %v4502_v0  ;;  %v4235_v22 = vpop.f32.mrf.mxu1  ;;  %v7951_v47 = vpop.f32.mrf.mxu0 }
 0x259   : > { %v5344_v58 = vpack.c.bf16 %v4575_v55, %v4574_v63  ;;  %v4338_v29 = vadd.f32 %v4244_v45, %v7717_v62  ;;  %v4546_v30 = vadd.f32 %v7885_v12, %v4507_v10  ;;  %v4505_v38 = vmul.f32 %v7871_v26, %v4335_v1 }
 0x25a   : > { %v4573_v5 = vmax.f32 %v4541_v13, 0.0  ;;  %v4236_v39 = vadd.f32 %v5753_v49, %v4235_v22  ;;  %v5970_v18 = vpop.f32.mrf.mxu1  ;;  %v7958_v54 = vpop.f32.mrf.mxu0  ;;  %v5780_v55 = vadd.f32 %v7862_v35, %v7855_v16 }
 0x25b   : > { %5423 = vst [vmem:[%s7930_s20 + $0x18] sm:$0xff] %v5344_v58   ;;  %v4508_v60 = vmul.f32 %v7871_v26, %v4338_v29  ;;  %v4257_v9 = vadd.f32 %v5970_v18, %v5768_v42  ;;  %v4578_v21 = vmax.f32 %v4546_v30, 0.0  ;;  %v4544_v27 = vadd.f32 %v7885_v12, %v4505_v38 }
 0x25c   : > { %v5339_v43 = vpack.c.bf16 %v4573_v5, %v4572_v57  ;;  %v4336_v62 = vadd.f32 %v4236_v39, %v7701_v51  ;;  %v4248_v6 = vpop.f32.mrf.mxu1  ;;  %v7965_v52 = vpop.f32.mrf.mxu0  ;;  %v5774_v42 = vadd.f32 %v7844_v7, %v7839_v14  ;;  %v5783_v57 = vadd.f32 %v7873_v33, %v7866_v34  ;;  %v8231_v39 = vld [vmem:[#allocation26_spill] sm:$0xff]  ;;  %v8232_v34 = vld [vmem:[#allocation24_spill] sm:$0xff] }
 0x25d   : > { %v4547_v56 = vadd.f32 %v7885_v12, %v4508_v60  ;;  %v4341_v31 = vadd.f32 %v4257_v9, %v7737_v17  ;;  %v4249_v19 = vadd.f32 %v5762_v46, %v4248_v6  ;;  %v5765_v17 = vadd.f32 %v7820_v59, %v7817_v41  ;;  %v8233_v6 = vld [vmem:[#allocation37_spill] sm:$0xff] }
 0x25e   : > { %5422 = vst [vmem:[%s7930_s20 + $0x10] sm:$0xff] %v5339_v43   ;;  %v4506_v23 = vmul.f32 %v7871_v26, %v4336_v62  ;;  %v5971_v20 = vpop.f32.mrf.mxu1  ;;  %v7974_v36 = vpop.f32.mrf.mxu0  ;;  %v4576_v49 = vmax.f32 %v4544_v27, 0.0  ;;  %v5792_v27 = vadd.f32 %v7919_v2, %v7910_v28  ;;  %v8236_v2 = vld [vmem:[#allocation30_spill] sm:$0xff] }
 0x25f   : > { %v4579_v51 = vmax.f32 %v4547_v56, 0.0  ;;  %v4511_v32 = vmul.f32 %v7871_v26, %v4341_v31  ;;  %v4339_v63 = vadd.f32 %v4249_v19, %v7723_v37  ;;  %v4260_v15 = vadd.f32 %v5971_v20, %v5771_v4  ;;  %v8234_v4 = vld [vmem:[#allocation39_spill] sm:$0xff] }
 0x260   : > { %v4545_v3 = vadd.f32 %v7885_v12, %v4506_v23  ;;  %v4251_v0 = vpop.f32.mrf.mxu1  ;;  %v7981_v61 = vpop.f32.mrf.mxu0  ;;  %v5777_v56 = vadd.f32 %v8234_v4, %v8233_v6 }
 0x261   : > { %v5354_v10 = vpack.c.bf16 %v4579_v51, %v4578_v21  ;;  %v4509_v1 = vmul.f32 %v7871_v26, %v4339_v63  ;;  %v4342_v45 = vadd.f32 %v4260_v15, %v7745_v53  ;;  %v4550_v13 = vadd.f32 %v7885_v12, %v4511_v32  ;;  %v8235_v51 = vld [vmem:[#allocation27_spill] sm:$0xff] }
 0x262   : > { %v4577_v37 = vmax.f32 %v4545_v3, 0.0  ;;  %v4252_v22 = vadd.f32 %v5765_v17, %v4251_v0  ;;  %v5974_v41 = vpop.f32.mrf.mxu1  ;;  %v7988_v59 = vpop.f32.mrf.mxu0 }
 0x263   : > { %5425 = vst [vmem:[%s7930_s20 + $0x28] sm:$0xff] %v5354_v10   ;;  %v4512_v16 = vmul.f32 %v7871_v26, %v4342_v45  ;;  %v4273_v35 = vadd.f32 %v5974_v41, %v5780_v55  ;;  %v4548_v30 = vadd.f32 %v7885_v12, %v4509_v1  ;;  %v4582_v14 = vmax.f32 %v4550_v13, 0.0  ;;  %v8237_v1 = vld [vmem:[#allocation21_spill] sm:$0xff] }
 0x264   : > { %v5349_v53 = vpack.c.bf16 %v4577_v37, %v4576_v49  ;;  %v4340_v58 = vadd.f32 %v4252_v22, %v7729_v50  ;;  %v4264_v29 = vpop.f32.mrf.mxu1  ;;  %v7997_v5 = vpop.f32.mrf.mxu0  ;;  %v5786_v10 = vadd.f32 %v7888_v40, %v7879_v44  ;;  %v3245_v45 = vadd.f32 %v8237_v1, %v8236_v2  ;;  %v8238_v13 = vld [vmem:[#allocation25_spill] sm:$0xff] }
 0x265   : > { %v4551_v38 = vadd.f32 %v7885_v12, %v4512_v16  ;;  %v4345_v18 = vadd.f32 %v4273_v35, %v8231_v39  ;;  %v4265_v7 = vadd.f32 %v5774_v42, %v4264_v29  ;;  %v4580_v23 = vmax.f32 %v4548_v30, 0.0  ;;  %v8239_v29 = vld [vmem:[#allocation31_spill] sm:$0xff]  ;;  %v8240_v30 = vld [vmem:[#allocation22_spill] sm:$0xff] }
 0x266   : > { %5424 = vst [vmem:[%s7930_s20 + $0x20] sm:$0xff] %v5349_v53   ;;  %v4510_v46 = vmul.f32 %v7871_v26, %v4340_v58  ;;  %v5975_v60 = vpop.f32.mrf.mxu1  ;;  %v8004_v9 = vpop.f32.mrf.mxu0  ;;  %v5795_v16 = vadd.f32 %v7937_v11, %v7924_v8 }
 0x267   : > { %v4583_v33 = vmax.f32 %v4551_v38, 0.0  ;;  %v4515_v50 = vmul.f32 %v7871_v26, %v4345_v18  ;;  %v4343_v43 = vadd.f32 %v4265_v7, %v8232_v34  ;;  %v4276_v62 = vadd.f32 %v5975_v60, %v5783_v57 }
 0x268   : > { %v4549_v31 = vadd.f32 %v7885_v12, %v4510_v46  ;;  %v4267_v19 = vpop.f32.mrf.mxu1  ;;  %v8011_v21 = vpop.f32.mrf.mxu0  ;;  %v3248_v38 = vadd.f32 %v8240_v30, %v8239_v29  ;;  %v8241_v46 = vld [vmem:[#allocation28_spill] sm:$0xff]  ;;  %v5789_v60 = vadd.f32 %v7903_v24, %v7896_v48  ;;  %v5798_v48 = vadd.f32 %v7951_v47, %v7944_v25 }
 0x269   : > { %v5364_v20 = vpack.c.bf16 %v4583_v33, %v4582_v14  ;;  %v4346_v32 = vadd.f32 %v4276_v62, %v8235_v51  ;;  %v4554_v15 = vadd.f32 %v7885_v12, %v4515_v50  ;;  %v4513_v17 = vmul.f32 %v7871_v26, %v4343_v43  ;;  %v8243_v51 = vld [vmem:[#allocation15_spill] sm:$0xff] }
 0x26a   : > { %v4581_v63 = vmax.f32 %v4549_v31, 0.0  ;;  %v4268_v3 = vadd.f32 %v5777_v56, %v4267_v19  ;;  %v5978_v0 = vpop.f32.mrf.mxu1  ;;  %v8018_v55 = vpop.f32.mrf.mxu0  ;;  %v5804_v62 = vadd.f32 %v7981_v61, %v7974_v36  ;;  %v8244_v61 = vld [vmem:[#allocation40_spill] sm:$0xff]  ;;  %v5801_v30 = vadd.f32 %v7965_v52, %v7958_v54 }
 0x26b   : > { %5427 = vst [vmem:[%s7930_s20 + $0x38] sm:$0xff] %v5364_v20   ;;  %v4516_v28 = vmul.f32 %v7871_v26, %v4346_v32  ;;  %v4289_v49 = vadd.f32 %v5978_v0, %v5792_v27  ;;  %v4586_v44 = vmax.f32 %v4554_v15, 0.0  ;;  %v4552_v53 = vadd.f32 %v7885_v12, %v4513_v17  ;;  %v8242_v20 = vld [vmem:[#allocation34_spill] sm:$0xff]  ;;  %v8246_v0 = vld [vmem:[#allocation29_spill] sm:$0xff] }
 0x26c   : > { %v5359_v37 = vpack.c.bf16 %v4581_v63, %v4580_v23  ;;  %v4344_v22 = vadd.f32 %v4268_v3, %v8238_v13  ;;  %v4280_v41 = vpop.f32.mrf.mxu1  ;;  %v8027_v42 = vpop.f32.mrf.mxu0  ;;  %v3261_v32 = vadd.f32 %v8243_v51, %v8242_v20  ;;  %v8245_v63 = vld [vmem:[#allocation42_spill] sm:$0xff]  ;;  %v5807_v3 = vadd.f32 %v7997_v5, %v7988_v59  ;;  %v8247_v13 = vld [vmem:[#allocation35_spill] sm:$0xff] }
 0x26d   : > { %v4555_v35 = vadd.f32 %v7885_v12, %v4516_v28  ;;  %v4349_v57 = vadd.f32 %v4289_v49, %v3245_v45  ;;  %v4281_v40 = vadd.f32 %v5786_v10, %v4280_v41  ;;  %v4584_v56 = vmax.f32 %v4552_v53, 0.0  ;;  %v8250_v53 = vld [vmem:[#allocation41_spill] sm:$0xff] }
 0x26e   : > { %5426 = vst [vmem:[%s7930_s20 + $0x30] sm:$0xff] %v5359_v37   ;;  %v4514_v58 = vmul.f32 %v7871_v26, %v4344_v22  ;;  %v5979_v39 = vpop.f32.mrf.mxu1  ;;  %v5814_v18 = vpop.f32.mrf.mxu0  ;;  %v5683_v15 = vadd.f32 %v8245_v63, %v8244_v61  ;;  %v8248_v22 = vld [vmem:[#allocation16_spill] sm:$0xff]  ;;  %v5810_v54 = vadd.f32 %v8011_v21, %v8004_v9 }
 0x26f   : > { %v4587_v7 = vmax.f32 %v4555_v35, 0.0  ;;  %v4519_v14 = vmul.f32 %v7871_v26, %v4349_v57  ;;  %v4347_v8 = vadd.f32 %v4281_v40, %v8241_v46  ;;  %v4292_v11 = vadd.f32 %v5979_v39, %v5795_v16  ;;  %v8249_v57 = vld [vmem:[#allocation32_spill] sm:$0xff] }
 0x270   : > { %v4553_v33 = vadd.f32 %v7885_v12, %v4514_v58  ;;  %v4283_v50 = vpop.f32.mrf.mxu1  ;;  %v5815_v34 = vpop.f32.mrf.mxu0  ;;  %v3264_v41 = vadd.f32 %v8248_v22, %v8247_v13  ;;  %v8251_v58 = vld [vmem:[#allocation18_spill] sm:$0xff] }
 0x271   : > { %v5374_v43 = vpack.c.bf16 %v4587_v7, %v4586_v44  ;;  %v4517_v6 = vmul.f32 %v7871_v26, %v4347_v8  ;;  %v4350_v4 = vadd.f32 %v4292_v11, %v3248_v38  ;;  %v4558_v19 = vadd.f32 %v7885_v12, %v4519_v14  ;;  %v8252_v14 = vld [vmem:[#allocation20_spill] sm:$0xff] }
 0x272   : > { %v4585_v31 = vmax.f32 %v4553_v33, 0.0  ;;  %v4284_v27 = vadd.f32 %v5789_v60, %v4283_v50  ;;  %v5982_v23 = vpop.f32.mrf.mxu1  ;;  %v5817_v2 = vpop.f32.mrf.mxu0  ;;  %v5816_v35 = vadd.f32 %v5815_v34, %v5814_v18  ;;  %v3277_v29 = vadd.f32 %v8251_v58, %v8250_v53 }
 0x273   : > { %5429 = vst [vmem:[%s7930_s20 + $0x48] sm:$0xff] %v5374_v43   ;;  %v4520_v24 = vmul.f32 %v7871_v26, %v4350_v4  ;;  %v4305_v36 = vadd.f32 %v5982_v23, %v5804_v62  ;;  %v4556_v25 = vadd.f32 %v7885_v12, %v4517_v6  ;;  %v4590_v49 = vmax.f32 %v4558_v19, 0.0 }
 0x274   : > { %v5369_v17 = vpack.c.bf16 %v4585_v31, %v4584_v56  ;;  %v4348_v10 = vadd.f32 %v4284_v27, %v8246_v0  ;;  %v4296_v28 = vpop.f32.mrf.mxu1  ;;  %v5818_v7 = vpop.f32.mrf.mxu0  ;;  %v3119_v46 = vadd.f32 %v5683_v15, %v8252_v14  ;;  %v8253_v56 = vld [vmem:[#allocation33_spill] sm:$0xff] }
 0x275   : > { %v4559_v47 = vadd.f32 %v7885_v12, %v4520_v24  ;;  %v4353_v1 = vadd.f32 %v4305_v36, %v3261_v32  ;;  %v4297_v45 = vadd.f32 %v5798_v48, %v4296_v28  ;;  %v4588_v18 = vmax.f32 %v4556_v25, 0.0  ;;  %v8254_v48 = vld [vmem:[#allocation36_spill] sm:$0xff]  ;;  %v8255_v24 = vld [vmem:[#allocation17_spill] sm:$0xff]  ;;  %v8256_v32 = vld [vmem:[#allocation23_spill] sm:$0xff] }
 0x276   : > { %5428 = vst [vmem:[%s7930_s20 + $0x40] sm:$0xff] %v5369_v17   ;;  %v4518_v37 = vmul.f32 %v7871_v26, %v4348_v10  ;;  %v5983_v16 = vpop.f32.mrf.mxu1  ;;  %v5819_v6 = vadd.f32 %v5818_v7, %v5817_v2  ;;  %v3269_v20 = vadd.f32 %v8255_v24, %v8254_v48  ;;  %v3280_v36 = vadd.f32 %v8256_v32, %v3119_v46 }
 0x277   : > { %v4591_v59 = vmax.f32 %v4559_v47, 0.0  ;;  %v4523_v5 = vmul.f32 %v7871_v26, %v4353_v1  ;;  %v4351_v40 = vadd.f32 %v4297_v45, %v8249_v57  ;;  %v4308_v44 = vadd.f32 %v5983_v16, %v5807_v3  ;;  %v8257_v1 = vld [vmem:[#allocation38_spill] sm:$0xff]  ;;  %v8258_v45 = vld [vmem:[#allocation19_spill] sm:$0xff] }
 0x278   : > { %v4557_v38 = vadd.f32 %v7885_v12, %v4518_v37  ;;  %v4299_v39 = vpop.f32.mrf.mxu1  ;;  %v5813_v10 = vadd.f32 %v8027_v42, %v8018_v55 }
 0x279   : > { %v5384_v8 = vpack.c.bf16 %v4591_v59, %v4590_v49  ;;  %v4354_v11 = vadd.f32 %v4308_v44, %v3264_v41  ;;  %v4562_v33 = vadd.f32 %v7885_v12, %v4523_v5  ;;  %v4521_v50 = vmul.f32 %v7871_v26, %v4351_v40 }
 0x27a   : > { %v4589_v60 = vmax.f32 %v4557_v38, 0.0  ;;  %v4300_v34 = vadd.f32 %v5801_v30, %v4299_v39  ;;  %v5986_v43 = vpop.f32.mrf.mxu1  ;;  %v3272_v49 = vadd.f32 %v8258_v45, %v8257_v1 }
 0x27b   : > { %5431 = vst [vmem:[%s7930_s20 + $0x58] sm:$0xff] %v5384_v8   ;;  %v4524_v52 = vmul.f32 %v7871_v26, %v4354_v11  ;;  %v4321_v62 = vadd.f32 %v5986_v43, %v5816_v35  ;;  %v4594_v61 = vmax.f32 %v4562_v33, 0.0  ;;  %v4560_v9 = vadd.f32 %v7885_v12, %v4521_v50 }
 0x27c   : > { %v5379_v4 = vpack.c.bf16 %v4589_v60, %v4588_v18  ;;  %v4352_v31 = vadd.f32 %v4300_v34, %v8253_v56  ;;  %v4312_v19 = vpop.f32.mrf.mxu1 }
 0x27d   : > { %v4563_v27 = vadd.f32 %v7885_v12, %v4524_v52  ;;  %v4357_v23 = vadd.f32 %v4321_v62, %v3277_v29  ;;  %v4313_v51 = vadd.f32 %v5810_v54, %v4312_v19  ;;  %v4592_v37 = vmax.f32 %v4560_v9, 0.0 }
 0x27e   : > { %5430 = vst [vmem:[%s7930_s20 + $0x50] sm:$0xff] %v5379_v4   ;;  %v4522_v21 = vmul.f32 %v7871_v26, %v4352_v31  ;;  %v5987_v63 = vpop.f32.mrf.mxu1 }
 0x27f   : > { %v4595_v15 = vmax.f32 %v4563_v27, 0.0  ;;  %v4527_v17 = vmul.f32 %v7871_v26, %v4357_v23  ;;  %v4355_v3 = vadd.f32 %v4313_v51, %v3269_v20  ;;  %v4324_v0 = vadd.f32 %v5987_v63, %v5819_v6 }
 0x280   : > { %v4561_v28 = vadd.f32 %v7885_v12, %v4522_v21  ;;  %v4315_v2 = vpop.f32.mrf.mxu1 }
 0x281   : > { %v5394_v25 = vpack.c.bf16 %v4595_v15, %v4594_v61  ;;  %v4358_v47 = vadd.f32 %v4324_v0, %v3280_v36  ;;  %v4525_v22 = vmul.f32 %v7871_v26, %v4355_v3  ;;  %v4316_v41 = vadd.f32 %v5813_v10, %v4315_v2 }
 0x282   : > { %v4593_v13 = vmax.f32 %v4561_v28, 0.0  ;;  %v4566_v16 = vadd.f32 %v7885_v12, %v4527_v17 }
 0x283   : > { %5433 = vst [vmem:[%s7930_s20 + $0x68] sm:$0xff] %v5394_v25   ;;  %v4528_v55 = vmul.f32 %v7871_v26, %v4358_v47  ;;  %v4356_v35 = vadd.f32 %v4316_v41, %v3272_v49  ;;  %v4564_v5 = vadd.f32 %v7885_v12, %v4525_v22 }
 0x284   : > { %v5389_v42 = vpack.c.bf16 %v4593_v13, %v4592_v37  ;;  %v4598_v40 = vmax.f32 %v4566_v16, 0.0 }
 0x285   : > { %v4567_v59 = vadd.f32 %v7885_v12, %v4528_v55  ;;  %v4526_v57 = vmul.f32 %v7871_v26, %v4356_v35  ;;  %v4596_v29 = vmax.f32 %v4564_v5, 0.0 }
 0x286   : > { %5432 = vst [vmem:[%s7930_s20 + $0x60] sm:$0xff] %v5389_v42  }
 0x287   : > { %v4599_v44 = vmax.f32 %v4567_v59, 0.0  ;;  %v4565_v53 = vadd.f32 %v7885_v12, %v4526_v57 }
 0x289   : > { %v5404_v58 = vpack.c.bf16 %v4599_v44, %v4598_v40  ;;  %v4597_v30 = vmax.f32 %v4565_v53, 0.0 }
 0x28b   : > { %5435 = vst [vmem:[%s7930_s20 + $0x78] sm:$0xff] %v5404_v58   ;;  %v5399_v26 = vpack.c.bf16 %v4597_v30, %v4596_v29 }
 0x28d   : > { %5434 = vst [vmem:[%s7930_s20 + $0x70] sm:$0xff] %v5399_v26  }
 0x28e   : > { %6372 = shalt.err (!%p6369_p5)
}
 0x28f   : > { %s6373_s18 = scalar_lea.hbm %s8106_s29, 2048  ;;  %s6377_s19 = scalar_lea.hbm %s8163_s6, 4096 }
 0x290   : > { %p6374_p7 = scmp.ne.s32.totalorder %s8106_s29, %s6373_s18  ;;  %p6378_p9 = scmp.lt.s32.totalorder %s8106_s29, %s8163_s6 }
 0x291   : > { %p6379_p11 = scmp.lt.s32.totalorder %s6377_s19, %s6373_s18 }
 0x292   : > { %p6375_p4 = pnand %p6374_p7, %p6578_p13 }
 0x293   : > { %p6380_p10 = por %p6379_p11, %p6378_p9 }
 0x294   : > { %p6376_p6 = pneg %p6375_p4 }
 0x296   : > { %p6381_p1 = pnand %p6380_p10, %p6376_p6 }
 0x298   : > { %6384 = shalt.err (!%p6381_p1)
}
 0x299   : > { %s6451_s20 = smov 64   ;;  %s6452_s25 = smov 4  }
 0x29a   : > { %6010 = dma.vmem_to_hbm [thread:$0]  (%p6578_p13), %s8108_s11, 2048, %s8106_s29, %s4761_s7, %s6451_s20, %s6451_s20, %s6452_s25  }
 0x29b PF: > { %s4789_s17 = sand.u32 1, %s6423_s21   ;;  %p8259_p8 = scmp.ne.s32.totalorder %s8174_s8, 0 }
 0x29c   : > { %p8260_p12 = scmp.ge.s32.totalorder %s6443_s26, 2  ;;  %s4790_s3 = scalar_lea.sflag [#allocation6], %s4789_s17 }
 0x29e   : > { %p6021_p0 = pnand %p8260_p12, %p8259_p8 }
 0x2a0   : > { %p6022_p2 = pneg %p6021_p0 }
 0x2a2   : > { %6418 = dma.done.wait (%p6022_p2), %s4790_s3, 2048  }
 0x2a3   : > { %6420 = vsyncadd (%p6022_p2), %s4790_s3, 4294965248  ;;  %s23_s26 = sadd.s32 1, %s6443_s26   ;;  %s8261_s24 = sld [smem:[#allocation13_spill]] }
 0x2a4   : > { %p20_p3 = scmp.ge.s32.totalorder %s23_s26, 4   ;;  %s8262_s25 = sld [smem:[#allocation14_spill]] }
 0x2a5   : > { %s8263_s21 = smov %s6427_s22  ;;  %s8264_s22 = smov %s6431_s23 }
 0x2a6   : > { %s8265_s23 = smov %s6587_s12  ;;  %22 = sbr.rel (!%p20_p3) target bundleno = 9 (0x9), region = 114 }
 0x2ab   :  { %4795 = vsyncpa [#allocation5], 1 }
 0x2ac   :  { %4797 = vsyncpa [#allocation5 + $0x1], 1 }
 0x2ad   :  { %4798 = vsyncpa [#allocation8], 1 }
 0x2ae   :  { %4799 = vsyncpa [#allocation6], 1 }
 0x2af   :  { %4801 = vsyncpa [#allocation6 + $0x1], 1 }

</bundles_post_ra>
